<compile_context>
chip_gen: v7x
topology: tpu7x:2x2x1
jax: 0.10.0
libtpu: 0.0.40
codegen_flags: <defaults>
</compile_context>

<pallas_src>
import functools
import math

import jax
import jax.numpy as jnp
from jax import lax
from jax.experimental import pallas as pl
from jax.experimental.pallas import tpu as pltpu


def _ceil_to(n, m):
    return ((n + m - 1) // m) * m


def _resblock_kernel(x_ref, w1_ref, b1_ref, w2_ref, b2_ref, o_ref, pad_ref,
                     *, H, W, C, K, wl):
    """Fused ResBlock over one batch element.

    x_ref  : (1, H, W, C)        input tile (also the residual); C is 128-padded
    w*_ref : (K, K, C, C)        weights (dy, dx, cin, cout); w2/b2 pre-scaled
    b*_ref : (1, C)              biases
    o_ref  : (1, H, W, C)        output tile
    pad_ref: (H+2p, W+wl+p, C)   f32 VMEM scratch shared by both convs; the
                                 interior starts at column `wl` (sublane-aligned)
    """
    p = K // 2
    Hp = H + 2 * p
    Wp = W + wl + p
    f32 = jnp.float32

    # ---- zero only the halo border; the interior is fully rewritten below --
    if p > 0:
        zrow = jnp.zeros((p, Wp, C), f32)
        pad_ref[0:p, :, :] = zrow                         # top rows
        pad_ref[p + H:Hp, :, :] = zrow                    # bottom rows
        zcol = jnp.zeros((Hp, p, C), f32)
        pad_ref[:, wl - p:wl, :] = zcol                   # left columns
        pad_ref[:, wl + W:wl + W + p, :] = zcol           # right columns

    def conv(w_ref, b_ref):
        # Bias-initialised f32 accumulator (broadcast hoisted out of the loop).
        acc = jnp.broadcast_to(b_ref[...].astype(f32), (H * W, C))
        for dy in range(K):                               # K*K windowed loads,
            for dx in range(K):                           # no lane concat
                col = wl - p + dx
                win = pad_ref[dy:dy + H, col:col + W, :]  # (H, W, C)
                acc = acc + jnp.dot(win.reshape(H * W, C), w_ref[dy, dx],
                                    preferred_element_type=f32)
        return acc                                        # (H*W, C) f32

    # ---- conv1 + ReLU; the intermediate activation never leaves VMEM -------
    pad_ref[p:p + H, wl:wl + W, :] = x_ref[0].astype(f32)
    h = jnp.maximum(conv(w1_ref, b1_ref), 0.0)

    # ---- conv2 (res_scale already folded into w2/b2), reusing the scratch --
    pad_ref[p:p + H, wl:wl + W, :] = h.reshape(H, W, C)
    res = conv(w2_ref, b2_ref)

    # ---- residual add + full-lane (unmasked) store --------------------------
    out = res + x_ref[0].reshape(H * W, C).astype(f32)
    o_ref[...] = out.reshape(1, H, W, C).astype(o_ref.dtype)


def _resblock_pallas(x_nhwc, w1, b1, w2, b2, K):
    """Fused ResBlock forward; x / weights already channel-padded to 128k."""
    N, H, W, C = x_nhwc.shape
    p = K // 2
    wl = max(_ceil_to(p, 8), 8) if p > 0 else 0   # sublane-aligned interior start
    Hp, Wp = H + 2 * p, W + wl + p

    kernel = functools.partial(_resblock_kernel, H=H, W=W, C=C, K=K, wl=wl)
    return pl.pallas_call(
        kernel,
        grid=(N,),
        in_specs=[
            pl.BlockSpec((1, H, W, C), lambda n: (n, 0, 0, 0)),    # x
            pl.BlockSpec((K, K, C, C), lambda n: (0, 0, 0, 0)),    # w1
            pl.BlockSpec((1, C), lambda n: (0, 0)),                # b1
            pl.BlockSpec((K, K, C, C), lambda n: (0, 0, 0, 0)),    # w2 (scaled)
            pl.BlockSpec((1, C), lambda n: (0, 0)),                # b2 (scaled)
        ],
        out_specs=pl.BlockSpec((1, H, W, C), lambda n: (n, 0, 0, 0)),
        out_shape=jax.ShapeDtypeStruct((N, H, W, C), x_nhwc.dtype),
        scratch_shapes=[pltpu.VMEM((Hp, Wp, C), jnp.float32)],     # shared pad buf
        compiler_params=pltpu.CompilerParams(
            dimension_semantics=("parallel",)),
    )(x_nhwc, w1, b1, w2, b2)


class ResBlockPallas:
    """Pallas equivalent of models/common.py::ResBlock (forward only)."""

    def __init__(self, n_feats, kernel_size, res_scale=1, *, key):
        k1, k2, k3, k4 = jax.random.split(key, 4)
        # Deterministic init mimicking nn.Conv2d default (kaiming-uniform bound).
        fan_in = n_feats * kernel_size * kernel_size
        bound = 1.0 / math.sqrt(fan_in)
        shp_w = (kernel_size, kernel_size, n_feats, n_feats)   # (dy, dx, cin, cout)
        self.w1 = jax.random.uniform(k1, shp_w, jnp.float32, -bound, bound)
        self.b1 = jax.random.uniform(k2, (1, n_feats), jnp.float32, -bound, bound)
        self.w2 = jax.random.uniform(k3, shp_w, jnp.float32, -bound, bound)
        self.b2 = jax.random.uniform(k4, (1, n_feats), jnp.float32, -bound, bound)
        self.K = kernel_size
        self.res_scale = float(res_scale)
        self.n_feats = n_feats

        # ---- kernel-side parameters, prepared ONCE ----------------------------
        # Channels zero-padded to the 128-lane width -> lane-dense I/O / full MXU
        # tiles; res_scale folded into conv2 params (the residual x is NOT scaled,
        # matching `res = body(x) * res_scale; res += x`).
        self._cp = _ceil_to(n_feats, 128)
        pc = self._cp - n_feats
        self._w1 = jnp.pad(self.w1, ((0, 0), (0, 0), (0, pc), (0, pc)))
        self._b1 = jnp.pad(self.b1, ((0, 0), (0, pc)))
        self._w2 = jnp.pad(self.w2 * self.res_scale, ((0, 0), (0, 0), (0, pc), (0, pc)))
        self._b2 = jnp.pad(self.b2 * self.res_scale, ((0, 0), (0, pc)))

    def __call__(self, x_nchw):
        C, Cp = self.n_feats, self._cp
        x = jnp.transpose(x_nchw, (0, 2, 3, 1))                  # NCHW -> NHWC
        xp = jnp.pad(x, ((0, 0), (0, 0), (0, 0), (0, Cp - C)))   # 128-lane channels
        outp = _resblock_pallas(xp, self._w1, self._b1, self._w2, self._b2, self.K)
        out = outp[..., :C]                                      # drop pad channels
        return jnp.transpose(out, (0, 3, 1, 2))                  # NHWC -> NCHW


def _reference(x_nchw, w1, b1, w2, b2, res_scale):
    """Pure-JAX reference (lax.conv) matching PyTorch ResBlock semantics."""
    def conv(x, w, b):
        y = lax.conv_general_dilated(
            x, w, window_strides=(1, 1), padding="SAME",
            dimension_numbers=("NHWC", "HWIO", "NHWC"))
        return y + b.reshape(1, 1, 1, -1)

    x = jnp.transpose(x_nchw, (0, 2, 3, 1))
    h = jnp.maximum(conv(x, w1, b1), 0.0)
    out = conv(h, w2, b2) * res_scale + x
    return jnp.transpose(out, (0, 3, 1, 2))


if __name__ == "__main__":
    key = jax.random.PRNGKey(0)
    kx, kp = jax.random.split(key)

    N, C, H, W = 2, 4, 16, 16          # n_feats = 4, kernel_size = 3
    kernel_size = 3
    res_scale = 1

    x = jax.random.normal(kx, (N, C, H, W), jnp.float32)   # PyTorch NCHW input

    block = ResBlockPallas(n_feats=C, kernel_size=kernel_size,
                           res_scale=res_scale, key=kp)

    out = jax.block_until_ready(block(x))
    ref = jax.block_until_ready(_reference(x, block.w1, block.b1,
                                           block.w2, block.b2, res_scale))

    assert out.shape == x.shape and out.dtype == x.dtype
    max_err = jnp.max(jnp.abs(out - ref))
    assert jnp.allclose(out, ref, rtol=1e-5, atol=1e-5), \
        f"max abs err = {max_err}"

    print("KERNEL_OK")
</pallas_src>

<mosaic_0001>
module attributes {stable_mosaic.version = 11 : i64} {
  func.func @_resblock_kernel(%arg0: i32, %arg1: memref<1x16x16x128xf32, #tpu.memory_space<vmem>>, %arg2: memref<3x3x128x128xf32, #tpu.memory_space<vmem>>, %arg3: memref<1x128xf32, #tpu.memory_space<vmem>>, %arg4: memref<3x3x128x128xf32, #tpu.memory_space<vmem>>, %arg5: memref<1x128xf32, #tpu.memory_space<vmem>>, %arg6: memref<1x16x16x128xf32, #tpu.memory_space<vmem>>, %arg7: memref<18x25x128xf32, #tpu.memory_space<vmem>>) attributes {dimension_semantics = [#tpu.dimension_semantics<parallel>], iteration_bounds = array<i64: 2>, scalar_prefetch = 0 : i64, scratch_operands = 1 : i64, tpu.core_type = #tpu.core_type<tc>, window_params = [{transform_indices = @transform_0, window_bounds = array<i64: 1, 16, 16, 128>}, {pipeline_mode = #tpu.pipeline_mode<synchronous>, transform_indices = @transform_1, window_bounds = array<i64: 3, 3, 128, 128>}, {pipeline_mode = #tpu.pipeline_mode<synchronous>, transform_indices = @transform_2, window_bounds = array<i64: 1, 128>}, {pipeline_mode = #tpu.pipeline_mode<synchronous>, transform_indices = @transform_3, window_bounds = array<i64: 3, 3, 128, 128>}, {pipeline_mode = #tpu.pipeline_mode<synchronous>, transform_indices = @transform_4, window_bounds = array<i64: 1, 128>}, {transform_indices = @transform_5, window_bounds = array<i64: 1, 16, 16, 128>}]} {
    %cst = arith.constant 0.000000e+00 : f32
    %0 = vector.broadcast %cst : f32 to vector<1x25x128xf32>
    %c0 = arith.constant 0 : index
    %c0_0 = arith.constant 0 : index
    %c0_1 = arith.constant 0 : index
    %1 = vector.load %arg7[%c0, %c0_0, %c0_1] : memref<18x25x128xf32, #tpu.memory_space<vmem>>, vector<1x25x128xf32>
    tpu.vector_store %arg7[%c0, %c0_0, %c0_1], %0 {strides = array<i32>} : memref<18x25x128xf32, #tpu.memory_space<vmem>>, vector<1x25x128xf32>,
    %c17 = arith.constant 17 : index
    %c0_2 = arith.constant 0 : index
    %c0_3 = arith.constant 0 : index
    %2 = vector.load %arg7[%c17, %c0_2, %c0_3] : memref<18x25x128xf32, #tpu.memory_space<vmem>>, vector<1x25x128xf32>
    tpu.vector_store %arg7[%c17, %c0_2, %c0_3], %0 {strides = array<i32>} : memref<18x25x128xf32, #tpu.memory_space<vmem>>, vector<1x25x128xf32>,
    %cst_4 = arith.constant 0.000000e+00 : f32
    %3 = vector.broadcast %cst_4 : f32 to vector<18x1x128xf32>
    %c0_5 = arith.constant 0 : index
    %c7 = arith.constant 7 : index
    %c0_6 = arith.constant 0 : index
    %4 = vector.load %arg7[%c0_5, %c7, %c0_6] : memref<18x25x128xf32, #tpu.memory_space<vmem>>, vector<18x1x128xf32>
    tpu.vector_store %arg7[%c0_5, %c7, %c0_6], %3 {strides = array<i32>} : memref<18x25x128xf32, #tpu.memory_space<vmem>>, vector<18x1x128xf32>,
    %c0_7 = arith.constant 0 : index
    %c24 = arith.constant 24 : index
    %c0_8 = arith.constant 0 : index
    %5 = vector.load %arg7[%c0_7, %c24, %c0_8] : memref<18x25x128xf32, #tpu.memory_space<vmem>>, vector<18x1x128xf32>
    tpu.vector_store %arg7[%c0_7, %c24, %c0_8], %3 {strides = array<i32>} : memref<18x25x128xf32, #tpu.memory_space<vmem>>, vector<18x1x128xf32>,
    %c0_9 = arith.constant 0 : index
    %c0_10 = arith.constant 0 : index
    %c0_11 = arith.constant 0 : index
    %c0_12 = arith.constant 0 : index
    %6 = vector.load %arg1[%c0_9, %c0_10, %c0_11, %c0_12] : memref<1x16x16x128xf32, #tpu.memory_space<vmem>>, vector<1x16x16x128xf32>
    %7 = vector.shape_cast %6 : vector<1x16x16x128xf32> to vector<16x16x128xf32>
    %c1 = arith.constant 1 : index
    %c8 = arith.constant 8 : index
    %c0_13 = arith.constant 0 : index
    %8 = vector.load %arg7[%c1, %c8, %c0_13] : memref<18x25x128xf32, #tpu.memory_space<vmem>>, vector<16x16x128xf32>
    tpu.vector_store %arg7[%c1, %c8, %c0_13], %7 {strides = array<i32>} : memref<18x25x128xf32, #tpu.memory_space<vmem>>, vector<16x16x128xf32>,
    %c0_14 = arith.constant 0 : index
    %c0_15 = arith.constant 0 : index
    %9 = vector.load %arg3[%c0_14, %c0_15] : memref<1x128xf32, #tpu.memory_space<vmem>>, vector<1x128xf32>
    %10 = vector.shape_cast %9 : vector<1x128xf32> to vector<1x128xf32>
    %11 = vector.broadcast %10 : vector<1x128xf32> to vector<256x128xf32>
    %c0_16 = arith.constant 0 : index
    %c7_17 = arith.constant 7 : index
    %c0_18 = arith.constant 0 : index
    %12 = vector.load %arg7[%c0_16, %c7_17, %c0_18] : memref<18x25x128xf32, #tpu.memory_space<vmem>>, vector<16x16x128xf32>
    %13 = vector.shape_cast %12 : vector<16x16x128xf32> to vector<256x128xf32>
    %c0_19 = arith.constant 0 : index
    %c0_20 = arith.constant 0 : index
    %c0_21 = arith.constant 0 : index
    %c0_22 = arith.constant 0 : index
    %14 = vector.load %arg2[%c0_19, %c0_20, %c0_21, %c0_22] : memref<3x3x128x128xf32, #tpu.memory_space<vmem>>, vector<1x1x128x128xf32>
    %15 = vector.shape_cast %14 : vector<1x1x128x128xf32> to vector<128x128xf32>
    %cst_23 = arith.constant dense<0.000000e+00> : vector<256x128xf32>
    %16 = tpu.matmul %13, %15, %cst_23 {dimension_numbers = #tpu.dot_dimension_numbers<[1], [0], [0], [1], [0, 0, 1, 1], [], []>} : vector<256x128xf32>, vector<128x128xf32>, vector<256x128xf32> -> vector<256x128xf32>
    %17 = arith.addf %11, %16 : vector<256x128xf32>
    %c0_24 = arith.constant 0 : index
    %c8_25 = arith.constant 8 : index
    %c0_26 = arith.constant 0 : index
    %18 = vector.load %arg7[%c0_24, %c8_25, %c0_26] : memref<18x25x128xf32, #tpu.memory_space<vmem>>, vector<16x16x128xf32>
    %19 = vector.shape_cast %18 : vector<16x16x128xf32> to vector<256x128xf32>
    %c0_27 = arith.constant 0 : index
    %c1_28 = arith.constant 1 : index
    %c0_29 = arith.constant 0 : index
    %c0_30 = arith.constant 0 : index
    %20 = vector.load %arg2[%c0_27, %c1_28, %c0_29, %c0_30] : memref<3x3x128x128xf32, #tpu.memory_space<vmem>>, vector<1x1x128x128xf32>
    %21 = vector.shape_cast %20 : vector<1x1x128x128xf32> to vector<128x128xf32>
    %cst_31 = arith.constant dense<0.000000e+00> : vector<256x128xf32>
    %22 = tpu.matmul %19, %21, %cst_31 {dimension_numbers = #tpu.dot_dimension_numbers<[1], [0], [0], [1], [0, 0, 1, 1], [], []>} : vector<256x128xf32>, vector<128x128xf32>, vector<256x128xf32> -> vector<256x128xf32>
    %23 = arith.addf %17, %22 : vector<256x128xf32>
    %c0_32 = arith.constant 0 : index
    %c9 = arith.constant 9 : index
    %c0_33 = arith.constant 0 : index
    %24 = vector.load %arg7[%c0_32, %c9, %c0_33] : memref<18x25x128xf32, #tpu.memory_space<vmem>>, vector<16x16x128xf32>
    %25 = vector.shape_cast %24 : vector<16x16x128xf32> to vector<256x128xf32>
    %c0_34 = arith.constant 0 : index
    %c2 = arith.constant 2 : index
    %c0_35 = arith.constant 0 : index
    %c0_36 = arith.constant 0 : index
    %26 = vector.load %arg2[%c0_34, %c2, %c0_35, %c0_36] : memref<3x3x128x128xf32, #tpu.memory_space<vmem>>, vector<1x1x128x128xf32>
    %27 = vector.shape_cast %26 : vector<1x1x128x128xf32> to vector<128x128xf32>
    %cst_37 = arith.constant dense<0.000000e+00> : vector<256x128xf32>
    %28 = tpu.matmul %25, %27, %cst_37 {dimension_numbers = #tpu.dot_dimension_numbers<[1], [0], [0], [1], [0, 0, 1, 1], [], []>} : vector<256x128xf32>, vector<128x128xf32>, vector<256x128xf32> -> vector<256x128xf32>
    %29 = arith.addf %23, %28 : vector<256x128xf32>
    %c1_38 = arith.constant 1 : index
    %c7_39 = arith.constant 7 : index
    %c0_40 = arith.constant 0 : index
    %30 = vector.load %arg7[%c1_38, %c7_39, %c0_40] : memref<18x25x128xf32, #tpu.memory_space<vmem>>, vector<16x16x128xf32>
    %31 = vector.shape_cast %30 : vector<16x16x128xf32> to vector<256x128xf32>
    %c1_41 = arith.constant 1 : index
    %c0_42 = arith.constant 0 : index
    %c0_43 = arith.constant 0 : index
    %c0_44 = arith.constant 0 : index
    %32 = vector.load %arg2[%c1_41, %c0_42, %c0_43, %c0_44] : memref<3x3x128x128xf32, #tpu.memory_space<vmem>>, vector<1x1x128x128xf32>
    %33 = vector.shape_cast %32 : vector<1x1x128x128xf32> to vector<128x128xf32>
    %cst_45 = arith.constant dense<0.000000e+00> : vector<256x128xf32>
    %34 = tpu.matmul %31, %33, %cst_45 {dimension_numbers = #tpu.dot_dimension_numbers<[1], [0], [0], [1], [0, 0, 1, 1], [], []>} : vector<256x128xf32>, vector<128x128xf32>, vector<256x128xf32> -> vector<256x128xf32>
    %35 = arith.addf %29, %34 : vector<256x128xf32>
    %c1_46 = arith.constant 1 : index
    %c8_47 = arith.constant 8 : index
    %c0_48 = arith.constant 0 : index
    %36 = vector.load %arg7[%c1_46, %c8_47, %c0_48] : memref<18x25x128xf32, #tpu.memory_space<vmem>>, vector<16x16x128xf32>
    %37 = vector.shape_cast %36 : vector<16x16x128xf32> to vector<256x128xf32>
    %c1_49 = arith.constant 1 : index
    %c1_50 = arith.constant 1 : index
    %c0_51 = arith.constant 0 : index
    %c0_52 = arith.constant 0 : index
    %38 = vector.load %arg2[%c1_49, %c1_50, %c0_51, %c0_52] : memref<3x3x128x128xf32, #tpu.memory_space<vmem>>, vector<1x1x128x128xf32>
    %39 = vector.shape_cast %38 : vector<1x1x128x128xf32> to vector<128x128xf32>
    %cst_53 = arith.constant dense<0.000000e+00> : vector<256x128xf32>
    %40 = tpu.matmul %37, %39, %cst_53 {dimension_numbers = #tpu.dot_dimension_numbers<[1], [0], [0], [1], [0, 0, 1, 1], [], []>} : vector<256x128xf32>, vector<128x128xf32>, vector<256x128xf32> -> vector<256x128xf32>
    %41 = arith.addf %35, %40 : vector<256x128xf32>
    %c1_54 = arith.constant 1 : index
    %c9_55 = arith.constant 9 : index
    %c0_56 = arith.constant 0 : index
    %42 = vector.load %arg7[%c1_54, %c9_55, %c0_56] : memref<18x25x128xf32, #tpu.memory_space<vmem>>, vector<16x16x128xf32>
    %43 = vector.shape_cast %42 : vector<16x16x128xf32> to vector<256x128xf32>
    %c1_57 = arith.constant 1 : index
    %c2_58 = arith.constant 2 : index
    %c0_59 = arith.constant 0 : index
    %c0_60 = arith.constant 0 : index
    %44 = vector.load %arg2[%c1_57, %c2_58, %c0_59, %c0_60] : memref<3x3x128x128xf32, #tpu.memory_space<vmem>>, vector<1x1x128x128xf32>
    %45 = vector.shape_cast %44 : vector<1x1x128x128xf32> to vector<128x128xf32>
    %cst_61 = arith.constant dense<0.000000e+00> : vector<256x128xf32>
    %46 = tpu.matmul %43, %45, %cst_61 {dimension_numbers = #tpu.dot_dimension_numbers<[1], [0], [0], [1], [0, 0, 1, 1], [], []>} : vector<256x128xf32>, vector<128x128xf32>, vector<256x128xf32> -> vector<256x128xf32>
    %47 = arith.addf %41, %46 : vector<256x128xf32>
    %c2_62 = arith.constant 2 : index
    %c7_63 = arith.constant 7 : index
    %c0_64 = arith.constant 0 : index
    %48 = vector.load %arg7[%c2_62, %c7_63, %c0_64] : memref<18x25x128xf32, #tpu.memory_space<vmem>>, vector<16x16x128xf32>
    %49 = vector.shape_cast %48 : vector<16x16x128xf32> to vector<256x128xf32>
    %c2_65 = arith.constant 2 : index
    %c0_66 = arith.constant 0 : index
    %c0_67 = arith.constant 0 : index
    %c0_68 = arith.constant 0 : index
    %50 = vector.load %arg2[%c2_65, %c0_66, %c0_67, %c0_68] : memref<3x3x128x128xf32, #tpu.memory_space<vmem>>, vector<1x1x128x128xf32>
    %51 = vector.shape_cast %50 : vector<1x1x128x128xf32> to vector<128x128xf32>
    %cst_69 = arith.constant dense<0.000000e+00> : vector<256x128xf32>
    %52 = tpu.matmul %49, %51, %cst_69 {dimension_numbers = #tpu.dot_dimension_numbers<[1], [0], [0], [1], [0, 0, 1, 1], [], []>} : vector<256x128xf32>, vector<128x128xf32>, vector<256x128xf32> -> vector<256x128xf32>
    %53 = arith.addf %47, %52 : vector<256x128xf32>
    %c2_70 = arith.constant 2 : index
    %c8_71 = arith.constant 8 : index
    %c0_72 = arith.constant 0 : index
    %54 = vector.load %arg7[%c2_70, %c8_71, %c0_72] : memref<18x25x128xf32, #tpu.memory_space<vmem>>, vector<16x16x128xf32>
    %55 = vector.shape_cast %54 : vector<16x16x128xf32> to vector<256x128xf32>
    %c2_73 = arith.constant 2 : index
    %c1_74 = arith.constant 1 : index
    %c0_75 = arith.constant 0 : index
    %c0_76 = arith.constant 0 : index
    %56 = vector.load %arg2[%c2_73, %c1_74, %c0_75, %c0_76] : memref<3x3x128x128xf32, #tpu.memory_space<vmem>>, vector<1x1x128x128xf32>
    %57 = vector.shape_cast %56 : vector<1x1x128x128xf32> to vector<128x128xf32>
    %cst_77 = arith.constant dense<0.000000e+00> : vector<256x128xf32>
    %58 = tpu.matmul %55, %57, %cst_77 {dimension_numbers = #tpu.dot_dimension_numbers<[1], [0], [0], [1], [0, 0, 1, 1], [], []>} : vector<256x128xf32>, vector<128x128xf32>, vector<256x128xf32> -> vector<256x128xf32>
    %59 = arith.addf %53, %58 : vector<256x128xf32>
    %c2_78 = arith.constant 2 : index
    %c9_79 = arith.constant 9 : index
    %c0_80 = arith.constant 0 : index
    %60 = vector.load %arg7[%c2_78, %c9_79, %c0_80] : memref<18x25x128xf32, #tpu.memory_space<vmem>>, vector<16x16x128xf32>
    %61 = vector.shape_cast %60 : vector<16x16x128xf32> to vector<256x128xf32>
    %c2_81 = arith.constant 2 : index
    %c2_82 = arith.constant 2 : index
    %c0_83 = arith.constant 0 : index
    %c0_84 = arith.constant 0 : index
    %62 = vector.load %arg2[%c2_81, %c2_82, %c0_83, %c0_84] : memref<3x3x128x128xf32, #tpu.memory_space<vmem>>, vector<1x1x128x128xf32>
    %63 = vector.shape_cast %62 : vector<1x1x128x128xf32> to vector<128x128xf32>
    %cst_85 = arith.constant dense<0.000000e+00> : vector<256x128xf32>
    %64 = tpu.matmul %61, %63, %cst_85 {dimension_numbers = #tpu.dot_dimension_numbers<[1], [0], [0], [1], [0, 0, 1, 1], [], []>} : vector<256x128xf32>, vector<128x128xf32>, vector<256x128xf32> -> vector<256x128xf32>
    %65 = arith.addf %59, %64 : vector<256x128xf32>
    %cst_86 = arith.constant 0.000000e+00 : f32
    %66 = vector.broadcast %cst_86 : f32 to vector<256x128xf32>
    %67 = arith.maximumf %65, %66 : vector<256x128xf32>
    %68 = vector.shape_cast %67 : vector<256x128xf32> to vector<16x16x128xf32>
    %c1_87 = arith.constant 1 : index
    %c8_88 = arith.constant 8 : index
    %c0_89 = arith.constant 0 : index
    %69 = vector.load %arg7[%c1_87, %c8_88, %c0_89] : memref<18x25x128xf32, #tpu.memory_space<vmem>>, vector<16x16x128xf32>
    tpu.vector_store %arg7[%c1_87, %c8_88, %c0_89], %68 {strides = array<i32>} : memref<18x25x128xf32, #tpu.memory_space<vmem>>, vector<16x16x128xf32>,
    %c0_90 = arith.constant 0 : index
    %c0_91 = arith.constant 0 : index
    %70 = vector.load %arg5[%c0_90, %c0_91] : memref<1x128xf32, #tpu.memory_space<vmem>>, vector<1x128xf32>
    %71 = vector.shape_cast %70 : vector<1x128xf32> to vector<1x128xf32>
    %72 = vector.broadcast %71 : vector<1x128xf32> to vector<256x128xf32>
    %c0_92 = arith.constant 0 : index
    %c7_93 = arith.constant 7 : index
    %c0_94 = arith.constant 0 : index
    %73 = vector.load %arg7[%c0_92, %c7_93, %c0_94] : memref<18x25x128xf32, #tpu.memory_space<vmem>>, vector<16x16x128xf32>
    %74 = vector.shape_cast %73 : vector<16x16x128xf32> to vector<256x128xf32>
    %c0_95 = arith.constant 0 : index
    %c0_96 = arith.constant 0 : index
    %c0_97 = arith.constant 0 : index
    %c0_98 = arith.constant 0 : index
    %75 = vector.load %arg4[%c0_95, %c0_96, %c0_97, %c0_98] : memref<3x3x128x128xf32, #tpu.memory_space<vmem>>, vector<1x1x128x128xf32>
    %76 = vector.shape_cast %75 : vector<1x1x128x128xf32> to vector<128x128xf32>
    %cst_99 = arith.constant dense<0.000000e+00> : vector<256x128xf32>
    %77 = tpu.matmul %74, %76, %cst_99 {dimension_numbers = #tpu.dot_dimension_numbers<[1], [0], [0], [1], [0, 0, 1, 1], [], []>} : vector<256x128xf32>, vector<128x128xf32>, vector<256x128xf32> -> vector<256x128xf32>
    %78 = arith.addf %72, %77 : vector<256x128xf32>
    %c0_100 = arith.constant 0 : index
    %c8_101 = arith.constant 8 : index
    %c0_102 = arith.constant 0 : index
    %79 = vector.load %arg7[%c0_100, %c8_101, %c0_102] : memref<18x25x128xf32, #tpu.memory_space<vmem>>, vector<16x16x128xf32>
    %80 = vector.shape_cast %79 : vector<16x16x128xf32> to vector<256x128xf32>
    %c0_103 = arith.constant 0 : index
    %c1_104 = arith.constant 1 : index
    %c0_105 = arith.constant 0 : index
    %c0_106 = arith.constant 0 : index
    %81 = vector.load %arg4[%c0_103, %c1_104, %c0_105, %c0_106] : memref<3x3x128x128xf32, #tpu.memory_space<vmem>>, vector<1x1x128x128xf32>
    %82 = vector.shape_cast %81 : vector<1x1x128x128xf32> to vector<128x128xf32>
    %cst_107 = arith.constant dense<0.000000e+00> : vector<256x128xf32>
    %83 = tpu.matmul %80, %82, %cst_107 {dimension_numbers = #tpu.dot_dimension_numbers<[1], [0], [0], [1], [0, 0, 1, 1], [], []>} : vector<256x128xf32>, vector<128x128xf32>, vector<256x128xf32> -> vector<256x128xf32>
    %84 = arith.addf %78, %83 : vector<256x128xf32>
    %c0_108 = arith.constant 0 : index
    %c9_109 = arith.constant 9 : index
    %c0_110 = arith.constant 0 : index
    %85 = vector.load %arg7[%c0_108, %c9_109, %c0_110] : memref<18x25x128xf32, #tpu.memory_space<vmem>>, vector<16x16x128xf32>
    %86 = vector.shape_cast %85 : vector<16x16x128xf32> to vector<256x128xf32>
    %c0_111 = arith.constant 0 : index
    %c2_112 = arith.constant 2 : index
    %c0_113 = arith.constant 0 : index
    %c0_114 = arith.constant 0 : index
    %87 = vector.load %arg4[%c0_111, %c2_112, %c0_113, %c0_114] : memref<3x3x128x128xf32, #tpu.memory_space<vmem>>, vector<1x1x128x128xf32>
    %88 = vector.shape_cast %87 : vector<1x1x128x128xf32> to vector<128x128xf32>
    %cst_115 = arith.constant dense<0.000000e+00> : vector<256x128xf32>
    %89 = tpu.matmul %86, %88, %cst_115 {dimension_numbers = #tpu.dot_dimension_numbers<[1], [0], [0], [1], [0, 0, 1, 1], [], []>} : vector<256x128xf32>, vector<128x128xf32>, vector<256x128xf32> -> vector<256x128xf32>
    %90 = arith.addf %84, %89 : vector<256x128xf32>
    %c1_116 = arith.constant 1 : index
    %c7_117 = arith.constant 7 : index
    %c0_118 = arith.constant 0 : index
    %91 = vector.load %arg7[%c1_116, %c7_117, %c0_118] : memref<18x25x128xf32, #tpu.memory_space<vmem>>, vector<16x16x128xf32>
    %92 = vector.shape_cast %91 : vector<16x16x128xf32> to vector<256x128xf32>
    %c1_119 = arith.constant 1 : index
    %c0_120 = arith.constant 0 : index
    %c0_121 = arith.constant 0 : index
    %c0_122 = arith.constant 0 : index
    %93 = vector.load %arg4[%c1_119, %c0_120, %c0_121, %c0_122] : memref<3x3x128x128xf32, #tpu.memory_space<vmem>>, vector<1x1x128x128xf32>
    %94 = vector.shape_cast %93 : vector<1x1x128x128xf32> to vector<128x128xf32>
    %cst_123 = arith.constant dense<0.000000e+00> : vector<256x128xf32>
    %95 = tpu.matmul %92, %94, %cst_123 {dimension_numbers = #tpu.dot_dimension_numbers<[1], [0], [0], [1], [0, 0, 1, 1], [], []>} : vector<256x128xf32>, vector<128x128xf32>, vector<256x128xf32> -> vector<256x128xf32>
    %96 = arith.addf %90, %95 : vector<256x128xf32>
    %c1_124 = arith.constant 1 : index
    %c8_125 = arith.constant 8 : index
    %c0_126 = arith.constant 0 : index
    %97 = vector.load %arg7[%c1_124, %c8_125, %c0_126] : memref<18x25x128xf32, #tpu.memory_space<vmem>>, vector<16x16x128xf32>
    %98 = vector.shape_cast %97 : vector<16x16x128xf32> to vector<256x128xf32>
    %c1_127 = arith.constant 1 : index
    %c1_128 = arith.constant 1 : index
    %c0_129 = arith.constant 0 : index
    %c0_130 = arith.constant 0 : index
    %99 = vector.load %arg4[%c1_127, %c1_128, %c0_129, %c0_130] : memref<3x3x128x128xf32, #tpu.memory_space<vmem>>, vector<1x1x128x128xf32>
    %100 = vector.shape_cast %99 : vector<1x1x128x128xf32> to vector<128x128xf32>
    %cst_131 = arith.constant dense<0.000000e+00> : vector<256x128xf32>
    %101 = tpu.matmul %98, %100, %cst_131 {dimension_numbers = #tpu.dot_dimension_numbers<[1], [0], [0], [1], [0, 0, 1, 1], [], []>} : vector<256x128xf32>, vector<128x128xf32>, vector<256x128xf32> -> vector<256x128xf32>
    %102 = arith.addf %96, %101 : vector<256x128xf32>
    %c1_132 = arith.constant 1 : index
    %c9_133 = arith.constant 9 : index
    %c0_134 = arith.constant 0 : index
    %103 = vector.load %arg7[%c1_132, %c9_133, %c0_134] : memref<18x25x128xf32, #tpu.memory_space<vmem>>, vector<16x16x128xf32>
    %104 = vector.shape_cast %103 : vector<16x16x128xf32> to vector<256x128xf32>
    %c1_135 = arith.constant 1 : index
    %c2_136 = arith.constant 2 : index
    %c0_137 = arith.constant 0 : index
    %c0_138 = arith.constant 0 : index
    %105 = vector.load %arg4[%c1_135, %c2_136, %c0_137, %c0_138] : memref<3x3x128x128xf32, #tpu.memory_space<vmem>>, vector<1x1x128x128xf32>
    %106 = vector.shape_cast %105 : vector<1x1x128x128xf32> to vector<128x128xf32>
    %cst_139 = arith.constant dense<0.000000e+00> : vector<256x128xf32>
    %107 = tpu.matmul %104, %106, %cst_139 {dimension_numbers = #tpu.dot_dimension_numbers<[1], [0], [0], [1], [0, 0, 1, 1], [], []>} : vector<256x128xf32>, vector<128x128xf32>, vector<256x128xf32> -> vector<256x128xf32>
    %108 = arith.addf %102, %107 : vector<256x128xf32>
    %c2_140 = arith.constant 2 : index
    %c7_141 = arith.constant 7 : index
    %c0_142 = arith.constant 0 : index
    %109 = vector.load %arg7[%c2_140, %c7_141, %c0_142] : memref<18x25x128xf32, #tpu.memory_space<vmem>>, vector<16x16x128xf32>
    %110 = vector.shape_cast %109 : vector<16x16x128xf32> to vector<256x128xf32>
    %c2_143 = arith.constant 2 : index
    %c0_144 = arith.constant 0 : index
    %c0_145 = arith.constant 0 : index
    %c0_146 = arith.constant 0 : index
    %111 = vector.load %arg4[%c2_143, %c0_144, %c0_145, %c0_146] : memref<3x3x128x128xf32, #tpu.memory_space<vmem>>, vector<1x1x128x128xf32>
    %112 = vector.shape_cast %111 : vector<1x1x128x128xf32> to vector<128x128xf32>
    %cst_147 = arith.constant dense<0.000000e+00> : vector<256x128xf32>
    %113 = tpu.matmul %110, %112, %cst_147 {dimension_numbers = #tpu.dot_dimension_numbers<[1], [0], [0], [1], [0, 0, 1, 1], [], []>} : vector<256x128xf32>, vector<128x128xf32>, vector<256x128xf32> -> vector<256x128xf32>
    %114 = arith.addf %108, %113 : vector<256x128xf32>
    %c2_148 = arith.constant 2 : index
    %c8_149 = arith.constant 8 : index
    %c0_150 = arith.constant 0 : index
    %115 = vector.load %arg7[%c2_148, %c8_149, %c0_150] : memref<18x25x128xf32, #tpu.memory_space<vmem>>, vector<16x16x128xf32>
    %116 = vector.shape_cast %115 : vector<16x16x128xf32> to vector<256x128xf32>
    %c2_151 = arith.constant 2 : index
    %c1_152 = arith.constant 1 : index
    %c0_153 = arith.constant 0 : index
    %c0_154 = arith.constant 0 : index
    %117 = vector.load %arg4[%c2_151, %c1_152, %c0_153, %c0_154] : memref<3x3x128x128xf32, #tpu.memory_space<vmem>>, vector<1x1x128x128xf32>
    %118 = vector.shape_cast %117 : vector<1x1x128x128xf32> to vector<128x128xf32>
    %cst_155 = arith.constant dense<0.000000e+00> : vector<256x128xf32>
    %119 = tpu.matmul %116, %118, %cst_155 {dimension_numbers = #tpu.dot_dimension_numbers<[1], [0], [0], [1], [0, 0, 1, 1], [], []>} : vector<256x128xf32>, vector<128x128xf32>, vector<256x128xf32> -> vector<256x128xf32>
    %120 = arith.addf %114, %119 : vector<256x128xf32>
    %c2_156 = arith.constant 2 : index
    %c9_157 = arith.constant 9 : index
    %c0_158 = arith.constant 0 : index
    %121 = vector.load %arg7[%c2_156, %c9_157, %c0_158] : memref<18x25x128xf32, #tpu.memory_space<vmem>>, vector<16x16x128xf32>
    %122 = vector.shape_cast %121 : vector<16x16x128xf32> to vector<256x128xf32>
    %c2_159 = arith.constant 2 : index
    %c2_160 = arith.constant 2 : index
    %c0_161 = arith.constant 0 : index
    %c0_162 = arith.constant 0 : index
    %123 = vector.load %arg4[%c2_159, %c2_160, %c0_161, %c0_162] : memref<3x3x128x128xf32, #tpu.memory_space<vmem>>, vector<1x1x128x128xf32>
    %124 = vector.shape_cast %123 : vector<1x1x128x128xf32> to vector<128x128xf32>
    %cst_163 = arith.constant dense<0.000000e+00> : vector<256x128xf32>
    %125 = tpu.matmul %122, %124, %cst_163 {dimension_numbers = #tpu.dot_dimension_numbers<[1], [0], [0], [1], [0, 0, 1, 1], [], []>} : vector<256x128xf32>, vector<128x128xf32>, vector<256x128xf32> -> vector<256x128xf32>
    %126 = arith.addf %120, %125 : vector<256x128xf32>
    %c0_164 = arith.constant 0 : index
    %c0_165 = arith.constant 0 : index
    %c0_166 = arith.constant 0 : index
    %c0_167 = arith.constant 0 : index
    %127 = vector.load %arg1[%c0_164, %c0_165, %c0_166, %c0_167] : memref<1x16x16x128xf32, #tpu.memory_space<vmem>>, vector<1x16x16x128xf32>
    %128 = vector.shape_cast %127 : vector<1x16x16x128xf32> to vector<16x16x128xf32>
    %129 = vector.shape_cast %128 : vector<16x16x128xf32> to vector<256x128xf32>
    %130 = arith.addf %126, %129 : vector<256x128xf32>
    %131 = vector.shape_cast %130 : vector<256x128xf32> to vector<1x16x16x128xf32>
    %c0_168 = arith.constant 0 : index
    %c0_169 = arith.constant 0 : index
    %c0_170 = arith.constant 0 : index
    %c0_171 = arith.constant 0 : index
    %132 = vector.load %arg6[%c0_168, %c0_169, %c0_170, %c0_171] : memref<1x16x16x128xf32, #tpu.memory_space<vmem>>, vector<1x16x16x128xf32>
    tpu.vector_store %arg6[%c0_168, %c0_169, %c0_170, %c0_171], %131 {strides = array<i32>} : memref<1x16x16x128xf32, #tpu.memory_space<vmem>>, vector<1x16x16x128xf32>,
    return
  }
  func.func @transform_0(%arg0: i32) -> (i32, i32, i32, i32) {
    %c0_i32 = arith.constant 0 : i32
    %c0_i32_0 = arith.constant 0 : i32
    %c0_i32_1 = arith.constant 0 : i32
    %c0_i32_2 = arith.constant 0 : i32
    return %arg0, %c0_i32, %c0_i32_0, %c0_i32_1 : i32, i32, i32, i32
  }
  func.func @transform_1(%arg0: i32) -> (i32, i32, i32, i32) {
    %c0_i32 = arith.constant 0 : i32
    %c0_i32_0 = arith.constant 0 : i32
    %c0_i32_1 = arith.constant 0 : i32
    %c0_i32_2 = arith.constant 0 : i32
    %c0_i32_3 = arith.constant 0 : i32
    return %c0_i32, %c0_i32_0, %c0_i32_1, %c0_i32_2 : i32, i32, i32, i32
  }
  func.func @transform_2(%arg0: i32) -> (i32, i32) {
    %c0_i32 = arith.constant 0 : i32
    %c0_i32_0 = arith.constant 0 : i32
    %c0_i32_1 = arith.constant 0 : i32
    return %c0_i32, %c0_i32_0 : i32, i32
  }
  func.func @transform_3(%arg0: i32) -> (i32, i32, i32, i32) {
    %c0_i32 = arith.constant 0 : i32
    %c0_i32_0 = arith.constant 0 : i32
    %c0_i32_1 = arith.constant 0 : i32
    %c0_i32_2 = arith.constant 0 : i32
    %c0_i32_3 = arith.constant 0 : i32
    return %c0_i32, %c0_i32_0, %c0_i32_1, %c0_i32_2 : i32, i32, i32, i32
  }
  func.func @transform_4(%arg0: i32) -> (i32, i32) {
    %c0_i32 = arith.constant 0 : i32
    %c0_i32_0 = arith.constant 0 : i32
    %c0_i32_1 = arith.constant 0 : i32
    return %c0_i32, %c0_i32_0 : i32, i32
  }
  func.func @transform_5(%arg0: i32) -> (i32, i32, i32, i32) {
    %c0_i32 = arith.constant 0 : i32
    %c0_i32_0 = arith.constant 0 : i32
    %c0_i32_1 = arith.constant 0 : i32
    %c0_i32_2 = arith.constant 0 : i32
    return %arg0, %c0_i32, %c0_i32_0, %c0_i32_1 : i32, i32, i32, i32
  }
}

</mosaic_0001>

<bundles_post_ra>
// kernel: tpu_custom_call.1
= control target key start
LH: loop header
LB: loop body
LE: loop exit
PB: predicated region body
PF: predicated region fallthrough
CT: control target
= control target key end

     0   :  { %10 = vsyncpa [#allocation4], 0  ;;  %s11290_s0 = inlined_call_operand.hbm [shape: f32[2,16,16,128], index: 0, kind: input, shape index: {}]   ;;  %s11291_s1 = inlined_call_operand.hbm [shape: f32[3,3,128,128], index: 1, kind: input, shape index: {}]   ;;  %s11292_s2 = inlined_call_operand.vmem [shape: f32[1,128], index: 2, kind: input, shape index: {}]   ;;  %s11293_s3 = inlined_call_operand.hbm [shape: f32[3,3,128,128], index: 3, kind: input, shape index: {}]   ;;  %s11294_s4 = inlined_call_operand.vmem [shape: f32[1,128], index: 4, kind: input, shape index: {}]   ;;  %s11295_s5 = inlined_call_operand.hbm [shape: f32[2,16,16,128], index: 5, kind: output, shape index: {}]  }
   0x1   :  { %12 = vsyncpa [#allocation4 + $0x1], 0 }
   0x2   :  { %13 = vsyncpa [#allocation7], 0 }
   0x3   :  { %14 = vsyncpa [#allocation5], 0 }
   0x4   :  { %16 = vsyncpa [#allocation5 + $0x1], 0  ;;  %s9920_s18 = smov 0   ;;  %s9922_s19 = smov 0  }
   0x5   :  { %s9924_s20 = smov 0   ;;  %s9926_s21 = smov 0  }
   0x6 LB: > { %s9941_s22 = sadd.s32 4294967295, %s9879_s21   ;;  %s6169_s23 = sadd.s32 4294967294, %s9879_s21   ;;  %s9879_s21 = sphi %s9926_s21, %s11536_s21   ;;  %s9875_s20 = sphi %s9924_s20, %s11535_s20   ;;  %s9871_s19 = sphi %s9922_s19, %s11534_s19   ;;  %s9867_s18 = sphi %s9920_s18, %s11533_s18  }
   0x7   : > { %p42_p0 = scmp.ne.s32.totalorder %s9871_s19, %s9867_s18  ;;  %p11296_p1 = scmp.eq.s32.totalorder %s9941_s22, 0 }
   0x8   : > { %p156_p3 = scmp.eq.s32.totalorder %s6169_s23, 1  ;;  %p6170_p5 = scmp.ge.s32.totalorder %s9879_s21, 1 }
   0x9   : > { %p9950_p4 = por %p11296_p1, %p42_p0  ;;  %p163_p7 = scmp.lt.s32.totalorder %s9879_s21, 3 }
   0xa   : > { %p9955_p6 = por %p156_p3, %p42_p0  ;;  %s9881_s27 = smov [#allocation6]  }
   0xb   : > { %s11377_s24 = scalar_select %p9950_p4, 1, 0 }
   0xc   : > { %s11378_s25 = scalar_select %p9955_p6, 1, 0 }
   0xd   : > { %p9960_p8 = pnand %p6170_p5, %p163_p7  ;;  %s175_s28 = sshll.u32 %s9881_s27, 4  ;;  %s9964_s28 = int_to_ptr.vmem [resolvable:$true] %s175_s28 }
   0xe   : > { %s9882_s30 = smov [#allocation8]   ;;  %s9723_s9 = scalar_lea.hbm %s11291_s1, 18432 }
   0xf   : > { %p9659_p9 = pneg %p9960_p8  ;;  %s191_s6 = sshll.u32 %s9882_s30, 4  ;;  %s9975_s6 = int_to_ptr.vmem [resolvable:$true] %s191_s6 }
  0x10   : > { %p9724_p12 = scmp.ne.s32.totalorder %s11291_s1, %s9723_s9  ;;  %p9730_p5 = scmp.lt.u32.totalorder %s9723_s9, %s11291_s1 }
  0x11   : > { %p9971_p11 = pnand %p9659_p9, %p11296_p1 }
  0x13   : > { %p9725_p13 = pneg %p9971_p11 }
  0x15   : > { %p9726_p0 = pnand %p9725_p13, %p9724_p12 }
  0x17   : > { %p9727_p3 = pneg %p9726_p0 }
  0x19   : > { %p9732_p7 = pnand %p9730_p5, %p9727_p3 }
  0x1b   : > { %9735 = shalt.err (!%p9732_p7)
}
  0x1c   : > { %s9736_s14 = scalar_lea.vmem %s9964_s28, 18432  ;;  %p9744_p2 = scmp.lt.s32.totalorder %s9964_s28, %s9964_s28 }
  0x1d   : > { %p9737_p9 = scmp.ne.s32.totalorder %s9964_s28, %s9736_s14  ;;  %p9745_p12 = scmp.lt.s32.totalorder %s9736_s14, %s9736_s14 }
  0x1f   : > { %p9739_p10 = pnand %p9737_p9, %p9725_p13  ;;  %p9746_p0 = por %p9745_p12, %p9744_p2 }
  0x21   : > { %p9740_p1 = pneg %p9739_p10 }
  0x23   : > { %p9747_p6 = pnand %p9746_p0, %p9740_p1 }
  0x25   : > { %9750 = shalt.err (!%p9747_p6)
}
  0x26   : > { %s9883_s15 = smov 128   ;;  %s9884_s16 = smov 8  }
  0x27   : > { %9662 = dma.hbm_to_vmem [thread:$0]  (!%p9971_p11), %s11291_s1, 18432, %s9964_s28, [#allocation7], %s9883_s15, %s9883_s15, %s9884_s16  }
  0x28   : > { %s9751_s7 = scalar_lea.hbm %s11293_s3, 18432 }
  0x29   : > { %p9752_p1 = scmp.ne.s32.totalorder %s11293_s3, %s9751_s7  ;;  %p9758_p10 = scmp.lt.u32.totalorder %s9751_s7, %s11293_s3 }
  0x2b   : > { %p9754_p2 = pnand %p9752_p1, %p9725_p13 }
  0x2d   : > { %p9755_p6 = pneg %p9754_p2 }
  0x2f   : > { %p9760_p3 = pnand %p9758_p10, %p9755_p6 }
  0x31   : > { %9763 = shalt.err (!%p9760_p3)
}
  0x32   : > { %s9764_s28 = scalar_lea.vmem %s9975_s6, 18432  ;;  %p9772_p12 = scmp.lt.s32.totalorder %s9975_s6, %s9975_s6 }
  0x33   : > { %p9765_p5 = scmp.ne.s32.totalorder %s9975_s6, %s9764_s28  ;;  %p9773_p0 = scmp.lt.s32.totalorder %s9764_s28, %s9764_s28 }
  0x35   : > { %p9767_p7 = pnand %p9765_p5, %p9725_p13  ;;  %p9774_p1 = por %p9773_p0, %p9772_p12 }
  0x37   : > { %p9768_p9 = pneg %p9767_p7 }
  0x39   : > { %p9775_p2 = pnand %p9774_p1, %p9768_p9 }
  0x3b   : > { %9778 = shalt.err (!%p9775_p2)
}
  0x3c   : > { %9665 = dma.hbm_to_vmem [thread:$0]  (!%p9971_p11), %s11293_s3, 18432, %s9975_s6, [#allocation7], %s9883_s15, %s9883_s15, %s9884_s16  }
  0x3d   : > { %s10036_s29 = sadd.s32 1, %s9879_s21   ;;  %s29_s14 = sadd.s32 1, %s9875_s20 }
  0x3e   : > { %s26_s17 = ssub.s32 %s9879_s21, %s10036_s29  ;;  %p36_p13 = scmp.ne.s32.totalorder %s9875_s20, %s9871_s19 }
  0x3f   : > { %p27_p6 = scmp.eq.s32.totalorder %s26_s17, 0  ;;  %p37_p10 = scmp.eq.s32.totalorder %s9879_s21, 0 }
  0x40   : > { %p11381_p3 = scmp.eq.s32.totalorder %s9941_s22, 1  ;;  %p9676_p7 = scmp.lt.s32.totalorder %s9879_s21, 2 }
  0x41   : > { %s10052_s27 = scalar_select %p27_p6, %s9875_s20, %s29_s14  }
  0x42   : > { %p10046_p5 = por %p11381_p3, %p36_p13  ;;  %p38_p9 = por %p37_p10, %p36_p13 }
  0x43   : > { %s208_s30 = sand.u32 1, %s9875_s20   ;;  %s6189_s6 = sshll.u32 %s9879_s21, 12 }
  0x44   : > { %s11382_s23 = scalar_select %p10046_p5, 1, 0 }
  0x45   : > { %s6174_s7 = sshll.u32 %s208_s30, 8  ;;  %s10059_s10 = scalar_lea.hbm %s11290_s0, %s6189_s6 }
  0x46   : > { %s212_s11 = scalar_lea.vmem [#allocation3], %s6174_s7  ;;  %p10063_p11 = pnand %p9676_p7, %p38_p9 }
  0x47   : > { %s219_s28 = sshll.u32 %s212_s11, 4  ;;  %s10067_s13 = scalar_lea.sflag [#allocation4], %s208_s30  ;;  %s10061_s28 = int_to_ptr.vmem [resolvable:$true] %s219_s28 }
  0x48   : > { %s9779_s14 = scalar_lea.hbm %s10059_s10, 4096  ;;  %p9781_p0 = pneg %p10063_p11 }
  0x49   : > { %p9780_p12 = scmp.ne.s32.totalorder %s10059_s10, %s9779_s14  ;;  %s9784_s6 = scalar_lea.hbm %s11290_s0, 8192 }
  0x4a   : > { %p9785_p13 = scmp.lt.u32.totalorder %s10059_s10, %s11290_s0  ;;  %p9786_p6 = scmp.lt.u32.totalorder %s9784_s6, %s9779_s14 }
  0x4b   : > { %p9782_p1 = pnand %p9781_p0, %p9780_p12  ;;  %p9788_p3 = scmp.lt.u32.totalorder %s9779_s14, %s10059_s10 }
  0x4c   : > { %p9787_p10 = por %p9786_p6, %p9785_p13 }
  0x4d   : > { %p9783_p2 = pneg %p9782_p1 }
  0x4e   : > { %p9789_p7 = por %p9788_p3, %p9787_p10 }
  0x50   : > { %p9790_p9 = pnand %p9789_p7, %p9783_p2 }
  0x52   : > { %9793 = shalt.err (!%p9790_p9)
}
  0x53   : > { %s9794_s30 = scalar_lea.vmem %s10061_s28, 4096  ;;  %s9885_s11 = smov [#allocation3]  }
  0x54   : > { %p9795_p12 = scmp.ne.s32.totalorder %s10061_s28, %s9794_s30  ;;  %s9799_s17 = sshll.u32 %s9885_s11, 4  ;;  %s9800_s17 = int_to_ptr.vmem [resolvable:$false] %s9799_s17 }
  0x55   : > { %s9801_s7 = scalar_lea.vmem %s9800_s17, 8192  ;;  %p9802_p4 = scmp.lt.s32.totalorder %s10061_s28, %s9800_s17 }
  0x56   : > { %p9797_p1 = pnand %p9795_p12, %p9781_p0  ;;  %p9803_p13 = scmp.lt.s32.totalorder %s9801_s7, %s9794_s30 }
  0x58   : > { %p9798_p5 = pneg %p9797_p1  ;;  %p9804_p6 = por %p9803_p13, %p9802_p4 }
  0x5a   : > { %p9805_p10 = pnand %p9804_p6, %p9798_p5 }
  0x5c   : > { %9808 = shalt.err (!%p9805_p10)
}
  0x5d   : > { %9669 = dma.hbm_to_vmem [thread:$0]  (!%p10063_p11), %s10059_s10, 4096, %s10061_s28, %s10067_s13, %s9883_s15, %s9883_s15, %s9884_s16  }
  0x5e   : > { %231 = sbr.rel (%p9960_p8) target bundleno = 1682 (0x692), region = 40 }
  0x65   : > { %s10101_s14 = sand.u32 1, %s9871_s19   ;;  %p11384_p4 = scmp.ne.s32.totalorder %s11377_s24, 0 }
  0x66   : > { %s6178_s6 = sshll.u32 %s10101_s14, 8  ;;  %s234_s8 = scalar_lea.sflag [#allocation4], %s10101_s14 }
  0x67   : > { %s10107_s12 = scalar_lea.vmem [#allocation3], %s6178_s6 }
  0x68   : > { %9854 = dma.done.wait (%p11384_p4), %s234_s8, 4096  }
  0x69   : > { %9856 = vsyncadd (%p11384_p4), %s234_s8, 4294963200  ;;  %p11385_p5 = scmp.eq.s32.totalorder %s9941_s22, 0 }
  0x6b   : > { %9858 = dma.done.wait (%p11385_p5), [#allocation7], 36864   ;;  %p11386_p8 = pmov %p11385_p5 }
  0x6c   : > { %v9886_v0 = vmov 0.0   ;;  %v421_v1 = vld [vmem:[#allocation6] sm:$0xff]  ;;  %v422_v2 = vld [vmem:[#allocation6 + $0x8] sm:$0xff]  ;;  %v423_v3 = vld [vmem:[#allocation6 + $0x10] sm:$0xff]  ;;  %s11146_s10 = scalar_lea.vmem [#allocation9], %s6178_s6  ;;  %s6190_s28 = sshll.u32 %s9941_s22, 12 }
  0x6d   : > { %9860 = vsyncadd (%p11386_p8), [#allocation7], 4294930432  ;;  %272 = vst [vmem:[#allocation2] sm:$0xff] %v9886_v0  ;;  %v8495_v4 = vpack.c.bf16 %v422_v2, %v421_v1  ;;  %v424_v5 = vld [vmem:[#allocation6 + $0x18] sm:$0xff]  ;;  %v425_v7 = vld [vmem:[#allocation6 + $0x20] sm:$0xff]  ;;  %s6077_s13 = sshll.u32 %s11146_s10, 4  ;;  %s11242_s11 = scalar_lea.hbm %s11295_s5, %s6190_s28  ;;  %s11244_s13 = int_to_ptr.vmem [resolvable:$true] %s6077_s13 }
  0x6e   : > { %273 = vst [vmem:[#allocation2 + $0x8] sm:$0xff] %v9886_v0  ;;  %274 = vst [vmem:[#allocation2 + $0x10] sm:$0xff] %v9886_v0  ;;  %v8499_v6 = vpack.c.bf16 %v424_v5, %v423_v3  ;;  %v426_v8 = vld [vmem:[#allocation6 + $0x28] sm:$0xff]  ;;  %v427_v11 = vld [vmem:[#allocation6 + $0x30] sm:$0xff]  ;;  %s6064_s22 = scalar_lea.sflag [#allocation5], %s10101_s14  ;;  %s9809_s17 = scalar_lea.vmem %s11244_s13, 4096 }
  0x6f   : > { %275 = vst [vmem:[#allocation2 + $0x18] sm:$0x1] %v9886_v0  ;;  %277 = vst [vmem:[#allocation2 + $0x220] sm:$0xff] %v9886_v0  ;;  %8496 = vmatprep.subr.bf16.mxu0 %v8495_v4  ;;  %v8503_v9 = vpack.c.bf16 %v426_v8, %v425_v7  ;;  %v428_v12 = vld [vmem:[#allocation6 + $0x38] sm:$0xff]  ;;  %v10162_v13 = vld [vmem:[%s10107_s12] sm:$0xff]  ;;  %p9810_p11 = scmp.ne.s32.totalorder %s11244_s13, %s9809_s17  ;;  %p11530_p0 = scmp.ne.s32.totalorder %s11382_s23, 0 }
  0x70   : > { %278 = vst [vmem:[#allocation2 + $0x228] sm:$0xff] %v9886_v0  ;;  %279 = vst [vmem:[#allocation2 + $0x230] sm:$0xff] %v9886_v0  ;;  %8498 = vmatpush3.bf16.msra.mxu0 %v8495_v4  ;;  %v10166_v14 = vld [vmem:[%s10107_s12 + $0x8] sm:$0xff]  ;;  %v10169_v15 = vld [vmem:[%s10107_s12 + $0x10] sm:$0xff]  ;;  %v8507_v18 = vpack.c.bf16 %v428_v12, %v427_v11  ;;  %s9887_s7 = smov [#allocation9]  }
  0x71   : > { %280 = vst [vmem:[#allocation2 + $0x238] sm:$0x1] %v9886_v0  ;;  %282 = vst [vmem:[#allocation2 + $0x27] sm:$0x1] %v9886_v0  ;;  %8500 = vmatprep.subr.bf16.mxu0 %v8499_v6  ;;  %v10172_v16 = vld [vmem:[%s10107_s12 + $0x18] sm:$0xff]  ;;  %v10178_v17 = vld [vmem:[%s10107_s12 + $0x20] sm:$0xff]  ;;  %p9811_p2 = pnand %p9810_p11, %p11530_p0 }
  0x72   : > { %283 = vst [vmem:[#allocation2 + $0x47] sm:$0x1] %v9886_v0  ;;  %284 = vst [vmem:[#allocation2 + $0x67] sm:$0x1] %v9886_v0  ;;  %v10182_v19 = vld [vmem:[%s10107_s12 + $0x28] sm:$0xff]  ;;  %v10185_v20 = vld [vmem:[%s10107_s12 + $0x30] sm:$0xff] }
  0x73   : > { %285 = vst [vmem:[#allocation2 + $0x87] sm:$0x1] %v9886_v0  ;;  %286 = vst [vmem:[#allocation2 + $0xa7] sm:$0x1] %v9886_v0  ;;  %v10188_v21 = vld [vmem:[%s10107_s12 + $0x38] sm:$0xff]  ;;  %v429_v22 = vld [vmem:[#allocation6 + $0x40] sm:$0xff]  ;;  %p9812_p3 = pneg %p9811_p2 }
  0x74   : > { %287 = vst [vmem:[#allocation2 + $0xc7] sm:$0x1] %v9886_v0  ;;  %288 = vst [vmem:[#allocation2 + $0xe7] sm:$0x1] %v9886_v0  ;;  %8502 = vmatpush3.bf16.msra.mxu0 %v8499_v6  ;;  %v430_v23 = vld [vmem:[#allocation6 + $0x48] sm:$0xff]  ;;  %v10194_v24 = vld [vmem:[%s10107_s12 + $0x40] sm:$0xff] }
  0x75   : > { %289 = vst [vmem:[#allocation2 + $0x107] sm:$0x1] %v9886_v0  ;;  %290 = vst [vmem:[#allocation2 + $0x127] sm:$0x1] %v9886_v0  ;;  %8504 = vmatprep.subr.bf16.mxu0 %v8503_v9  ;;  %v10198_v25 = vld [vmem:[%s10107_s12 + $0x48] sm:$0xff]  ;;  %v10201_v26 = vld [vmem:[%s10107_s12 + $0x50] sm:$0xff]  ;;  %v8511_v29 = vpack.c.bf16 %v430_v23, %v429_v22 }
  0x76   : > { %291 = vst [vmem:[#allocation2 + $0x147] sm:$0x1] %v9886_v0  ;;  %292 = vst [vmem:[#allocation2 + $0x167] sm:$0x1] %v9886_v0  ;;  %v10204_v27 = vld [vmem:[%s10107_s12 + $0x58] sm:$0xff]  ;;  %v10210_v28 = vld [vmem:[%s10107_s12 + $0x60] sm:$0xff] }
  0x77   : > { %293 = vst [vmem:[#allocation2 + $0x187] sm:$0x1] %v9886_v0  ;;  %294 = vst [vmem:[#allocation2 + $0x1a7] sm:$0x1] %v9886_v0  ;;  %v10214_v30 = vld [vmem:[%s10107_s12 + $0x68] sm:$0xff]  ;;  %v10217_v31 = vld [vmem:[%s10107_s12 + $0x70] sm:$0xff] }
  0x78   : > { %295 = vst [vmem:[#allocation2 + $0x1c7] sm:$0x1] %v9886_v0  ;;  %296 = vst [vmem:[#allocation2 + $0x1e7] sm:$0x1] %v9886_v0  ;;  %8506 = vmatpush3.bf16.msra.mxu0 %v8503_v9  ;;  %v10220_v32 = vld [vmem:[%s10107_s12 + $0x78] sm:$0xff]  ;;  %v431_v33 = vld [vmem:[#allocation6 + $0x50] sm:$0xff] }
  0x79   : > { %297 = vst [vmem:[#allocation2 + $0x207] sm:$0x1] %v9886_v0  ;;  %300 = vst [vmem:[#allocation2 + $0x38] sm:$0x1] %v9886_v0  ;;  %8508 = vmatprep.subr.bf16.mxu0 %v8507_v18  ;;  %v432_v34 = vld [vmem:[#allocation6 + $0x58] sm:$0xff]  ;;  %v10226_v35 = vld [vmem:[%s10107_s12 + $0x80] sm:$0xff] }
  0x7a   : > { %301 = vst [vmem:[#allocation2 + $0x58] sm:$0x1] %v9886_v0  ;;  %302 = vst [vmem:[#allocation2 + $0x78] sm:$0x1] %v9886_v0  ;;  %v10229_v36 = vld [vmem:[%s10107_s12 + $0x88] sm:$0xff]  ;;  %v8515_v37 = vpack.c.bf16 %v432_v34, %v431_v33  ;;  %v433_v38 = vld [vmem:[#allocation6 + $0x60] sm:$0xff] }
  0x7b   : > { %303 = vst [vmem:[#allocation2 + $0x98] sm:$0x1] %v9886_v0  ;;  %304 = vst [vmem:[#allocation2 + $0xb8] sm:$0x1] %v9886_v0  ;;  %v434_v39 = vld [vmem:[#allocation6 + $0x68] sm:$0xff]  ;;  %v10234_v40 = vld [vmem:[%s10107_s12 + $0x90] sm:$0xff] }
  0x7c   : > { %305 = vst [vmem:[#allocation2 + $0xd8] sm:$0x1] %v9886_v0  ;;  %306 = vst [vmem:[#allocation2 + $0xf8] sm:$0x1] %v9886_v0  ;;  %8510 = vmatpush3.bf16.msra.mxu0 %v8507_v18  ;;  %v10237_v41 = vld [vmem:[%s10107_s12 + $0x98] sm:$0xff]  ;;  %v8519_v42 = vpack.c.bf16 %v434_v39, %v433_v38  ;;  %v435_v43 = vld [vmem:[#allocation6 + $0x70] sm:$0xff] }
  0x7d   : > { %307 = vst [vmem:[#allocation2 + $0x118] sm:$0x1] %v9886_v0  ;;  %308 = vst [vmem:[#allocation2 + $0x138] sm:$0x1] %v9886_v0  ;;  %8512 = vmatprep.subr.bf16.mxu0 %v8511_v29  ;;  %v436_v44 = vld [vmem:[#allocation6 + $0x78] sm:$0xff]  ;;  %v10242_v45 = vld [vmem:[%s10107_s12 + $0xa0] sm:$0xff] }
  0x7e   : > { %309 = vst [vmem:[#allocation2 + $0x158] sm:$0x1] %v9886_v0  ;;  %310 = vst [vmem:[#allocation2 + $0x178] sm:$0x1] %v9886_v0  ;;  %v10245_v46 = vld [vmem:[%s10107_s12 + $0xa8] sm:$0xff]  ;;  %v10248_v47 = vld [vmem:[%s10107_s12 + $0xb0] sm:$0xff]  ;;  %v8523_v50 = vpack.c.bf16 %v436_v44, %v435_v43 }
  0x7f   : > { %311 = vst [vmem:[#allocation2 + $0x198] sm:$0x1] %v9886_v0  ;;  %312 = vst [vmem:[#allocation2 + $0x1b8] sm:$0x1] %v9886_v0  ;;  %v10254_v48 = vld [vmem:[%s10107_s12 + $0xb8] sm:$0xff]  ;;  %v10258_v49 = vld [vmem:[%s10107_s12 + $0xc0] sm:$0xff] }
  0x80   : > { %313 = vst [vmem:[#allocation2 + $0x1d8] sm:$0x1] %v9886_v0  ;;  %314 = vst [vmem:[#allocation2 + $0x1f8] sm:$0x1] %v9886_v0  ;;  %8514 = vmatpush3.bf16.msra.mxu0 %v8511_v29  ;;  %v10262_v51 = vld [vmem:[%s10107_s12 + $0xc8] sm:$0xff]  ;;  %v10265_v52 = vld [vmem:[%s10107_s12 + $0xd0] sm:$0xff] }
  0x81   : > { %315 = vst [vmem:[#allocation2 + $0x218] sm:$0x1] %v9886_v0  ;;  %281 = vst [vmem:[#allocation2 + $0x7] sm:$0x1] %v9886_v0  ;;  %8516 = vmatprep.subr.bf16.mxu0 %v8515_v37  ;;  %v10268_v53 = vld [vmem:[%s10107_s12 + $0xd8] sm:$0xff]  ;;  %v727_v54 = vld [vmem:[#allocation6 + $0x80] sm:$0xff] }
  0x82   : > { %298 = vst [vmem:[#allocation2 + $0x227] sm:$0x1] %v9886_v0  ;;  %299 = vst [vmem:[#allocation2 + $0x18] sm:$0x1] %v9886_v0  ;;  %v728_v55 = vld [vmem:[#allocation6 + $0x88] sm:$0xff]  ;;  %v10274_v56 = vld [vmem:[%s10107_s12 + $0xe0] sm:$0xff] }
  0x83   : > { %316 = vst [vmem:[#allocation2 + $0x238] sm:$0x1] %v9886_v0  ;;  %350 = vst [vmem:[#allocation2 + $0x28] sm:$0xff] %v10162_v13  ;;  %v10277_v57 = vld [vmem:[%s10107_s12 + $0xe8] sm:$0xff]  ;;  %v8527_v58 = vpack.c.bf16 %v728_v55, %v727_v54  ;;  %v729_v59 = vld [vmem:[#allocation6 + $0x90] sm:$0xff]  ;;  %s9813_s6 = sshll.u32 %s9887_s7, 4  ;;  %s9814_s6 = int_to_ptr.vmem [resolvable:$false] %s9813_s6 }
  0x84   : > { %351 = vst [vmem:[#allocation2 + $0x30] sm:$0xff] %v10166_v14  ;;  %352 = vst [vmem:[#allocation2 + $0x48] sm:$0xff] %v10169_v15  ;;  %8518 = vmatpush3.bf16.msra.mxu0 %v8515_v37  ;;  %v730_v60 = vld [vmem:[#allocation6 + $0x98] sm:$0xff]  ;;  %v390_v61 = vld [vmem:[#allocation2 + $0xf] sm:$0xff]  ;;  %s9815_s8 = scalar_lea.vmem %s9814_s6, 8192  ;;  %p9816_p7 = scmp.lt.s32.totalorder %s11244_s13, %s9814_s6 }
  0x85   : > { %353 = vst [vmem:[#allocation2 + $0x50] sm:$0xff] %v10172_v16  ;;  %354 = vst [vmem:[#allocation2 + $0x68] sm:$0xff] %v10178_v17  ;;  %8520 = vmatprep.subr.bf16.mxu0 %v8519_v42  ;;  %v8531_v63 = vpack.c.bf16 %v730_v60, %v729_v59  ;;  %v731_v1 = vld [vmem:[#allocation6 + $0xa0] sm:$0xff]  ;;  %v732_v2 = vld [vmem:[#allocation6 + $0xa8] sm:$0xff]  ;;  %p9817_p9 = scmp.lt.s32.totalorder %s9815_s8, %s9809_s17 }
  0x86   : > { %355 = vst [vmem:[#allocation2 + $0x70] sm:$0xff] %v10182_v19  ;;  %356 = vst [vmem:[#allocation2 + $0x88] sm:$0xff] %v10185_v20  ;;  %v8535_v5 = vpack.c.bf16 %v732_v2, %v731_v1  ;;  %v733_v6 = vld [vmem:[#allocation6 + $0xb0] sm:$0xff]  ;;  %v734_v7 = vld [vmem:[#allocation6 + $0xb8] sm:$0xff] }
  0x87   : > { %357 = vst [vmem:[#allocation2 + $0x90] sm:$0xff] %v10188_v21  ;;  %358 = vst [vmem:[#allocation2 + $0xa8] sm:$0xff] %v10194_v24  ;;  %v735_v11 = vld [vmem:[#allocation6 + $0xc0] sm:$0xff]  ;;  %v736_v12 = vld [vmem:[#allocation6 + $0xc8] sm:$0xff]  ;;  %p9818_p12 = por %p9817_p9, %p9816_p7 }
  0x88   : > { %v389_v10 = vld [vmem:[#allocation2 + $0x7] sm:$0xff]  ;;  %359 = vst [vmem:[#allocation2 + $0xb0] sm:$0xff] %v10198_v25  ;;  %360 = vst [vmem:[#allocation2 + $0xc8] sm:$0xff] %v10201_v26  ;;  %8522 = vmatpush3.bf16.msra.mxu0 %v8519_v42  ;;  %v8543_v23 = vpack.c.bf16 %v736_v12, %v735_v11  ;;  %v737_v29 = vld [vmem:[#allocation6 + $0xd0] sm:$0xff] }
  0x89   : > { %7087 = vmatprep.mubr.f32.mxu0 %v389_v10  ;;  %361 = vst [vmem:[#allocation2 + $0xd0] sm:$0xff] %v10204_v27  ;;  %362 = vst [vmem:[#allocation2 + $0xe8] sm:$0xff] %v10210_v28  ;;  %8524 = vmatprep.subr.bf16.mxu0 %v8523_v50  ;;  %v8539_v10 = vpack.c.bf16 %v734_v7, %v733_v6  ;;  %v738_v33 = vld [vmem:[#allocation6 + $0xd8] sm:$0xff]  ;;  %v739_v39 = vld [vmem:[#allocation6 + $0xe0] sm:$0xff]  ;;  %p9819_p1 = pnand %p9818_p12, %p9812_p3 }
  0x8a   : > { %363 = vst [vmem:[#allocation2 + $0xf0] sm:$0xff] %v10214_v30  ;;  %364 = vst [vmem:[#allocation2 + $0x108] sm:$0xff] %v10217_v31  ;;  %v10281_v62 = vld [vmem:[#allocation2 + $0x27] sm:$0xff]  ;;  %v8547_v38 = vpack.c.bf16 %v738_v33, %v737_v29  ;;  %v741_v54 = vld [vmem:[#allocation6 + $0xf0] sm:$0xff] }
  0x8b   : > { %365 = vst [vmem:[#allocation2 + $0x110] sm:$0xff] %v10220_v32  ;;  %366 = vst [vmem:[#allocation2 + $0x128] sm:$0xff] %v10226_v35  ;;  %v10284_v3 = vld [vmem:[#allocation2 + $0x2f] sm:$0xff]  ;;  %v10286_v4 = vld [vmem:[#allocation2 + $0x47] sm:$0xff] }
  0x8c   : > { %367 = vst [vmem:[#allocation2 + $0x130] sm:$0xff] %v10229_v36  ;;  %368 = vst [vmem:[#allocation2 + $0x148] sm:$0xff] %v10234_v40  ;;  %8526 = vmatpush3.bf16.msra.mxu0 %v8523_v50  ;;  %v10290_v8 = vld [vmem:[#allocation2 + $0x4f] sm:$0xff]  ;;  %v10292_v9 = vld [vmem:[#allocation2 + $0x67] sm:$0xff] }
  0x8d   : > { %369 = vst [vmem:[#allocation2 + $0x150] sm:$0xff] %v10237_v41  ;;  %370 = vst [vmem:[#allocation2 + $0x168] sm:$0xff] %v10242_v45  ;;  %8528 = vmatprep.subr.bf16.mxu0 %v8527_v58  ;;  %v10296_v18 = vld [vmem:[#allocation2 + $0x6f] sm:$0xff]  ;;  %v10298_v22 = vld [vmem:[#allocation2 + $0x87] sm:$0xff] }
  0x8e   : > { %371 = vst [vmem:[#allocation2 + $0x170] sm:$0xff] %v10245_v46  ;;  %372 = vst [vmem:[#allocation2 + $0x188] sm:$0xff] %v10248_v47  ;;  %v10302_v34 = vld [vmem:[#allocation2 + $0x8f] sm:$0xff]  ;;  %v10304_v37 = vld [vmem:[#allocation2 + $0xa7] sm:$0xff] }
  0x8f   : > { %373 = vst [vmem:[#allocation2 + $0x190] sm:$0xff] %v10254_v48  ;;  %374 = vst [vmem:[#allocation2 + $0x1a8] sm:$0xff] %v10258_v49  ;;  %7088 = vmatmul.mubr.f32.vlgmr.msra.gmra.mrb[0].mxu0 %v390_v61  ;;  %v740_v42 = vld [vmem:[#allocation6 + $0xe8] sm:$0xff]  ;;  %v742_v55 = vld [vmem:[#allocation6 + $0xf8] sm:$0xff] }
  0x90   : > { %11387 = vst [vmem:[#allocation13_spill] sm:$0xff] %v10268_v53  ;;  %375 = vst [vmem:[#allocation2 + $0x1b0] sm:$0xff] %v10262_v51  ;;  %8530 = vmatpush3.bf16.msra.mxu0 %v8527_v58  ;;  %7090 = vmatprep.mubr.f32.mxu0 %v10281_v62  ;;  %v10308_v43 = vld [vmem:[#allocation2 + $0xaf] sm:$0xff]  ;;  %v10310_v44 = vld [vmem:[#allocation2 + $0xc7] sm:$0xff]  ;;  %v8551_v50 = vpack.c.bf16 %v740_v42, %v739_v39  ;;  %v8555_v60 = vpack.c.bf16 %v742_v55, %v741_v54 }
  0x91   : > { %376 = vst [vmem:[#allocation2 + $0x1c8] sm:$0xff] %v10265_v52  ;;  %377 = vst [vmem:[#allocation2 + $0x1d0] sm:$0xff] %v10268_v53  ;;  %8532 = vmatprep.subr.bf16.mxu0 %v8531_v63  ;;  %v10314_v58 = vld [vmem:[#allocation2 + $0xcf] sm:$0xff]  ;;  %v10316_v59 = vld [vmem:[#allocation2 + $0xe7] sm:$0xff] }
  0x92   : > { %11388 = vst [vmem:[#allocation14_spill] sm:$0xff] %v10274_v56  ;;  %378 = vst [vmem:[#allocation2 + $0x1e8] sm:$0xff] %v10274_v56  ;;  %v1033_v61 = vld [vmem:[#allocation6 + $0x100] sm:$0xff]  ;;  %v10320_v1 = vld [vmem:[#allocation2 + $0xef] sm:$0xff] }
  0x93   : > { %379 = vst [vmem:[#allocation2 + $0x1f0] sm:$0xff] %v10277_v57  ;;  %7091 = vmatmul.mubr.f32.gmra.mrb[2].mxu0 %v10284_v3  ;;  %v10322_v2 = vld [vmem:[#allocation2 + $0x107] sm:$0xff]  ;;  %v10326_v6 = vld [vmem:[#allocation2 + $0x10f] sm:$0xff] }
  0x94   : > { %7093 = vmatprep.mubr.f32.mxu0 %v10286_v4  ;;  %8534 = vmatpush3.bf16.msra.mxu0 %v8531_v63  ;;  %v1034_v63 = vld [vmem:[#allocation6 + $0x108] sm:$0xff] }
  0x95   : > { %8536 = vmatprep.subr.bf16.mxu0 %v8535_v5  ;;  %v10328_v7 = vld [vmem:[#allocation2 + $0x127] sm:$0xff]  ;;  %v10338_v12 = vld [vmem:[#allocation2 + $0x14f] sm:$0xff] }
  0x96   : > { %v10334_v11 = vld [vmem:[#allocation2 + $0x147] sm:$0xff]  ;;  %v10344_v29 = vld [vmem:[#allocation2 + $0x16f] sm:$0xff] }
  0x97   : > { %7094 = vmatmul.mubr.f32.gmra.mrb[4].mxu0 %v10290_v8  ;;  %v10346_v33 = vld [vmem:[#allocation2 + $0x187] sm:$0xff]  ;;  %v10356_v42 = vld [vmem:[#allocation2 + $0x1af] sm:$0xff] }
  0x98   : > { %7096 = vmatprep.mubr.f32.mxu0 %v10292_v9  ;;  %8538 = vmatpush3.bf16.msra.mxu0 %v8535_v5  ;;  %v8559_v5 = vpack.c.bf16 %v1034_v63, %v1033_v61  ;;  %11389 = vst [vmem:[#allocation15_spill] sm:$0xff] %v10346_v33  ;;  %v10352_v39 = vld [vmem:[#allocation2 + $0x1a7] sm:$0xff]  ;;  %11392 = vst [vmem:[#allocation18_spill] sm:$0xff] %v10356_v42  ;;  %v10362_v54 = vld [vmem:[#allocation2 + $0x1cf] sm:$0xff] }
  0x99   : > { %8540 = vmatprep.subr.bf16.mxu0 %v8539_v10  ;;  %11391 = vst [vmem:[#allocation17_spill] sm:$0xff] %v10352_v39  ;;  %11394 = vst [vmem:[#allocation20_spill] sm:$0xff] %v10362_v54  ;;  %v10364_v55 = vld [vmem:[#allocation2 + $0x1e7] sm:$0xff]  ;;  %v1035_v61 = vld [vmem:[#allocation6 + $0x110] sm:$0xff] }
  0x9a   : > { %11395 = vst [vmem:[#allocation21_spill] sm:$0xff] %v10364_v55  ;;  %v1036_v63 = vld [vmem:[#allocation6 + $0x118] sm:$0xff] }
  0x9b   : > { %7097 = vmatmul.mubr.f32.gmra.mrb[6].mxu0 %v10296_v18 }
  0x9c   : > { %7099 = vmatprep.mubr.f32.mxu0 %v10298_v22  ;;  %8542 = vmatpush3.bf16.msra.mxu0 %v8539_v10  ;;  %v10332_v10 = vld [vmem:[#allocation2 + $0x12f] sm:$0xff] }
  0x9d   : > { %8544 = vmatprep.subr.bf16.mxu0 %v8543_v23 }
  0x9f   : > { %7100 = vmatmul.mubr.f32.gmra.mrb[8].mxu0 %v10302_v34 }
  0xa0   : > { %7102 = vmatprep.mubr.f32.mxu0 %v10304_v37  ;;  %8546 = vmatpush3.bf16.msra.mxu0 %v8543_v23  ;;  %v10340_v23 = vld [vmem:[#allocation2 + $0x167] sm:$0xff] }
  0xa1   : > { %8548 = vmatprep.subr.bf16.mxu0 %v8547_v38 }
  0xa3   : > { %7103 = vmatmul.mubr.f32.gmra.mrb[10].mxu0 %v10308_v43 }
  0xa4   : > { %7105 = vmatprep.mubr.f32.mxu0 %v10310_v44  ;;  %8550 = vmatpush3.bf16.msra.mxu0 %v8547_v38  ;;  %v10350_v38 = vld [vmem:[#allocation2 + $0x18f] sm:$0xff] }
  0xa5   : > { %8552 = vmatprep.subr.bf16.mxu0 %v8551_v50  ;;  %11390 = vst [vmem:[#allocation16_spill] sm:$0xff] %v10350_v38 }
  0xa7   : > { %7106 = vmatmul.mubr.f32.gmra.mrb[12].mxu0 %v10314_v58 }
  0xa8   : > { %7108 = vmatprep.mubr.f32.mxu0 %v10316_v59  ;;  %8554 = vmatpush3.bf16.msra.mxu0 %v8551_v50  ;;  %v10358_v50 = vld [vmem:[#allocation2 + $0x1c7] sm:$0xff] }
  0xa9   : > { %8556 = vmatprep.subr.bf16.mxu0 %v8555_v60  ;;  %11393 = vst [vmem:[#allocation19_spill] sm:$0xff] %v10358_v50 }
  0xab   : > { %7109 = vmatmul.mubr.f32.gmra.mrb[14].mxu0 %v10320_v1 }
  0xac   : > { %7111 = vmatprep.mubr.f32.mxu0 %v10322_v2  ;;  %8558 = vmatpush3.bf16.msra.mxu0 %v8555_v60  ;;  %v10368_v60 = vld [vmem:[#allocation2 + $0x1ef] sm:$0xff] }
  0xad   : > { %8560 = vmatprep.subr.bf16.mxu0 %v8559_v5  ;;  %11396 = vst [vmem:[#allocation22_spill] sm:$0xff] %v10368_v60 }
  0xaf   : > { %7112 = vmatmul.mubr.f32.gmra.mrb[16].mxu0 %v10326_v6 }
  0xb0   : > { %7114 = vmatprep.mubr.f32.mxu0 %v10328_v7 }
  0xb3   : > { %7115 = vmatmul.mubr.f32.gmra.mrb[18].mxu0 %v10332_v10 }
  0xb4   : > { %7117 = vmatprep.mubr.f32.mxu0 %v10334_v11 }
  0xb7   : > { %7118 = vmatmul.mubr.f32.gmra.mrb[20].mxu0 %v10338_v12 }
  0xb8   : > { %7120 = vmatprep.mubr.f32.mxu0 %v10340_v23 }
  0xbb   : > { %7121 = vmatmul.mubr.f32.gmra.mrb[22].mxu0 %v10344_v29 }
  0xbc   : > { %7123 = vmatprep.mubr.f32.mxu0 %v10346_v33  ;;  %v1041_v33 = vld [vmem:[#allocation6 + $0x140] sm:$0xff] }
  0xbf   : > { %7124 = vmatmul.mubr.f32.gmra.mrb[24].mxu0 %v10350_v38  ;;  %v1038_v38 = vld [vmem:[#allocation6 + $0x128] sm:$0xff] }
  0xc0   : > { %7126 = vmatprep.mubr.f32.mxu0 %v10352_v39  ;;  %v8563_v39 = vpack.c.bf16 %v1036_v63, %v1035_v61  ;;  %v1042_v61 = vld [vmem:[#allocation6 + $0x148] sm:$0xff]  ;;  %v1339_v63 = vld [vmem:[#allocation6 + $0x180] sm:$0xff] }
  0xc3   : > { %7127 = vmatmul.mubr.f32.gmra.mrb[26].mxu0 %v10356_v42  ;;  %v1037_v42 = vld [vmem:[#allocation6 + $0x120] sm:$0xff] }
  0xc4   : > { %7129 = vmatprep.mubr.f32.mxu0 %v10358_v50  ;;  %v1039_v50 = vld [vmem:[#allocation6 + $0x130] sm:$0xff] }
  0xc7   : > { %7130 = vmatmul.mubr.f32.gmra.mrb[28].mxu0 %v10362_v54  ;;  %v8567_v54 = vpack.c.bf16 %v1038_v38, %v1037_v42  ;;  %v1044_v38 = vld [vmem:[#allocation6 + $0x158] sm:$0xff]  ;;  %v1045_v42 = vld [vmem:[#allocation6 + $0x160] sm:$0xff] }
  0xc8   : > { %7132 = vmatprep.mubr.f32.mxu0 %v10364_v55  ;;  %v1040_v55 = vld [vmem:[#allocation6 + $0x138] sm:$0xff] }
  0xcb   : > { %7133 = vmatmul.mubr.f32.gmra.mrb[30].mxu0 %v10368_v60  ;;  %v8571_v60 = vpack.c.bf16 %v1040_v55, %v1039_v50  ;;  %v1046_v50 = vld [vmem:[#allocation6 + $0x168] sm:$0xff]  ;;  %v1047_v55 = vld [vmem:[#allocation6 + $0x170] sm:$0xff] }
  0xcc   : > { %7167 = vmatprep.mubr.f32.mxu0 %v9886_v0 }
  0xcf   : > { %7168 = vmatmul.mubr.f32.vlgmr.msra.gmra.mrb[0].mxu0 %v9886_v0  ;;  %v8575_v0 = vpack.c.bf16 %v1042_v61, %v1041_v33  ;;  %v1048_v33 = vld [vmem:[#allocation6 + $0x178] sm:$0xff]  ;;  %v1340_v61 = vld [vmem:[#allocation6 + $0x188] sm:$0xff] }
  0xd0   : > { %8562 = vmatpush3.bf16.msra.mxu0 %v8559_v5  ;;  %7170 = vmatprep.mubr.f32.mxu0 %v10162_v13  ;;  %v1043_v5 = vld [vmem:[#allocation6 + $0x150] sm:$0xff] }
  0xd1   : > { %8564 = vmatprep.subr.bf16.mxu0 %v8563_v39 }
  0xd3   : > { %7171 = vmatmul.mubr.f32.gmra.mrb[2].mxu0 %v10166_v14 }
  0xd4   : > { %7173 = vmatprep.mubr.f32.mxu0 %v10169_v15  ;;  %8566 = vmatpush3.bf16.msra.mxu0 %v8563_v39  ;;  %v8579_v39 = vpack.c.bf16 %v1044_v38, %v1043_v5  ;;  %v10399_v5 = vld [vmem:[%s10107_s12 + $0xf0] sm:$0xff]  ;;  %v10403_v38 = vld [vmem:[%s10107_s12 + $0xf8] sm:$0xff] }
  0xd5   : > { %8568 = vmatprep.subr.bf16.mxu0 %v8567_v54  ;;  %11397 = vst [vmem:[#allocation23_spill] sm:$0xff] %v10399_v5  ;;  %380 = vst [vmem:[#allocation2 + $0x208] sm:$0xff] %v10399_v5 }
  0xd6   : > { %11398 = vst [vmem:[#allocation24_spill] sm:$0xff] %v10403_v38  ;;  %381 = vst [vmem:[#allocation2 + $0x210] sm:$0xff] %v10403_v38  ;;  %v10416_v38 = vld [vmem:[#allocation2 + $0x49] sm:$0xff] }
  0xd7   : > { %7174 = vmatmul.mubr.f32.gmra.mrb[4].mxu0 %v10172_v16  ;;  %11401 = vst [vmem:[#allocation27_spill] sm:$0xff] %v10416_v38 }
  0xd8   : > { %7176 = vmatprep.mubr.f32.mxu0 %v10178_v17  ;;  %8570 = vmatpush3.bf16.msra.mxu0 %v8567_v54  ;;  %v8583_v54 = vpack.c.bf16 %v1046_v50, %v1045_v42  ;;  %v1341_v42 = vld [vmem:[#allocation6 + $0x190] sm:$0xff]  ;;  %v1342_v50 = vld [vmem:[#allocation6 + $0x198] sm:$0xff] }
  0xd9   : > { %8572 = vmatprep.subr.bf16.mxu0 %v8571_v60 }
  0xdb   : > { %7177 = vmatmul.mubr.f32.gmra.mrb[6].mxu0 %v10182_v19 }
  0xdc   : > { %7179 = vmatprep.mubr.f32.mxu0 %v10185_v20  ;;  %8574 = vmatpush3.bf16.msra.mxu0 %v8571_v60  ;;  %v8587_v60 = vpack.c.bf16 %v1048_v33, %v1047_v55  ;;  %v10411_v55 = vld [vmem:[#allocation2 + $0x29] sm:$0xff]  ;;  %v8595_v33 = vpack.c.bf16 %v1342_v50, %v1341_v42  ;;  %v1347_v50 = vld [vmem:[#allocation6 + $0x1c0] sm:$0xff] }
  0xdd   : > { %8576 = vmatprep.subr.bf16.mxu0 %v8575_v0  ;;  %11399 = vst [vmem:[#allocation25_spill] sm:$0xff] %v10411_v55  ;;  %v10422_v42 = vld [vmem:[#allocation2 + $0x69] sm:$0xff] }
  0xde   : > { %11403 = vst [vmem:[#allocation29_spill] sm:$0xff] %v10422_v42 }
  0xdf   : > { %7180 = vmatmul.mubr.f32.gmra.mrb[8].mxu0 %v10188_v21 }
  0xe0   : > { %7182 = vmatprep.mubr.f32.mxu0 %v10194_v24  ;;  %8578 = vmatpush3.bf16.msra.mxu0 %v8575_v0  ;;  %v8591_v0 = vpack.c.bf16 %v1340_v61, %v1339_v63  ;;  %v1344_v63 = vld [vmem:[#allocation6 + $0x1a8] sm:$0xff]  ;;  %v10414_v61 = vld [vmem:[#allocation2 + $0x31] sm:$0xff] }
  0xe1   : > { %8580 = vmatprep.subr.bf16.mxu0 %v8579_v39  ;;  %11400 = vst [vmem:[#allocation26_spill] sm:$0xff] %v10414_v61 }
  0xe3   : > { %7183 = vmatmul.mubr.f32.gmra.mrb[10].mxu0 %v10198_v25 }
  0xe4   : > { %7185 = vmatprep.mubr.f32.mxu0 %v10201_v26  ;;  %8582 = vmatpush3.bf16.msra.mxu0 %v8579_v39  ;;  %v1000_v39 = vld [vmem:[#allocation2 + $0x9] sm:$0xff] }
  0xe5   : > { %8584 = vmatprep.subr.bf16.mxu0 %v8583_v54 }
  0xe7   : > { %7186 = vmatmul.mubr.f32.gmra.mrb[12].mxu0 %v10204_v27 }
  0xe8   : > { %7188 = vmatprep.mubr.f32.mxu0 %v10210_v28  ;;  %8586 = vmatpush3.bf16.msra.mxu0 %v8583_v54  ;;  %v1001_v54 = vld [vmem:[#allocation2 + $0x11] sm:$0xff] }
  0xe9   : > { %8588 = vmatprep.subr.bf16.mxu0 %v8587_v60 }
  0xeb   : > { %7189 = vmatmul.mubr.f32.gmra.mrb[14].mxu0 %v10214_v30 }
  0xec   : > { %7191 = vmatprep.mubr.f32.mxu0 %v10217_v31  ;;  %8590 = vmatpush3.bf16.msra.mxu0 %v8587_v60  ;;  %v1343_v60 = vld [vmem:[#allocation6 + $0x1a0] sm:$0xff] }
  0xed   : > { %8592 = vmatprep.subr.bf16.mxu0 %v8591_v0  ;;  %v8599_v5 = vpack.c.bf16 %v1344_v63, %v1343_v60  ;;  %v10426_v60 = vld [vmem:[#allocation2 + $0x71] sm:$0xff]  ;;  %v10428_v63 = vld [vmem:[#allocation2 + $0x89] sm:$0xff] }
  0xee   : > { %11404 = vst [vmem:[#allocation30_spill] sm:$0xff] %v10426_v60  ;;  %11405 = vst [vmem:[#allocation31_spill] sm:$0xff] %v10428_v63 }
  0xef   : > { %7192 = vmatmul.mubr.f32.gmra.mrb[16].mxu0 %v10220_v32 }
  0xf0   : > { %7194 = vmatprep.mubr.f32.mxu0 %v10226_v35 }
  0xf3   : > { %7195 = vmatmul.mubr.f32.gmra.mrb[18].mxu0 %v10229_v36 }
  0xf4   : > { %7197 = vmatprep.mubr.f32.mxu0 %v10234_v40 }
  0xf7   : > { %7198 = vmatmul.mubr.f32.gmra.mrb[20].mxu0 %v10237_v41 }
  0xf8   : > { %7200 = vmatprep.mubr.f32.mxu0 %v10242_v45 }
  0xfb   : > { %7201 = vmatmul.mubr.f32.gmra.mrb[22].mxu0 %v10245_v46 }
  0xfc   : > { %7203 = vmatprep.mubr.f32.mxu0 %v10248_v47 }
  0xff   : > { %7204 = vmatmul.mubr.f32.gmra.mrb[24].mxu0 %v10254_v48 }
 0x100   : > { %7206 = vmatprep.mubr.f32.mxu0 %v10258_v49 }
 0x103   : > { %7207 = vmatmul.mubr.f32.gmra.mrb[26].mxu0 %v10262_v51 }
 0x104   : > { %7209 = vmatprep.mubr.f32.mxu0 %v10265_v52 }
 0x107   : > { %7210 = vmatmul.mubr.f32.gmra.mrb[28].mxu0 %v10268_v53  ;;  %v1346_v53 = vld [vmem:[#allocation6 + $0x1b8] sm:$0xff] }
 0x108   : > { %7212 = vmatprep.mubr.f32.mxu0 %v10274_v56  ;;  %v1345_v56 = vld [vmem:[#allocation6 + $0x1b0] sm:$0xff] }
 0x10b   : > { %7213 = vmatmul.mubr.f32.gmra.mrb[30].mxu0 %v10277_v57 }
 0x10c   : > { %7247 = vmatprep.mubr.f32.mxu0 %v1000_v39  ;;  %v10420_v39 = vld [vmem:[#allocation2 + $0x51] sm:$0xff] }
 0x10d   : > { %11402 = vst [vmem:[#allocation28_spill] sm:$0xff] %v10420_v39 }
 0x10f   : > { %7248 = vmatmul.mubr.f32.vlgmr.msra.gmra.mrb[0].mxu0 %v1001_v54  ;;  %v1348_v54 = vld [vmem:[#allocation6 + $0x1c8] sm:$0xff] }
 0x110   : > { %8594 = vmatpush3.bf16.msra.mxu0 %v8591_v0  ;;  %7250 = vmatprep.mubr.f32.mxu0 %v10411_v55  ;;  %v8603_v0 = vpack.c.bf16 %v1346_v53, %v1345_v56  ;;  %v1350_v55 = vld [vmem:[#allocation6 + $0x1d8] sm:$0xff]  ;;  %v10434_v56 = vld [vmem:[#allocation2 + $0xa9] sm:$0xff] }
 0x111   : > { %8596 = vmatprep.subr.bf16.mxu0 %v8595_v33  ;;  %v10432_v53 = vld [vmem:[#allocation2 + $0x91] sm:$0xff]  ;;  %11407 = vst [vmem:[#allocation33_spill] sm:$0xff] %v10434_v56 }
 0x112   : > { %11406 = vst [vmem:[#allocation32_spill] sm:$0xff] %v10432_v53 }
 0x113   : > { %7251 = vmatmul.mubr.f32.gmra.mrb[2].mxu0 %v10414_v61  ;;  %v1349_v61 = vld [vmem:[#allocation6 + $0x1d0] sm:$0xff] }
 0x114   : > { %7253 = vmatprep.mubr.f32.mxu0 %v10416_v38  ;;  %8598 = vmatpush3.bf16.msra.mxu0 %v8595_v33  ;;  %v8607_v38 = vpack.c.bf16 %v1348_v54, %v1347_v50  ;;  %v8611_v33 = vpack.c.bf16 %v1350_v55, %v1349_v61  ;;  %v10440_v50 = vld [vmem:[#allocation2 + $0xc9] sm:$0xff]  ;;  %v10444_v55 = vld [vmem:[#allocation2 + $0xd1] sm:$0xff] }
 0x115   : > { %8600 = vmatprep.subr.bf16.mxu0 %v8599_v5  ;;  %v10446_v61 = vld [vmem:[#allocation2 + $0xe9] sm:$0xff] }
 0x117   : > { %7254 = vmatmul.mubr.f32.gmra.mrb[4].mxu0 %v10420_v39  ;;  %v1352_v39 = vld [vmem:[#allocation6 + $0x1e8] sm:$0xff] }
 0x118   : > { %7256 = vmatprep.mubr.f32.mxu0 %v10422_v42  ;;  %8602 = vmatpush3.bf16.msra.mxu0 %v8599_v5  ;;  %v1351_v42 = vld [vmem:[#allocation6 + $0x1e0] sm:$0xff]  ;;  %v10438_v5 = vld [vmem:[#allocation2 + $0xb1] sm:$0xff] }
 0x119   : > { %8604 = vmatprep.subr.bf16.mxu0 %v8603_v0  ;;  %v8615_v54 = vpack.c.bf16 %v1352_v39, %v1351_v42  ;;  %v10452_v39 = vld [vmem:[#allocation2 + $0x109] sm:$0xff] }
 0x11a   : > { %11409 = vst [vmem:[#allocation35_spill] sm:$0xff] %v10452_v39 }
 0x11b   : > { %7257 = vmatmul.mubr.f32.gmra.mrb[6].mxu0 %v10426_v60  ;;  %v1354_v60 = vld [vmem:[#allocation6 + $0x1f8] sm:$0xff] }
 0x11c   : > { %7259 = vmatprep.mubr.f32.mxu0 %v10428_v63  ;;  %8606 = vmatpush3.bf16.msra.mxu0 %v8603_v0  ;;  %v1353_v63 = vld [vmem:[#allocation6 + $0x1f0] sm:$0xff] }
 0x11d   : > { %8608 = vmatprep.subr.bf16.mxu0 %v8607_v38  ;;  %v8619_v0 = vpack.c.bf16 %v1354_v60, %v1353_v63  ;;  %v10458_v60 = vld [vmem:[#allocation2 + $0x129] sm:$0xff]  ;;  %v10462_v63 = vld [vmem:[#allocation2 + $0x131] sm:$0xff] }
 0x11e   : > { %11411 = vst [vmem:[#allocation37_spill] sm:$0xff] %v10458_v60  ;;  %11412 = vst [vmem:[#allocation38_spill] sm:$0xff] %v10462_v63 }
 0x11f   : > { %7260 = vmatmul.mubr.f32.gmra.mrb[8].mxu0 %v10432_v53  ;;  %v1646_v53 = vld [vmem:[#allocation6 + $0x208] sm:$0xff] }
 0x120   : > { %7262 = vmatprep.mubr.f32.mxu0 %v10434_v56  ;;  %8610 = vmatpush3.bf16.msra.mxu0 %v8607_v38  ;;  %v1645_v56 = vld [vmem:[#allocation6 + $0x200] sm:$0xff]  ;;  %v10450_v38 = vld [vmem:[#allocation2 + $0xf1] sm:$0xff] }
 0x121   : > { %8612 = vmatprep.subr.bf16.mxu0 %v8611_v33  ;;  %11408 = vst [vmem:[#allocation34_spill] sm:$0xff] %v10450_v38  ;;  %v8623_v42 = vpack.c.bf16 %v1646_v53, %v1645_v56  ;;  %v10468_v53 = vld [vmem:[#allocation2 + $0x151] sm:$0xff]  ;;  %v10470_v56 = vld [vmem:[#allocation2 + $0x169] sm:$0xff] }
 0x122   : > { %11414 = vst [vmem:[#allocation40_spill] sm:$0xff] %v10468_v53  ;;  %11415 = vst [vmem:[#allocation41_spill] sm:$0xff] %v10470_v56 }
 0x123   : > { %7263 = vmatmul.mubr.f32.gmra.mrb[10].mxu0 %v10438_v5 }
 0x124   : > { %7265 = vmatprep.mubr.f32.mxu0 %v10440_v50  ;;  %8614 = vmatpush3.bf16.msra.mxu0 %v8611_v33  ;;  %v10456_v33 = vld [vmem:[#allocation2 + $0x111] sm:$0xff] }
 0x125   : > { %8616 = vmatprep.subr.bf16.mxu0 %v8615_v54  ;;  %11410 = vst [vmem:[#allocation36_spill] sm:$0xff] %v10456_v33 }
 0x127   : > { %7266 = vmatmul.mubr.f32.gmra.mrb[12].mxu0 %v10444_v55 }
 0x128   : > { %7268 = vmatprep.mubr.f32.mxu0 %v10446_v61  ;;  %8618 = vmatpush3.bf16.msra.mxu0 %v8615_v54  ;;  %v10464_v54 = vld [vmem:[#allocation2 + $0x149] sm:$0xff] }
 0x129   : > { %8620 = vmatprep.subr.bf16.mxu0 %v8619_v0  ;;  %11413 = vst [vmem:[#allocation39_spill] sm:$0xff] %v10464_v54 }
 0x12b   : > { %7269 = vmatmul.mubr.f32.gmra.mrb[14].mxu0 %v10450_v38  ;;  %v1650_v38 = vld [vmem:[#allocation6 + $0x228] sm:$0xff] }
 0x12c   : > { %7271 = vmatprep.mubr.f32.mxu0 %v10452_v39  ;;  %8622 = vmatpush3.bf16.msra.mxu0 %v8619_v0  ;;  %v10474_v0 = vld [vmem:[#allocation2 + $0x171] sm:$0xff] }
 0x12d   : > { %8624 = vmatprep.subr.bf16.mxu0 %v8623_v42  ;;  %11416 = vst [vmem:[#allocation42_spill] sm:$0xff] %v10474_v0 }
 0x12f   : > { %7272 = vmatmul.mubr.f32.gmra.mrb[16].mxu0 %v10456_v33  ;;  %v10476_v33 = vld [vmem:[#allocation2 + $0x189] sm:$0xff] }
 0x130   : > { %7274 = vmatprep.mubr.f32.mxu0 %v10458_v60  ;;  %11417 = vst [vmem:[#allocation43_spill] sm:$0xff] %v10476_v33  ;;  %v10480_v60 = vld [vmem:[#allocation2 + $0x191] sm:$0xff] }
 0x131   : > { %11418 = vst [vmem:[#allocation44_spill] sm:$0xff] %v10480_v60 }
 0x133   : > { %7275 = vmatmul.mubr.f32.gmra.mrb[18].mxu0 %v10462_v63  ;;  %v10482_v63 = vld [vmem:[#allocation2 + $0x1a9] sm:$0xff] }
 0x134   : > { %7277 = vmatprep.mubr.f32.mxu0 %v10464_v54  ;;  %11419 = vst [vmem:[#allocation45_spill] sm:$0xff] %v10482_v63  ;;  %v10486_v54 = vld [vmem:[#allocation2 + $0x1b1] sm:$0xff] }
 0x135   : > { %11420 = vst [vmem:[#allocation46_spill] sm:$0xff] %v10486_v54 }
 0x137   : > { %7278 = vmatmul.mubr.f32.gmra.mrb[20].mxu0 %v10468_v53  ;;  %v10488_v53 = vld [vmem:[#allocation2 + $0x1c9] sm:$0xff] }
 0x138   : > { %7280 = vmatprep.mubr.f32.mxu0 %v10470_v56  ;;  %11421 = vst [vmem:[#allocation47_spill] sm:$0xff] %v10488_v53  ;;  %v10492_v56 = vld [vmem:[#allocation2 + $0x1d1] sm:$0xff] }
 0x139   : > { %11422 = vst [vmem:[#allocation48_spill] sm:$0xff] %v10492_v56 }
 0x13b   : > { %7281 = vmatmul.mubr.f32.gmra.mrb[22].mxu0 %v10474_v0  ;;  %v10494_v0 = vld [vmem:[#allocation2 + $0x1e9] sm:$0xff] }
 0x13c   : > { %7283 = vmatprep.mubr.f32.mxu0 %v10476_v33  ;;  %11423 = vst [vmem:[#allocation49_spill] sm:$0xff] %v10494_v0  ;;  %v10498_v33 = vld [vmem:[#allocation2 + $0x1f1] sm:$0xff] }
 0x13d   : > { %11424 = vst [vmem:[#allocation50_spill] sm:$0xff] %v10498_v33 }
 0x13f   : > { %7284 = vmatmul.mubr.f32.gmra.mrb[24].mxu0 %v10480_v60  ;;  %v1647_v60 = vld [vmem:[#allocation6 + $0x210] sm:$0xff] }
 0x140   : > { %7286 = vmatprep.mubr.f32.mxu0 %v10482_v63  ;;  %v1648_v63 = vld [vmem:[#allocation6 + $0x218] sm:$0xff] }
 0x141   : > { %v8627_v39 = vpack.c.bf16 %v1648_v63, %v1647_v60  ;;  %v1654_v60 = vld [vmem:[#allocation6 + $0x248] sm:$0xff] }
 0x143   : > { %7287 = vmatmul.mubr.f32.gmra.mrb[26].mxu0 %v10486_v54  ;;  %v1649_v54 = vld [vmem:[#allocation6 + $0x220] sm:$0xff] }
 0x144   : > { %7289 = vmatprep.mubr.f32.mxu0 %v10488_v53  ;;  %v1651_v53 = vld [vmem:[#allocation6 + $0x230] sm:$0xff] }
 0x147   : > { %7290 = vmatmul.mubr.f32.gmra.mrb[28].mxu0 %v10492_v56  ;;  %v8631_v56 = vpack.c.bf16 %v1650_v38, %v1649_v54  ;;  %v1656_v38 = vld [vmem:[#allocation6 + $0x258] sm:$0xff]  ;;  %v1955_v54 = vld [vmem:[#allocation6 + $0x2a0] sm:$0xff] }
 0x148   : > { %7292 = vmatprep.mubr.f32.mxu0 %v10494_v0  ;;  %v1652_v0 = vld [vmem:[#allocation6 + $0x238] sm:$0xff] }
 0x14b   : > { %7293 = vmatmul.mubr.f32.gmra.mrb[30].mxu0 %v10498_v33  ;;  %v8635_v33 = vpack.c.bf16 %v1652_v0, %v1651_v53  ;;  %v1956_v53 = vld [vmem:[#allocation6 + $0x2a8] sm:$0xff]  ;;  %v1957_v0 = vld [vmem:[#allocation6 + $0x2b0] sm:$0xff] }
 0x14c   : > { %7327 = vmatprep.mubr.f32.mxu0 %v10281_v62  ;;  %v1653_v62 = vld [vmem:[#allocation6 + $0x240] sm:$0xff] }
 0x14f   : > { %7328 = vmatmul.mubr.f32.vlgmr.msra.gmra.mrb[0].mxu0 %v10284_v3  ;;  %v8639_v3 = vpack.c.bf16 %v1654_v60, %v1653_v62  ;;  %v1958_v62 = vld [vmem:[#allocation6 + $0x2b8] sm:$0xff] }
 0x150   : > { %8626 = vmatpush3.bf16.msra.mxu0 %v8623_v42  ;;  %7330 = vmatprep.mubr.f32.mxu0 %v10286_v4  ;;  %v1655_v4 = vld [vmem:[#allocation6 + $0x250] sm:$0xff]  ;;  %v1660_v42 = vld [vmem:[#allocation6 + $0x278] sm:$0xff]  ;;  %v8667_v60 = vpack.c.bf16 %v1958_v62, %v1957_v0  ;;  %v11453_v0 = vld [vmem:[#allocation41_spill] sm:$0xff] }
 0x151   : > { %8628 = vmatprep.subr.bf16.mxu0 %v8627_v39  ;;  %v11454_v62 = vld [vmem:[#allocation42_spill] sm:$0xff] }
 0x153   : > { %7331 = vmatmul.mubr.f32.gmra.mrb[2].mxu0 %v10290_v8  ;;  %v8643_v8 = vpack.c.bf16 %v1656_v38, %v1655_v4  ;;  %v1962_v4 = vld [vmem:[#allocation6 + $0x2d8] sm:$0xff]  ;;  %v1964_v38 = vld [vmem:[#allocation6 + $0x2e8] sm:$0xff] }
 0x154   : > { %7333 = vmatprep.mubr.f32.mxu0 %v10292_v9  ;;  %8630 = vmatpush3.bf16.msra.mxu0 %v8627_v39  ;;  %v1657_v9 = vld [vmem:[#allocation6 + $0x260] sm:$0xff]  ;;  %v1658_v39 = vld [vmem:[#allocation6 + $0x268] sm:$0xff] }
 0x155   : > { %8632 = vmatprep.subr.bf16.mxu0 %v8631_v56 }
 0x157   : > { %7334 = vmatmul.mubr.f32.gmra.mrb[4].mxu0 %v10296_v18  ;;  %v8647_v18 = vpack.c.bf16 %v1658_v39, %v1657_v9  ;;  %v2259_v9 = vld [vmem:[#allocation6 + $0x308] sm:$0xff]  ;;  %v2266_v39 = vld [vmem:[#allocation6 + $0x340] sm:$0xff] }
 0x158   : > { %7336 = vmatprep.mubr.f32.mxu0 %v10298_v22  ;;  %8634 = vmatpush3.bf16.msra.mxu0 %v8631_v56  ;;  %v1659_v22 = vld [vmem:[#allocation6 + $0x270] sm:$0xff]  ;;  %v8663_v56 = vpack.c.bf16 %v1956_v53, %v1955_v54  ;;  %v11449_v53 = vld [vmem:[#allocation37_spill] sm:$0xff] }
 0x159   : > { %8636 = vmatprep.subr.bf16.mxu0 %v8635_v33  ;;  %v11447_v54 = vld [vmem:[#allocation35_spill] sm:$0xff] }
 0x15b   : > { %7337 = vmatmul.mubr.f32.gmra.mrb[6].mxu0 %v10302_v34  ;;  %v8651_v34 = vpack.c.bf16 %v1660_v42, %v1659_v22  ;;  %v11442_v22 = vld [vmem:[#allocation30_spill] sm:$0xff]  ;;  %v11443_v42 = vld [vmem:[#allocation31_spill] sm:$0xff] }
 0x15c   : > { %7339 = vmatprep.mubr.f32.mxu0 %v10304_v37  ;;  %8638 = vmatpush3.bf16.msra.mxu0 %v8635_v33  ;;  %v1951_v37 = vld [vmem:[#allocation6 + $0x280] sm:$0xff]  ;;  %v1952_v33 = vld [vmem:[#allocation6 + $0x288] sm:$0xff] }
 0x15d   : > { %8640 = vmatprep.subr.bf16.mxu0 %v8639_v3 }
 0x15f   : > { %7340 = vmatmul.mubr.f32.gmra.mrb[8].mxu0 %v10308_v43  ;;  %v8655_v43 = vpack.c.bf16 %v1952_v33, %v1951_v37  ;;  %v2268_v37 = vld [vmem:[#allocation6 + $0x350] sm:$0xff]  ;;  %v2269_v33 = vld [vmem:[#allocation6 + $0x358] sm:$0xff] }
 0x160   : > { %7342 = vmatprep.mubr.f32.mxu0 %v10310_v44  ;;  %8642 = vmatpush3.bf16.msra.mxu0 %v8639_v3  ;;  %v11425_v44 = vld [vmem:[#allocation15_spill] sm:$0xff]  ;;  %v1960_v3 = vld [vmem:[#allocation6 + $0x2c8] sm:$0xff] }
 0x161   : > { %8644 = vmatprep.subr.bf16.mxu0 %v8643_v8 }
 0x163   : > { %7343 = vmatmul.mubr.f32.gmra.mrb[10].mxu0 %v10314_v58  ;;  %v11426_v58 = vld [vmem:[#allocation16_spill] sm:$0xff] }
 0x164   : > { %7345 = vmatprep.mubr.f32.mxu0 %v10316_v59  ;;  %8646 = vmatpush3.bf16.msra.mxu0 %v8643_v8  ;;  %v11427_v59 = vld [vmem:[#allocation17_spill] sm:$0xff]  ;;  %v1966_v8 = vld [vmem:[#allocation6 + $0x2f8] sm:$0xff] }
 0x165   : > { %8648 = vmatprep.subr.bf16.mxu0 %v8647_v18 }
 0x167   : > { %7346 = vmatmul.mubr.f32.gmra.mrb[12].mxu0 %v10320_v1  ;;  %v11428_v1 = vld [vmem:[#allocation18_spill] sm:$0xff] }
 0x168   : > { %7348 = vmatprep.mubr.f32.mxu0 %v10322_v2  ;;  %8650 = vmatpush3.bf16.msra.mxu0 %v8647_v18  ;;  %v11429_v2 = vld [vmem:[#allocation19_spill] sm:$0xff]  ;;  %v2267_v18 = vld [vmem:[#allocation6 + $0x348] sm:$0xff] }
 0x169   : > { %8652 = vmatprep.subr.bf16.mxu0 %v8651_v34 }
 0x16b   : > { %7349 = vmatmul.mubr.f32.gmra.mrb[14].mxu0 %v10326_v6  ;;  %v11430_v6 = vld [vmem:[#allocation20_spill] sm:$0xff] }
 0x16c   : > { %7351 = vmatprep.mubr.f32.mxu0 %v10328_v7  ;;  %8654 = vmatpush3.bf16.msra.mxu0 %v8651_v34  ;;  %v11431_v7 = vld [vmem:[#allocation21_spill] sm:$0xff]  ;;  %v8703_v34 = vpack.c.bf16 %v2267_v18, %v2266_v39 }
 0x16d   : > { %8656 = vmatprep.subr.bf16.mxu0 %v8655_v43  ;;  %v2235_v39 = vld [vmem:[#allocation2 + $0xe7] sm:$0xff] }
 0x16f   : > { %7352 = vmatmul.mubr.f32.gmra.mrb[16].mxu0 %v10332_v10  ;;  %v10530_v10 = vld [vmem:[#allocation2 + $0x207] sm:$0xff] }
 0x170   : > { %7354 = vmatprep.mubr.f32.mxu0 %v10334_v11  ;;  %v11432_v11 = vld [vmem:[#allocation22_spill] sm:$0xff] }
 0x173   : > { %7355 = vmatmul.mubr.f32.gmra.mrb[18].mxu0 %v10338_v12  ;;  %v10534_v12 = vld [vmem:[#allocation2 + $0x20f] sm:$0xff] }
 0x174   : > { %7357 = vmatprep.mubr.f32.mxu0 %v10340_v23  ;;  %v1953_v23 = vld [vmem:[#allocation6 + $0x290] sm:$0xff] }
 0x177   : > { %7358 = vmatmul.mubr.f32.gmra.mrb[20].mxu0 %v10344_v29  ;;  %v1954_v29 = vld [vmem:[#allocation6 + $0x298] sm:$0xff] }
 0x178   : > { %7360 = vmatprep.mubr.f32.mxu0 %v11425_v44  ;;  %v8659_v63 = vpack.c.bf16 %v1954_v29, %v1953_v23  ;;  %v11445_v44 = vld [vmem:[#allocation33_spill] sm:$0xff]  ;;  %v2565_v29 = vld [vmem:[#allocation6 + $0x388] sm:$0xff] }
 0x179   : > { %v2564_v23 = vld [vmem:[#allocation6 + $0x380] sm:$0xff] }
 0x17b   : > { %7361 = vmatmul.mubr.f32.gmra.mrb[22].mxu0 %v11426_v58  ;;  %v8707_v58 = vpack.c.bf16 %v2269_v33, %v2268_v37  ;;  %v2237_v37 = vld [vmem:[#allocation2 + $0x107] sm:$0xff] }
 0x17c   : > { %7363 = vmatprep.mubr.f32.mxu0 %v11427_v59  ;;  %v2270_v59 = vld [vmem:[#allocation6 + $0x360] sm:$0xff] }
 0x17f   : > { %7364 = vmatmul.mubr.f32.gmra.mrb[24].mxu0 %v11428_v1  ;;  %v2271_v1 = vld [vmem:[#allocation6 + $0x368] sm:$0xff] }
 0x180   : > { %7366 = vmatprep.mubr.f32.mxu0 %v11429_v2  ;;  %v8711_v2 = vpack.c.bf16 %v2271_v1, %v2270_v59  ;;  %v2239_v59 = vld [vmem:[#allocation2 + $0x127] sm:$0xff] }
 0x183   : > { %7367 = vmatmul.mubr.f32.gmra.mrb[26].mxu0 %v11430_v6  ;;  %v2272_v6 = vld [vmem:[#allocation6 + $0x370] sm:$0xff] }
 0x184   : > { %7369 = vmatprep.mubr.f32.mxu0 %v11431_v7  ;;  %v2273_v7 = vld [vmem:[#allocation6 + $0x378] sm:$0xff] }
 0x187   : > { %7370 = vmatmul.mubr.f32.gmra.mrb[28].mxu0 %v11432_v11  ;;  %v8715_v11 = vpack.c.bf16 %v2273_v7, %v2272_v6  ;;  %v2871_v6 = vld [vmem:[#allocation6 + $0x408] sm:$0xff] }
 0x188   : > { %7372 = vmatprep.mubr.f32.mxu0 %v10530_v10  ;;  %v2240_v7 = vld [vmem:[#allocation2 + $0x12f] sm:$0xff] }
 0x18b   : > { %7373 = vmatmul.mubr.f32.gmra.mrb[30].mxu0 %v10534_v12 }
 0x18c   : > { %7407 = vmatprep.mubr.f32.mxu0 %v10162_v13  ;;  %v1959_v13 = vld [vmem:[#allocation6 + $0x2c0] sm:$0xff] }
 0x18f   : > { %7408 = vmatmul.mubr.f32.vlgmr.msra.gmra.mrb[0].mxu0 %v10166_v14  ;;  %v8671_v14 = vpack.c.bf16 %v1960_v3, %v1959_v13  ;;  %v11456_v13 = vld [vmem:[#allocation44_spill] sm:$0xff]  ;;  %v11457_v3 = vld [vmem:[#allocation45_spill] sm:$0xff] }
 0x190   : > { %8658 = vmatpush3.bf16.msra.mxu0 %v8655_v43  ;;  %7410 = vmatprep.mubr.f32.mxu0 %v10169_v15  ;;  %v1961_v15 = vld [vmem:[#allocation6 + $0x2d0] sm:$0xff]  ;;  %v11444_v43 = vld [vmem:[#allocation32_spill] sm:$0xff] }
 0x191   : > { %8660 = vmatprep.subr.bf16.mxu0 %v8659_v63 }
 0x193   : > { %7411 = vmatmul.mubr.f32.gmra.mrb[2].mxu0 %v10172_v16  ;;  %v8675_v16 = vpack.c.bf16 %v1962_v4, %v1961_v15  ;;  %v11459_v15 = vld [vmem:[#allocation47_spill] sm:$0xff]  ;;  %v11460_v4 = vld [vmem:[#allocation48_spill] sm:$0xff] }
 0x194   : > { %7413 = vmatprep.mubr.f32.mxu0 %v10178_v17  ;;  %8662 = vmatpush3.bf16.msra.mxu0 %v8659_v63  ;;  %v1963_v17 = vld [vmem:[#allocation6 + $0x2e0] sm:$0xff]  ;;  %v11446_v63 = vld [vmem:[#allocation34_spill] sm:$0xff] }
 0x195   : > { %8664 = vmatprep.subr.bf16.mxu0 %v8663_v56 }
 0x197   : > { %7414 = vmatmul.mubr.f32.gmra.mrb[4].mxu0 %v10182_v19  ;;  %v8679_v19 = vpack.c.bf16 %v1964_v38, %v1963_v17  ;;  %v10598_v17 = vld [vmem:[#allocation2 + $0x209] sm:$0xff] }
 0x198   : > { %7416 = vmatprep.mubr.f32.mxu0 %v10185_v20  ;;  %8666 = vmatpush3.bf16.msra.mxu0 %v8663_v56  ;;  %v1965_v20 = vld [vmem:[#allocation6 + $0x2f0] sm:$0xff]  ;;  %v11452_v56 = vld [vmem:[#allocation40_spill] sm:$0xff]  ;;  %v11462_v38 = vld [vmem:[#allocation50_spill] sm:$0xff] }
 0x199   : > { %8668 = vmatprep.subr.bf16.mxu0 %v8667_v60 }
 0x19b   : > { %7417 = vmatmul.mubr.f32.gmra.mrb[6].mxu0 %v10188_v21  ;;  %v8683_v21 = vpack.c.bf16 %v1966_v8, %v1965_v20  ;;  %v2225_v20 = vld [vmem:[#allocation2 + $0x47] sm:$0xff]  ;;  %v2566_v8 = vld [vmem:[#allocation6 + $0x390] sm:$0xff] }
 0x19c   : > { %7419 = vmatprep.mubr.f32.mxu0 %v10194_v24  ;;  %8670 = vmatpush3.bf16.msra.mxu0 %v8667_v60  ;;  %v2258_v24 = vld [vmem:[#allocation6 + $0x300] sm:$0xff]  ;;  %v11455_v60 = vld [vmem:[#allocation43_spill] sm:$0xff] }
 0x19d   : > { %8672 = vmatprep.subr.bf16.mxu0 %v8671_v14 }
 0x19f   : > { %7420 = vmatmul.mubr.f32.gmra.mrb[8].mxu0 %v10198_v25  ;;  %v8687_v25 = vpack.c.bf16 %v2259_v9, %v2258_v24  ;;  %v2226_v24 = vld [vmem:[#allocation2 + $0x4f] sm:$0xff]  ;;  %v2227_v9 = vld [vmem:[#allocation2 + $0x67] sm:$0xff] }
 0x1a0   : > { %7422 = vmatprep.mubr.f32.mxu0 %v10201_v26  ;;  %8674 = vmatpush3.bf16.msra.mxu0 %v8671_v14  ;;  %v11433_v26 = vld [vmem:[#allocation13_spill] sm:$0xff]  ;;  %v11458_v14 = vld [vmem:[#allocation46_spill] sm:$0xff] }
 0x1a1   : > { %8676 = vmatprep.subr.bf16.mxu0 %v8675_v16 }
 0x1a3   : > { %7423 = vmatmul.mubr.f32.gmra.mrb[10].mxu0 %v10204_v27  ;;  %v11434_v27 = vld [vmem:[#allocation14_spill] sm:$0xff] }
 0x1a4   : > { %7425 = vmatprep.mubr.f32.mxu0 %v10210_v28  ;;  %8678 = vmatpush3.bf16.msra.mxu0 %v8675_v16  ;;  %v11435_v28 = vld [vmem:[#allocation23_spill] sm:$0xff]  ;;  %v11461_v16 = vld [vmem:[#allocation49_spill] sm:$0xff] }
 0x1a5   : > { %8680 = vmatprep.subr.bf16.mxu0 %v8679_v19 }
 0x1a7   : > { %7426 = vmatmul.mubr.f32.gmra.mrb[12].mxu0 %v10214_v30  ;;  %v2260_v30 = vld [vmem:[#allocation6 + $0x310] sm:$0xff] }
 0x1a8   : > { %7428 = vmatprep.mubr.f32.mxu0 %v10217_v31  ;;  %8682 = vmatpush3.bf16.msra.mxu0 %v8679_v19  ;;  %v2261_v31 = vld [vmem:[#allocation6 + $0x318] sm:$0xff] }
 0x1a9   : > { %8684 = vmatprep.subr.bf16.mxu0 %v8683_v21  ;;  %v10602_v19 = vld [vmem:[#allocation2 + $0x211] sm:$0xff] }
 0x1ab   : > { %7429 = vmatmul.mubr.f32.gmra.mrb[14].mxu0 %v10220_v32  ;;  %v11436_v32 = vld [vmem:[#allocation24_spill] sm:$0xff] }
 0x1ac   : > { %7431 = vmatprep.mubr.f32.mxu0 %v10226_v35  ;;  %8686 = vmatpush3.bf16.msra.mxu0 %v8683_v21  ;;  %v11437_v35 = vld [vmem:[#allocation25_spill] sm:$0xff]  ;;  %v2567_v21 = vld [vmem:[#allocation6 + $0x398] sm:$0xff] }
 0x1ad   : > { %8688 = vmatprep.subr.bf16.mxu0 %v8687_v25 }
 0x1af   : > { %7432 = vmatmul.mubr.f32.gmra.mrb[16].mxu0 %v10229_v36  ;;  %v8691_v36 = vpack.c.bf16 %v2261_v31, %v2260_v30  ;;  %v2229_v30 = vld [vmem:[#allocation2 + $0x87] sm:$0xff] }
 0x1b0   : > { %7434 = vmatprep.mubr.f32.mxu0 %v10234_v40  ;;  %v2262_v40 = vld [vmem:[#allocation6 + $0x320] sm:$0xff] }
 0x1b3   : > { %7435 = vmatmul.mubr.f32.gmra.mrb[18].mxu0 %v10237_v41  ;;  %v2263_v41 = vld [vmem:[#allocation6 + $0x328] sm:$0xff] }
 0x1b4   : > { %7437 = vmatprep.mubr.f32.mxu0 %v10242_v45  ;;  %v11438_v45 = vld [vmem:[#allocation26_spill] sm:$0xff] }
 0x1b7   : > { %7438 = vmatmul.mubr.f32.gmra.mrb[20].mxu0 %v10245_v46  ;;  %v11439_v46 = vld [vmem:[#allocation27_spill] sm:$0xff] }
 0x1b8   : > { %7440 = vmatprep.mubr.f32.mxu0 %v10248_v47  ;;  %v8695_v47 = vpack.c.bf16 %v2263_v41, %v2262_v40  ;;  %v2231_v40 = vld [vmem:[#allocation2 + $0xa7] sm:$0xff] }
 0x1bb   : > { %7441 = vmatmul.mubr.f32.gmra.mrb[22].mxu0 %v10254_v48  ;;  %v2264_v48 = vld [vmem:[#allocation6 + $0x330] sm:$0xff] }
 0x1bc   : > { %7443 = vmatprep.mubr.f32.mxu0 %v10258_v49  ;;  %v2265_v49 = vld [vmem:[#allocation6 + $0x338] sm:$0xff] }
 0x1bf   : > { %7444 = vmatmul.mubr.f32.gmra.mrb[24].mxu0 %v10262_v51  ;;  %v11440_v51 = vld [vmem:[#allocation28_spill] sm:$0xff] }
 0x1c0   : > { %7446 = vmatprep.mubr.f32.mxu0 %v10265_v52  ;;  %v11441_v52 = vld [vmem:[#allocation29_spill] sm:$0xff] }
 0x1c3   : > { %7447 = vmatmul.mubr.f32.gmra.mrb[26].mxu0 %v11433_v26  ;;  %v2568_v26 = vld [vmem:[#allocation6 + $0x3a0] sm:$0xff] }
 0x1c4   : > { %7449 = vmatprep.mubr.f32.mxu0 %v11434_v27  ;;  %v2569_v27 = vld [vmem:[#allocation6 + $0x3a8] sm:$0xff] }
 0x1c5   : > { %v8727_v31 = vpack.c.bf16 %v2569_v27, %v2568_v26  ;;  %v2875_v26 = vld [vmem:[#allocation6 + $0x428] sm:$0xff] }
 0x1c6   : > { %v3251_v27 = vld [vmem:[#allocation8 + $0x28] sm:$0xff] }
 0x1c7   : > { %7450 = vmatmul.mubr.f32.gmra.mrb[28].mxu0 %v10277_v57  ;;  %v8699_v57 = vpack.c.bf16 %v2265_v49, %v2264_v48  ;;  %v2233_v48 = vld [vmem:[#allocation2 + $0xc7] sm:$0xff] }
 0x1c8   : > { %7452 = vmatprep.mubr.f32.mxu0 %v11435_v28  ;;  %v2228_v28 = vld [vmem:[#allocation2 + $0x6f] sm:$0xff] }
 0x1cb   : > { %7453 = vmatmul.mubr.f32.gmra.mrb[30].mxu0 %v11436_v32  ;;  %v2570_v32 = vld [vmem:[#allocation6 + $0x3b0] sm:$0xff] }
 0x1cc   : > { %7487 = vmatprep.mubr.f32.mxu0 %v11437_v35  ;;  %v2571_v35 = vld [vmem:[#allocation6 + $0x3b8] sm:$0xff] }
 0x1cd   : > { %v8731_v41 = vpack.c.bf16 %v2571_v35, %v2570_v32  ;;  %v2876_v32 = vld [vmem:[#allocation6 + $0x430] sm:$0xff] }
 0x1cf   : > { %7488 = vmatmul.mubr.f32.vlgmr.msra.gmra.mrb[0].mxu0 %v11438_v45  ;;  %v2572_v45 = vld [vmem:[#allocation6 + $0x3c0] sm:$0xff] }
 0x1d0   : > { %8690 = vmatpush3.bf16.msra.mxu0 %v8687_v25  ;;  %7490 = vmatprep.mubr.f32.mxu0 %v11439_v46  ;;  %v8723_v25 = vpack.c.bf16 %v2567_v21, %v2566_v8  ;;  %v2573_v46 = vld [vmem:[#allocation6 + $0x3c8] sm:$0xff]  ;;  %v3249_v21 = vld [vmem:[#allocation8 + $0x18] sm:$0xff] }
 0x1d1   : > { %8692 = vmatprep.subr.bf16.mxu0 %v8691_v36  ;;  %v8735_v49 = vpack.c.bf16 %v2573_v46, %v2572_v45  ;;  %v2536_v45 = vld [vmem:[#allocation2 + $0x90] sm:$0xff]  ;;  %v2537_v46 = vld [vmem:[#allocation2 + $0xa8] sm:$0xff] }
 0x1d3   : > { %7491 = vmatmul.mubr.f32.gmra.mrb[2].mxu0 %v11440_v51  ;;  %v2574_v51 = vld [vmem:[#allocation6 + $0x3d0] sm:$0xff] }
 0x1d4   : > { %7493 = vmatprep.mubr.f32.mxu0 %v11441_v52  ;;  %8694 = vmatpush3.bf16.msra.mxu0 %v8691_v36  ;;  %v2230_v36 = vld [vmem:[#allocation2 + $0x8f] sm:$0xff]  ;;  %v2575_v52 = vld [vmem:[#allocation6 + $0x3d8] sm:$0xff] }
 0x1d5   : > { %8696 = vmatprep.subr.bf16.mxu0 %v8695_v47  ;;  %v8739_v18 = vpack.c.bf16 %v2575_v52, %v2574_v51  ;;  %v2879_v51 = vld [vmem:[#allocation6 + $0x448] sm:$0xff]  ;;  %v3254_v52 = vld [vmem:[#allocation8 + $0x40] sm:$0xff] }
 0x1d7   : > { %7494 = vmatmul.mubr.f32.gmra.mrb[4].mxu0 %v11442_v22  ;;  %v2576_v22 = vld [vmem:[#allocation6 + $0x3e0] sm:$0xff] }
 0x1d8   : > { %7496 = vmatprep.mubr.f32.mxu0 %v11443_v42  ;;  %8698 = vmatpush3.bf16.msra.mxu0 %v8695_v47  ;;  %v2232_v47 = vld [vmem:[#allocation2 + $0xaf] sm:$0xff] }
 0x1d9   : > { %8700 = vmatprep.subr.bf16.mxu0 %v8699_v57  ;;  %v2577_v42 = vld [vmem:[#allocation6 + $0x3e8] sm:$0xff] }
 0x1da   : > { %v8743_v33 = vpack.c.bf16 %v2577_v42, %v2576_v22  ;;  %v2880_v42 = vld [vmem:[#allocation6 + $0x450] sm:$0xff] }
 0x1db   : > { %7497 = vmatmul.mubr.f32.gmra.mrb[6].mxu0 %v11444_v43  ;;  %v2578_v43 = vld [vmem:[#allocation6 + $0x3f0] sm:$0xff] }
 0x1dc   : > { %7499 = vmatprep.mubr.f32.mxu0 %v11445_v44  ;;  %8702 = vmatpush3.bf16.msra.mxu0 %v8699_v57  ;;  %v2234_v57 = vld [vmem:[#allocation2 + $0xcf] sm:$0xff]  ;;  %v2579_v44 = vld [vmem:[#allocation6 + $0x3f8] sm:$0xff] }
 0x1dd   : > { %8704 = vmatprep.subr.bf16.mxu0 %v8703_v34  ;;  %v8747_v1 = vpack.c.bf16 %v2579_v44, %v2578_v43  ;;  %v3257_v43 = vld [vmem:[#allocation8 + $0x58] sm:$0xff]  ;;  %v2540_v44 = vld [vmem:[#allocation2 + $0xd0] sm:$0xff] }
 0x1df   : > { %7500 = vmatmul.mubr.f32.gmra.mrb[8].mxu0 %v10438_v5  ;;  %v8719_v5 = vpack.c.bf16 %v2565_v29, %v2564_v23  ;;  %v2242_v29 = vld [vmem:[#allocation2 + $0x14f] sm:$0xff] }
 0x1e0   : > { %7502 = vmatprep.mubr.f32.mxu0 %v10440_v50  ;;  %8706 = vmatpush3.bf16.msra.mxu0 %v8703_v34  ;;  %v11448_v50 = vld [vmem:[#allocation36_spill] sm:$0xff]  ;;  %v2236_v34 = vld [vmem:[#allocation2 + $0xef] sm:$0xff] }
 0x1e1   : > { %8708 = vmatprep.subr.bf16.mxu0 %v8707_v58 }
 0x1e3   : > { %7503 = vmatmul.mubr.f32.gmra.mrb[10].mxu0 %v10444_v55  ;;  %v11450_v55 = vld [vmem:[#allocation38_spill] sm:$0xff] }
 0x1e4   : > { %7505 = vmatprep.mubr.f32.mxu0 %v10446_v61  ;;  %8710 = vmatpush3.bf16.msra.mxu0 %v8707_v58  ;;  %v11451_v61 = vld [vmem:[#allocation39_spill] sm:$0xff] }
 0x1e5   : > { %8712 = vmatprep.subr.bf16.mxu0 %v8711_v2  ;;  %v2238_v58 = vld [vmem:[#allocation2 + $0x10f] sm:$0xff] }
 0x1e7   : > { %7506 = vmatmul.mubr.f32.gmra.mrb[12].mxu0 %v11446_v63  ;;  %v2243_v63 = vld [vmem:[#allocation2 + $0x167] sm:$0xff] }
 0x1e8   : > { %7508 = vmatprep.mubr.f32.mxu0 %v11447_v54  ;;  %8714 = vmatpush3.bf16.msra.mxu0 %v8711_v2  ;;  %v2870_v2 = vld [vmem:[#allocation6 + $0x400] sm:$0xff]  ;;  %v2244_v54 = vld [vmem:[#allocation2 + $0x16f] sm:$0xff] }
 0x1e9   : > { %8716 = vmatprep.subr.bf16.mxu0 %v8715_v11  ;;  %v8751_v23 = vpack.c.bf16 %v2871_v6, %v2870_v2  ;;  %v2882_v2 = vld [vmem:[#allocation6 + $0x460] sm:$0xff]  ;;  %v2883_v6 = vld [vmem:[#allocation6 + $0x468] sm:$0xff] }
 0x1eb   : > { %7509 = vmatmul.mubr.f32.gmra.mrb[14].mxu0 %v11448_v50  ;;  %v2246_v50 = vld [vmem:[#allocation2 + $0x18f] sm:$0xff] }
 0x1ec   : > { %7511 = vmatprep.mubr.f32.mxu0 %v11449_v53  ;;  %8718 = vmatpush3.bf16.msra.mxu0 %v8715_v11  ;;  %v2241_v11 = vld [vmem:[#allocation2 + $0x147] sm:$0xff] }
 0x1ed   : > { %8720 = vmatprep.subr.bf16.mxu0 %v8719_v5  ;;  %v2247_v53 = vld [vmem:[#allocation2 + $0x1a7] sm:$0xff] }
 0x1ef   : > { %7512 = vmatmul.mubr.f32.gmra.mrb[16].mxu0 %v11450_v55  ;;  %v2248_v55 = vld [vmem:[#allocation2 + $0x1af] sm:$0xff] }
 0x1f0   : > { %7514 = vmatprep.mubr.f32.mxu0 %v11451_v61  ;;  %v2249_v61 = vld [vmem:[#allocation2 + $0x1c7] sm:$0xff] }
 0x1f3   : > { %7515 = vmatmul.mubr.f32.gmra.mrb[18].mxu0 %v11452_v56  ;;  %v2250_v56 = vld [vmem:[#allocation2 + $0x1cf] sm:$0xff] }
 0x1f4   : > { %7517 = vmatprep.mubr.f32.mxu0 %v11453_v0  ;;  %v2251_v0 = vld [vmem:[#allocation2 + $0x1e7] sm:$0xff] }
 0x1f7   : > { %7518 = vmatmul.mubr.f32.gmra.mrb[20].mxu0 %v11454_v62  ;;  %v2252_v62 = vld [vmem:[#allocation2 + $0x1ef] sm:$0xff] }
 0x1f8   : > { %7520 = vmatprep.mubr.f32.mxu0 %v11455_v60  ;;  %v2255_v60 = vld [vmem:[#allocation2 + $0x227] sm:$0xff] }
 0x1fb   : > { %7521 = vmatmul.mubr.f32.gmra.mrb[22].mxu0 %v11456_v13  ;;  %v2256_v13 = vld [vmem:[#allocation2 + $0x22f] sm:$0xff] }
 0x1fc   : > { %7523 = vmatprep.mubr.f32.mxu0 %v11457_v3  ;;  %v2531_v3 = vld [vmem:[#allocation2 + $0x48] sm:$0xff] }
 0x1ff   : > { %7524 = vmatmul.mubr.f32.gmra.mrb[24].mxu0 %v11458_v14  ;;  %v2872_v14 = vld [vmem:[#allocation6 + $0x410] sm:$0xff] }
 0x200   : > { %7526 = vmatprep.mubr.f32.mxu0 %v11459_v15  ;;  %v2873_v15 = vld [vmem:[#allocation6 + $0x418] sm:$0xff] }
 0x203   : > { %7527 = vmatmul.mubr.f32.gmra.mrb[26].mxu0 %v11460_v4  ;;  %v3246_v4 = vld [vmem:[#allocation8] sm:$0xff] }
 0x204   : > { %7529 = vmatprep.mubr.f32.mxu0 %v11461_v16  ;;  %v3247_v16 = vld [vmem:[#allocation8 + $0x8] sm:$0xff] }
 0x205   : > { %v8783_v8 = vpack.c.bf16 %v3247_v16, %v3246_v4  ;;  %v2557_v4 = vld [vmem:[#allocation2 + $0x1e8] sm:$0xff]  ;;  %v2558_v16 = vld [vmem:[#allocation2 + $0x1f0] sm:$0xff] }
 0x207   : > { %7530 = vmatmul.mubr.f32.gmra.mrb[28].mxu0 %v11462_v38  ;;  %v3248_v38 = vld [vmem:[#allocation8 + $0x10] sm:$0xff]  ;;  %8784 = vmatprep.subr.bf16.mxu1 %v8783_v8 }
 0x208   : > { %7532 = vmatprep.mubr.f32.mxu0 %v10598_v17  ;;  %8786 = vmatpush3.bf16.msra.mxu1 %v8783_v8  ;;  %v10607_v8 = vld [vmem:[#allocation2 + $0x8] sm:$0xff] }
 0x20b   : > { %7533 = vmatmul.mubr.f32.gmra.mrb[30].mxu0 %v10602_v19 }
 0x20c   : > { %7567 = vmatprep.mubr.f32.mxu0 %v2225_v20  ;;  %v2532_v20 = vld [vmem:[#allocation2 + $0x50] sm:$0xff] }
 0x20f   : > { %7568 = vmatmul.mubr.f32.vlgmr.msra.gmra.mrb[0].mxu0 %v2226_v24  ;;  %v2533_v24 = vld [vmem:[#allocation2 + $0x68] sm:$0xff] }
 0x210   : > { %8722 = vmatpush3.bf16.msra.mxu0 %v8719_v5  ;;  %7570 = vmatprep.mubr.f32.mxu0 %v2227_v9  ;;  %v2245_v5 = vld [vmem:[#allocation2 + $0x187] sm:$0xff]  ;;  %v8755_v9 = vpack.c.bf16 %v2873_v15, %v2872_v14  ;;  %v2556_v15 = vld [vmem:[#allocation2 + $0x1d0] sm:$0xff] }
 0x211   : > { %8724 = vmatprep.subr.bf16.mxu0 %v8723_v25  ;;  %v2555_v14 = vld [vmem:[#allocation2 + $0x1c8] sm:$0xff] }
 0x213   : > { %7571 = vmatmul.mubr.f32.gmra.mrb[2].mxu0 %v2228_v28  ;;  %v2534_v28 = vld [vmem:[#allocation2 + $0x70] sm:$0xff] }
 0x214   : > { %7573 = vmatprep.mubr.f32.mxu0 %v2229_v30  ;;  %8726 = vmatpush3.bf16.msra.mxu0 %v8723_v25  ;;  %v2874_v25 = vld [vmem:[#allocation6 + $0x420] sm:$0xff]  ;;  %v2535_v30 = vld [vmem:[#allocation2 + $0x88] sm:$0xff] }
 0x215   : > { %8728 = vmatprep.subr.bf16.mxu0 %v8727_v31 }
 0x217   : > { %7574 = vmatmul.mubr.f32.gmra.mrb[4].mxu0 %v2230_v36  ;;  %v2877_v36 = vld [vmem:[#allocation6 + $0x438] sm:$0xff] }
 0x218   : > { %7576 = vmatprep.mubr.f32.mxu0 %v2231_v40  ;;  %8730 = vmatpush3.bf16.msra.mxu0 %v8727_v31  ;;  %v8759_v31 = vpack.c.bf16 %v2875_v26, %v2874_v25  ;;  %v3252_v40 = vld [vmem:[#allocation8 + $0x30] sm:$0xff] }
 0x219   : > { %8732 = vmatprep.subr.bf16.mxu0 %v8731_v41  ;;  %v2840_v25 = vld [vmem:[#allocation2 + $0x71] sm:$0xff] }
 0x21a   : > { %v2842_v26 = vld [vmem:[#allocation2 + $0x91] sm:$0xff] }
 0x21b   : > { %7577 = vmatmul.mubr.f32.gmra.mrb[6].mxu0 %v2232_v47  ;;  %v8763_v47 = vpack.c.bf16 %v2877_v36, %v2876_v32  ;;  %v2848_v32 = vld [vmem:[#allocation2 + $0xf1] sm:$0xff] }
 0x21c   : > { %7579 = vmatprep.mubr.f32.mxu0 %v2233_v48  ;;  %8734 = vmatpush3.bf16.msra.mxu0 %v8731_v41  ;;  %v3253_v41 = vld [vmem:[#allocation8 + $0x38] sm:$0xff]  ;;  %v2878_v48 = vld [vmem:[#allocation6 + $0x440] sm:$0xff] }
 0x21d   : > { %8736 = vmatprep.subr.bf16.mxu0 %v8735_v49  ;;  %v8767_v22 = vpack.c.bf16 %v2879_v51, %v2878_v48  ;;  %v2850_v36 = vld [vmem:[#allocation2 + $0x111] sm:$0xff] }
 0x21e   : > { %v2856_v48 = vld [vmem:[#allocation2 + $0x171] sm:$0xff] }
 0x21f   : > { %7580 = vmatmul.mubr.f32.gmra.mrb[8].mxu0 %v2234_v57  ;;  %v3255_v57 = vld [vmem:[#allocation8 + $0x48] sm:$0xff]  ;;  %v2858_v51 = vld [vmem:[#allocation2 + $0x191] sm:$0xff] }
 0x220   : > { %7582 = vmatprep.mubr.f32.mxu0 %v2235_v39  ;;  %8738 = vmatpush3.bf16.msra.mxu0 %v8735_v49  ;;  %v8795_v49 = vpack.c.bf16 %v3253_v41, %v3252_v40  ;;  %v2538_v39 = vld [vmem:[#allocation2 + $0xb0] sm:$0xff] }
 0x221   : > { %8740 = vmatprep.subr.bf16.mxu0 %v8739_v18  ;;  %v2851_v40 = vld [vmem:[#allocation2 + $0x129] sm:$0xff]  ;;  %v2852_v41 = vld [vmem:[#allocation2 + $0x131] sm:$0xff] }
 0x223   : > { %7583 = vmatmul.mubr.f32.gmra.mrb[10].mxu0 %v2236_v34  ;;  %v8799_v34 = vpack.c.bf16 %v3255_v57, %v3254_v52  ;;  %v2859_v52 = vld [vmem:[#allocation2 + $0x1a9] sm:$0xff]  ;;  %v2860_v57 = vld [vmem:[#allocation2 + $0x1b1] sm:$0xff] }
 0x224   : > { %7585 = vmatprep.mubr.f32.mxu0 %v2237_v37  ;;  %8742 = vmatpush3.bf16.msra.mxu0 %v8739_v18  ;;  %v2539_v18 = vld [vmem:[#allocation2 + $0xc8] sm:$0xff]  ;;  %v2881_v37 = vld [vmem:[#allocation6 + $0x458] sm:$0xff] }
 0x225   : > { %8744 = vmatprep.subr.bf16.mxu0 %v8743_v33 }
 0x227   : > { %7586 = vmatmul.mubr.f32.gmra.mrb[12].mxu0 %v2238_v58  ;;  %v2541_v58 = vld [vmem:[#allocation2 + $0xe8] sm:$0xff] }
 0x228   : > { %7588 = vmatprep.mubr.f32.mxu0 %v2239_v59  ;;  %8746 = vmatpush3.bf16.msra.mxu0 %v8743_v33  ;;  %v3256_v33 = vld [vmem:[#allocation8 + $0x50] sm:$0xff]  ;;  %v8771_v59 = vpack.c.bf16 %v2881_v37, %v2880_v42 }
 0x229   : > { %8748 = vmatprep.subr.bf16.mxu0 %v8747_v1  ;;  %v2864_v42 = vld [vmem:[#allocation2 + $0x1f1] sm:$0xff] }
 0x22a   : > { %v2868_v37 = vld [vmem:[#allocation2 + $0x231] sm:$0xff] }
 0x22b   : > { %7589 = vmatmul.mubr.f32.gmra.mrb[14].mxu0 %v2240_v7  ;;  %v2542_v7 = vld [vmem:[#allocation2 + $0xf0] sm:$0xff] }
 0x22c   : > { %7591 = vmatprep.mubr.f32.mxu0 %v2241_v11  ;;  %8750 = vmatpush3.bf16.msra.mxu0 %v8747_v1  ;;  %v8803_v1 = vpack.c.bf16 %v3257_v43, %v3256_v33  ;;  %v2543_v11 = vld [vmem:[#allocation2 + $0x108] sm:$0xff]  ;;  %v3258_v33 = vld [vmem:[#allocation8 + $0x60] sm:$0xff] }
 0x22d   : > { %8752 = vmatprep.subr.bf16.mxu0 %v8751_v23  ;;  %v3259_v43 = vld [vmem:[#allocation8 + $0x68] sm:$0xff] }
 0x22f   : > { %7592 = vmatmul.mubr.f32.gmra.mrb[16].mxu0 %v2242_v29  ;;  %v2884_v29 = vld [vmem:[#allocation6 + $0x470] sm:$0xff] }
 0x230   : > { %7594 = vmatprep.mubr.f32.mxu0 %v2243_v63  ;;  %v2885_v63 = vld [vmem:[#allocation6 + $0x478] sm:$0xff] }
 0x233   : > { %7595 = vmatmul.mubr.f32.gmra.mrb[18].mxu0 %v2244_v54  ;;  %v2544_v54 = vld [vmem:[#allocation2 + $0x110] sm:$0xff] }
 0x234   : > { %7597 = vmatprep.mubr.f32.mxu0 %v2245_v5  ;;  %v2545_v5 = vld [vmem:[#allocation2 + $0x128] sm:$0xff] }
 0x237   : > { %7598 = vmatmul.mubr.f32.gmra.mrb[20].mxu0 %v2246_v50  ;;  %v8779_v50 = vpack.c.bf16 %v2885_v63, %v2884_v29  ;;  %v3556_v63 = vld [vmem:[#allocation8 + $0xa0] sm:$0xff] }
 0x238   : > { %7600 = vmatprep.mubr.f32.mxu0 %v2247_v53  ;;  %v2546_v53 = vld [vmem:[#allocation2 + $0x130] sm:$0xff] }
 0x23b   : > { %7601 = vmatmul.mubr.f32.gmra.mrb[22].mxu0 %v2248_v55  ;;  %v2547_v55 = vld [vmem:[#allocation2 + $0x148] sm:$0xff] }
 0x23c   : > { %7603 = vmatprep.mubr.f32.mxu0 %v2249_v61  ;;  %v2548_v61 = vld [vmem:[#allocation2 + $0x150] sm:$0xff] }
 0x23f   : > { %7604 = vmatmul.mubr.f32.gmra.mrb[24].mxu0 %v2250_v56  ;;  %v2549_v56 = vld [vmem:[#allocation2 + $0x168] sm:$0xff] }
 0x240   : > { %7606 = vmatprep.mubr.f32.mxu0 %v2251_v0  ;;  %v2550_v0 = vld [vmem:[#allocation2 + $0x170] sm:$0xff] }
 0x243   : > { %7607 = vmatmul.mubr.f32.gmra.mrb[26].mxu0 %v2252_v62  ;;  %v2551_v62 = vld [vmem:[#allocation2 + $0x188] sm:$0xff] }
 0x244   : > { %7609 = vmatprep.mubr.f32.mxu0 %v10530_v10  ;;  %v8787_v10 = vpack.c.bf16 %v3249_v21, %v3248_v38  ;;  %v9719_v38 = vld [vmem:[#allocation2 + $0x208] sm:$0xff] }
 0x245   : > { %v2837_v21 = vld [vmem:[#allocation2 + $0x49] sm:$0xff] }
 0x246   : > { %8788 = vmatprep.subr.bf16.mxu1 %v8787_v10 }
 0x247   : > { %7610 = vmatmul.mubr.f32.gmra.mrb[28].mxu0 %v10534_v12  ;;  %v3250_v12 = vld [vmem:[#allocation8 + $0x20] sm:$0xff]  ;;  %8790 = vmatpush3.bf16.msra.mxu1 %v8787_v10  ;;  %v2841_v10 = vld [vmem:[#allocation2 + $0x89] sm:$0xff] }
 0x248   : > { %7612 = vmatprep.mubr.f32.mxu0 %v2255_v60  ;;  %v8791_v35 = vpack.c.bf16 %v3251_v27, %v3250_v12  ;;  %v2552_v60 = vld [vmem:[#allocation2 + $0x190] sm:$0xff] }
 0x249   : > { %v2843_v12 = vld [vmem:[#allocation2 + $0xa9] sm:$0xff]  ;;  %v2844_v27 = vld [vmem:[#allocation2 + $0xb1] sm:$0xff] }
 0x24a   : > { %8792 = vmatprep.subr.bf16.mxu1 %v8791_v35 }
 0x24b   : > { %7613 = vmatmul.mubr.f32.gmra.mrb[30].mxu0 %v2256_v13  ;;  %8794 = vmatpush3.bf16.msra.mxu1 %v8791_v35  ;;  %v2553_v13 = vld [vmem:[#allocation2 + $0x1a8] sm:$0xff] }
 0x24c   : > { %7647 = vmatprep.mubr.f32.mxu0 %v2531_v3  ;;  %8796 = vmatprep.subr.bf16.mxu1 %v8795_v49  ;;  %v2554_v3 = vld [vmem:[#allocation2 + $0x1b0] sm:$0xff] }
 0x24d   : > { %v2849_v35 = vld [vmem:[#allocation2 + $0x109] sm:$0xff] }
 0x24f   : > { %7648 = vmatmul.mubr.f32.vlgmr.msra.gmra.mrb[0].mxu0 %v2532_v20  ;;  %8798 = vmatpush3.bf16.msra.mxu1 %v8795_v49  ;;  %v9720_v20 = vld [vmem:[#allocation2 + $0x210] sm:$0xff] }
 0x250   : > { %8754 = vmatpush3.bf16.msra.mxu0 %v8751_v23  ;;  %7650 = vmatprep.mubr.f32.mxu0 %v2533_v24  ;;  %v8775_v23 = vpack.c.bf16 %v2883_v6, %v2882_v2  ;;  %v2838_v24 = vld [vmem:[#allocation2 + $0x51] sm:$0xff]  ;;  %v2857_v49 = vld [vmem:[#allocation2 + $0x189] sm:$0xff] }
 0x251   : > { %8756 = vmatprep.subr.bf16.mxu0 %v8755_v9  ;;  %8800 = vmatprep.subr.bf16.mxu1 %v8799_v34  ;;  %v3214_v2 = vld [vmem:[#allocation2 + $0x7] sm:$0xff]  ;;  %v3215_v6 = vld [vmem:[#allocation2 + $0xf] sm:$0xff] }
 0x252   : > { %7807 = vmatprep.mubr.f32.mxu1 %v3214_v2 }
 0x253   : > { %7651 = vmatmul.mubr.f32.gmra.mrb[2].mxu0 %v2534_v28  ;;  %8802 = vmatpush3.bf16.msra.mxu1 %v8799_v34  ;;  %v2845_v28 = vld [vmem:[#allocation2 + $0xc9] sm:$0xff] }
 0x254   : > { %7653 = vmatprep.mubr.f32.mxu0 %v2535_v30  ;;  %8758 = vmatpush3.bf16.msra.mxu0 %v8755_v9  ;;  %v2839_v9 = vld [vmem:[#allocation2 + $0x69] sm:$0xff]  ;;  %v2846_v30 = vld [vmem:[#allocation2 + $0xd1] sm:$0xff] }
 0x255   : > { %8760 = vmatprep.subr.bf16.mxu0 %v8759_v31  ;;  %8804 = vmatprep.subr.bf16.mxu1 %v8803_v1  ;;  %v2867_v34 = vld [vmem:[#allocation2 + $0x229] sm:$0xff] }
 0x257   : > { %7654 = vmatmul.mubr.f32.gmra.mrb[4].mxu0 %v2536_v45  ;;  %8806 = vmatpush3.bf16.msra.mxu1 %v8803_v1  ;;  %v2853_v45 = vld [vmem:[#allocation2 + $0x149] sm:$0xff] }
 0x258   : > { %7656 = vmatprep.mubr.f32.mxu0 %v2537_v46  ;;  %8762 = vmatpush3.bf16.msra.mxu0 %v8759_v31  ;;  %v2847_v31 = vld [vmem:[#allocation2 + $0xe9] sm:$0xff]  ;;  %v2854_v46 = vld [vmem:[#allocation2 + $0x151] sm:$0xff] }
 0x259   : > { %8764 = vmatprep.subr.bf16.mxu0 %v8763_v47 }
 0x25b   : > { %7657 = vmatmul.mubr.f32.gmra.mrb[6].mxu0 %v2538_v39  ;;  %v2861_v39 = vld [vmem:[#allocation2 + $0x1c9] sm:$0xff] }
 0x25c   : > { %7659 = vmatprep.mubr.f32.mxu0 %v2539_v18  ;;  %8766 = vmatpush3.bf16.msra.mxu0 %v8763_v47  ;;  %v2855_v47 = vld [vmem:[#allocation2 + $0x169] sm:$0xff]  ;;  %v2862_v18 = vld [vmem:[#allocation2 + $0x1d1] sm:$0xff] }
 0x25d   : > { %8768 = vmatprep.subr.bf16.mxu0 %v8767_v22 }
 0x25f   : > { %7660 = vmatmul.mubr.f32.gmra.mrb[8].mxu0 %v2540_v44  ;;  %v8807_v44 = vpack.c.bf16 %v3259_v43, %v3258_v33 }
 0x260   : > { %7662 = vmatprep.mubr.f32.mxu0 %v2541_v58  ;;  %8770 = vmatpush3.bf16.msra.mxu0 %v8767_v22  ;;  %v2863_v22 = vld [vmem:[#allocation2 + $0x1e9] sm:$0xff] }
 0x261   : > { %8772 = vmatprep.subr.bf16.mxu0 %v8771_v59  ;;  %8808 = vmatprep.subr.bf16.mxu1 %v8807_v44  ;;  %v3260_v58 = vld [vmem:[#allocation8 + $0x70] sm:$0xff] }
 0x262   : > { %8810 = vmatpush3.bf16.msra.mxu1 %v8807_v44 }
 0x263   : > { %7663 = vmatmul.mubr.f32.gmra.mrb[10].mxu0 %v2542_v7  ;;  %v3553_v7 = vld [vmem:[#allocation8 + $0x88] sm:$0xff] }
 0x264   : > { %7665 = vmatprep.mubr.f32.mxu0 %v2543_v11  ;;  %8774 = vmatpush3.bf16.msra.mxu0 %v8771_v59  ;;  %v3261_v59 = vld [vmem:[#allocation8 + $0x78] sm:$0xff]  ;;  %v3554_v11 = vld [vmem:[#allocation8 + $0x90] sm:$0xff] }
 0x265   : > { %8776 = vmatprep.subr.bf16.mxu0 %v8775_v23  ;;  %v8811_v1 = vpack.c.bf16 %v3261_v59, %v3260_v58 }
 0x267   : > { %7666 = vmatmul.mubr.f32.gmra.mrb[12].mxu0 %v2544_v54  ;;  %8812 = vmatprep.subr.bf16.mxu1 %v8811_v1  ;;  %v3557_v54 = vld [vmem:[#allocation8 + $0xa8] sm:$0xff] }
 0x268   : > { %7668 = vmatprep.mubr.f32.mxu0 %v2545_v5  ;;  %8778 = vmatpush3.bf16.msra.mxu0 %v8775_v23  ;;  %v3555_v23 = vld [vmem:[#allocation8 + $0x98] sm:$0xff]  ;;  %v8823_v5 = vpack.c.bf16 %v3557_v54, %v3556_v63 }
 0x269   : > { %8780 = vmatprep.subr.bf16.mxu0 %v8779_v50  ;;  %8814 = vmatpush3.bf16.msra.mxu1 %v8811_v1  ;;  %v8819_v29 = vpack.c.bf16 %v3555_v23, %v3554_v11 }
 0x26b   : > { %7669 = vmatmul.mubr.f32.gmra.mrb[14].mxu0 %v2546_v53  ;;  %v3559_v53 = vld [vmem:[#allocation8 + $0xb8] sm:$0xff] }
 0x26c   : > { %7671 = vmatprep.mubr.f32.mxu0 %v2547_v55  ;;  %8782 = vmatpush3.bf16.msra.mxu0 %v8779_v50  ;;  %v3558_v50 = vld [vmem:[#allocation8 + $0xb0] sm:$0xff] }
 0x26d   : > { %7808 = vmatmul.mubr.f32.vlgmr.msra.gmra.mrb[0].mxu1 %v3215_v6  ;;  %v8827_v55 = vpack.c.bf16 %v3559_v53, %v3558_v50 }
 0x26f   : > { %7672 = vmatmul.mubr.f32.gmra.mrb[16].mxu0 %v2548_v61  ;;  %v3560_v61 = vld [vmem:[#allocation8 + $0xc0] sm:$0xff] }
 0x270   : > { %7674 = vmatprep.mubr.f32.mxu0 %v2549_v56  ;;  %v3561_v56 = vld [vmem:[#allocation8 + $0xc8] sm:$0xff] }
 0x273   : > { %7675 = vmatmul.mubr.f32.gmra.mrb[18].mxu0 %v2550_v0  ;;  %v8831_v0 = vpack.c.bf16 %v3561_v56, %v3560_v61 }
 0x274   : > { %7677 = vmatprep.mubr.f32.mxu0 %v2551_v62  ;;  %v3562_v62 = vld [vmem:[#allocation8 + $0xd0] sm:$0xff] }
 0x277   : > { %7678 = vmatmul.mubr.f32.gmra.mrb[20].mxu0 %v2552_v60  ;;  %v3563_v60 = vld [vmem:[#allocation8 + $0xd8] sm:$0xff] }
 0x278   : > { %7680 = vmatprep.mubr.f32.mxu0 %v2553_v13  ;;  %v8835_v13 = vpack.c.bf16 %v3563_v60, %v3562_v62 }
 0x27b   : > { %7681 = vmatmul.mubr.f32.gmra.mrb[22].mxu0 %v2554_v3  ;;  %v3564_v3 = vld [vmem:[#allocation8 + $0xe0] sm:$0xff] }
 0x27c   : > { %7683 = vmatprep.mubr.f32.mxu0 %v2555_v14  ;;  %v3565_v14 = vld [vmem:[#allocation8 + $0xe8] sm:$0xff] }
 0x27f   : > { %7684 = vmatmul.mubr.f32.gmra.mrb[24].mxu0 %v2556_v15  ;;  %v8839_v15 = vpack.c.bf16 %v3565_v14, %v3564_v3 }
 0x280   : > { %7686 = vmatprep.mubr.f32.mxu0 %v2557_v4  ;;  %v3566_v4 = vld [vmem:[#allocation8 + $0xf0] sm:$0xff] }
 0x283   : > { %7687 = vmatmul.mubr.f32.gmra.mrb[26].mxu0 %v2558_v16  ;;  %v3567_v16 = vld [vmem:[#allocation8 + $0xf8] sm:$0xff] }
 0x284   : > { %7689 = vmatprep.mubr.f32.mxu0 %v9719_v38  ;;  %v8843_v38 = vpack.c.bf16 %v3567_v16, %v3566_v4 }
 0x287   : > { %7690 = vmatmul.mubr.f32.gmra.mrb[28].mxu0 %v9720_v20  ;;  %v3858_v20 = vld [vmem:[#allocation8 + $0x100] sm:$0xff] }
 0x288   : > { %7692 = vmatprep.mubr.f32.mxu0 %v10607_v8 }
 0x28b   : > { %7693 = vmatmul.mubr.f32.gmra.mrb[30].mxu0 %v10607_v8 }
 0x28c   : > { %7727 = vmatprep.mubr.f32.mxu0 %v2837_v21  ;;  %v3859_v21 = vld [vmem:[#allocation8 + $0x108] sm:$0xff] }
 0x28f   : > { %7728 = vmatmul.mubr.f32.vlgmr.msra.gmra.mrb[0].mxu0 %v2838_v24  ;;  %v10613_v24 = vpack.c.bf16 %v3859_v21, %v3858_v20 }
 0x290   : > { %7730 = vmatprep.mubr.f32.mxu0 %v2839_v9  ;;  %v10619_v9 = vld [vmem:[%s11292_s2] ss:$0 sm:$0xff] }
 0x293   : > { %7731 = vmatmul.mubr.f32.gmra.mrb[2].mxu0 %v2840_v25 }
 0x294   : > { %7733 = vmatprep.mubr.f32.mxu0 %v2841_v10 }
 0x297   : > { %7734 = vmatmul.mubr.f32.gmra.mrb[4].mxu0 %v2842_v26 }
 0x298   : > { %7736 = vmatprep.mubr.f32.mxu0 %v2843_v12 }
 0x29b   : > { %7737 = vmatmul.mubr.f32.gmra.mrb[6].mxu0 %v2844_v27 }
 0x29c   : > { %7739 = vmatprep.mubr.f32.mxu0 %v2845_v28 }
 0x29f   : > { %7740 = vmatmul.mubr.f32.gmra.mrb[8].mxu0 %v2846_v30 }
 0x2a0   : > { %7742 = vmatprep.mubr.f32.mxu0 %v2847_v31 }
 0x2a3   : > { %7743 = vmatmul.mubr.f32.gmra.mrb[10].mxu0 %v2848_v32 }
 0x2a4   : > { %7745 = vmatprep.mubr.f32.mxu0 %v2849_v35 }
 0x2a7   : > { %7746 = vmatmul.mubr.f32.gmra.mrb[12].mxu0 %v2850_v36 }
 0x2a8   : > { %7748 = vmatprep.mubr.f32.mxu0 %v2851_v40 }
 0x2ab   : > { %7749 = vmatmul.mubr.f32.gmra.mrb[14].mxu0 %v2852_v41 }
 0x2ac   : > { %7751 = vmatprep.mubr.f32.mxu0 %v2853_v45 }
 0x2af   : > { %7752 = vmatmul.mubr.f32.gmra.mrb[16].mxu0 %v2854_v46 }
 0x2b0   : > { %7754 = vmatprep.mubr.f32.mxu0 %v2855_v47 }
 0x2b3   : > { %7755 = vmatmul.mubr.f32.gmra.mrb[18].mxu0 %v2856_v48 }
 0x2b4   : > { %7757 = vmatprep.mubr.f32.mxu0 %v2857_v49 }
 0x2b7   : > { %7758 = vmatmul.mubr.f32.gmra.mrb[20].mxu0 %v2858_v51 }
 0x2b8   : > { %7760 = vmatprep.mubr.f32.mxu0 %v2859_v52 }
 0x2bb   : > { %7761 = vmatmul.mubr.f32.gmra.mrb[22].mxu0 %v2860_v57 }
 0x2bc   : > { %7763 = vmatprep.mubr.f32.mxu0 %v2861_v39 }
 0x2bf   : > { %7764 = vmatmul.mubr.f32.gmra.mrb[24].mxu0 %v2862_v18 }
 0x2c0   : > { %7766 = vmatprep.mubr.f32.mxu0 %v2863_v22 }
 0x2c3   : > { %7767 = vmatmul.mubr.f32.gmra.mrb[26].mxu0 %v2864_v42 }
 0x2c4   : > { %7769 = vmatprep.mubr.f32.mxu0 %v10598_v17  ;;  %v3552_v17 = vld [vmem:[#allocation8 + $0x80] sm:$0xff] }
 0x2c7   : > { %7770 = vmatmul.mubr.f32.gmra.mrb[28].mxu0 %v10602_v19  ;;  %v8815_v19 = vpack.c.bf16 %v3553_v7, %v3552_v17 }
 0x2c8   : > { %7772 = vmatprep.mubr.f32.mxu0 %v2867_v34 }
 0x2c9   : > { %8816 = vmatprep.subr.bf16.mxu1 %v8815_v19 }
 0x2ca   : > { %8818 = vmatpush3.bf16.msra.mxu1 %v8815_v19 }
 0x2cb   : > { %7773 = vmatmul.mubr.f32.gmra.mrb[30].mxu0 %v2868_v37  ;;  %8820 = vmatprep.subr.bf16.mxu1 %v8819_v29 }
 0x2ce   : > { %8822 = vmatpush3.bf16.msra.mxu1 %v8819_v29 }
 0x2cf   : > { %8824 = vmatprep.subr.bf16.mxu1 %v8823_v5 }
 0x2d2   : > { %8826 = vmatpush3.bf16.msra.mxu1 %v8823_v5 }
 0x2d3   : > { %8828 = vmatprep.subr.bf16.mxu1 %v8827_v55 }
 0x2d6   : > { %8830 = vmatpush3.bf16.msra.mxu1 %v8827_v55 }
 0x2d7   : > { %8832 = vmatprep.subr.bf16.mxu1 %v8831_v0 }
 0x2da   : > { %8834 = vmatpush3.bf16.msra.mxu1 %v8831_v0 }
 0x2db   : > { %8836 = vmatprep.subr.bf16.mxu1 %v8835_v13 }
 0x2de   : > { %8838 = vmatpush3.bf16.msra.mxu1 %v8835_v13 }
 0x2df   : > { %8840 = vmatprep.subr.bf16.mxu1 %v8839_v15 }
 0x2e2   : > { %8842 = vmatpush3.bf16.msra.mxu1 %v8839_v15 }
 0x2e3   : > { %8844 = vmatprep.subr.bf16.mxu1 %v8843_v38 }
 0x2e6   : > { %8846 = vmatpush3.bf16.msra.mxu1 %v8843_v38 }
 0x2e7   : > { %8848 = vmatprep.subr.bf16.mxu1 %v10613_v24 }
 0x362   : > { %v7729_v25 = vpop.f32.mrb[0].mxu0 }
 0x363   : > { %v10622_v10 = vadd.f32 %v7729_v25, %v10619_v9  ;;  %v2952_v26 = vpop.f32.mrb[1].mxu0 }
 0x364   : > { %v10625_v12 = vadd.f32 %v10619_v9, %v2952_v26 }
 0x365   : > { %v11346_v27 = vmax.f32 %v10622_v10, 0.0 }
 0x366   : > { %v11347_v28 = vmax.f32 %v10625_v12, 0.0  ;;  %v7732_v30 = vpop.f32.mrb[2].mxu0 }
 0x367   : > { %3176 = vst [vmem:[#allocation2 + $0x30] sm:$0xff] %v11346_v27  ;;  %v10632_v31 = vadd.f32 %v7732_v30, %v10619_v9  ;;  %v2962_v32 = vpop.f32.mrb[3].mxu0 }
 0x368   : > { %3175 = vst [vmem:[#allocation2 + $0x28] sm:$0xff] %v11347_v28  ;;  %v10637_v35 = vadd.f32 %v10619_v9, %v2962_v32 }
 0x369   : > { %v11344_v36 = vmax.f32 %v10632_v31, 0.0 }
 0x36a   : > { %v11345_v40 = vmax.f32 %v10637_v35, 0.0  ;;  %v7735_v41 = vpop.f32.mrb[4].mxu0 }
 0x36b   : > { %3178 = vst [vmem:[#allocation2 + $0x50] sm:$0xff] %v11344_v36  ;;  %v10644_v45 = vadd.f32 %v7735_v41, %v10619_v9  ;;  %v2972_v46 = vpop.f32.mrb[5].mxu0 }
 0x36c   : > { %3177 = vst [vmem:[#allocation2 + $0x48] sm:$0xff] %v11345_v40  ;;  %v10649_v47 = vadd.f32 %v10619_v9, %v2972_v46 }
 0x36d   : > { %v11342_v48 = vmax.f32 %v10644_v45, 0.0 }
 0x36e   : > { %v11343_v49 = vmax.f32 %v10649_v47, 0.0  ;;  %v7738_v51 = vpop.f32.mrb[6].mxu0 }
 0x36f   : > { %3180 = vst [vmem:[#allocation2 + $0x70] sm:$0xff] %v11342_v48  ;;  %v10656_v52 = vadd.f32 %v7738_v51, %v10619_v9  ;;  %v2982_v57 = vpop.f32.mrb[7].mxu0  ;;  %v10658_v39 = vld [vmem:[#allocation2 + $0x27] sm:$0xff]  ;;  %v10660_v18 = vld [vmem:[#allocation2 + $0x2f] sm:$0xff] }
 0x370   : > { %3179 = vst [vmem:[#allocation2 + $0x68] sm:$0xff] %v11343_v49  ;;  %v10665_v22 = vadd.f32 %v10619_v9, %v2982_v57  ;;  %7810 = vmatprep.mubr.f32.mxu1 %v10658_v39 }
 0x371   : > { %v11340_v42 = vmax.f32 %v10656_v52, 0.0  ;;  %7811 = vmatmul.mubr.f32.gmra.mrb[2].mxu1 %v10660_v18 }
 0x372   : > { %v11341_v34 = vmax.f32 %v10665_v22, 0.0  ;;  %v7741_v37 = vpop.f32.mrb[8].mxu0 }
 0x373   : > { %3182 = vst [vmem:[#allocation2 + $0x90] sm:$0xff] %v11340_v42  ;;  %v10674_v33 = vadd.f32 %v7741_v37, %v10619_v9  ;;  %v2992_v43 = vpop.f32.mrb[9].mxu0  ;;  %v10676_v44 = vld [vmem:[#allocation2 + $0x47] sm:$0xff]  ;;  %v10678_v58 = vld [vmem:[#allocation2 + $0x4f] sm:$0xff] }
 0x374   : > { %3181 = vst [vmem:[#allocation2 + $0x88] sm:$0xff] %v11341_v34  ;;  %v10683_v59 = vadd.f32 %v10619_v9, %v2992_v43  ;;  %7813 = vmatprep.mubr.f32.mxu1 %v10676_v44 }
 0x375   : > { %v11338_v1 = vmax.f32 %v10674_v33, 0.0  ;;  %7814 = vmatmul.mubr.f32.gmra.mrb[4].mxu1 %v10678_v58 }
 0x376   : > { %v11339_v2 = vmax.f32 %v10683_v59, 0.0  ;;  %v7744_v6 = vpop.f32.mrb[10].mxu0 }
 0x377   : > { %3184 = vst [vmem:[#allocation2 + $0xb0] sm:$0xff] %v11338_v1  ;;  %v10692_v17 = vadd.f32 %v7744_v6, %v10619_v9  ;;  %v3002_v7 = vpop.f32.mrb[11].mxu0  ;;  %v10694_v19 = vld [vmem:[#allocation2 + $0x67] sm:$0xff]  ;;  %v10696_v11 = vld [vmem:[#allocation2 + $0x6f] sm:$0xff] }
 0x378   : > { %3183 = vst [vmem:[#allocation2 + $0xa8] sm:$0xff] %v11339_v2  ;;  %v9082_v23 = vadd.f32 %v10619_v9, %v3002_v7  ;;  %7816 = vmatprep.mubr.f32.mxu1 %v10694_v19 }
 0x379   : > { %v11337_v29 = vmax.f32 %v10692_v17, 0.0  ;;  %7817 = vmatmul.mubr.f32.gmra.mrb[6].mxu1 %v10696_v11 }
 0x37a   : > { %v10704_v63 = vmax.f32 %v9082_v23, 0.0  ;;  %v7747_v54 = vpop.f32.mrb[12].mxu0 }
 0x37b   : > { %3186 = vst [vmem:[#allocation2 + $0xd0] sm:$0xff] %v11337_v29  ;;  %v9083_v5 = vadd.f32 %v7747_v54, %v10619_v9  ;;  %v3012_v50 = vpop.f32.mrb[13].mxu0  ;;  %v10709_v53 = vld [vmem:[#allocation2 + $0x87] sm:$0xff]  ;;  %v10711_v55 = vld [vmem:[#allocation2 + $0x8f] sm:$0xff] }
 0x37c   : > { %3185 = vst [vmem:[#allocation2 + $0xc8] sm:$0xff] %v10704_v63  ;;  %v9084_v61 = vadd.f32 %v10619_v9, %v3012_v50  ;;  %7819 = vmatprep.mubr.f32.mxu1 %v10709_v53 }
 0x37d   : > { %v10716_v56 = vmax.f32 %v9083_v5, 0.0  ;;  %7820 = vmatmul.mubr.f32.gmra.mrb[8].mxu1 %v10711_v55 }
 0x37e   : > { %v10719_v0 = vmax.f32 %v9084_v61, 0.0  ;;  %v7750_v62 = vpop.f32.mrb[14].mxu0 }
 0x37f   : > { %3188 = vst [vmem:[#allocation2 + $0xf0] sm:$0xff] %v10716_v56  ;;  %v9085_v60 = vadd.f32 %v7750_v62, %v10619_v9  ;;  %v3022_v13 = vpop.f32.mrb[15].mxu0  ;;  %v10723_v3 = vld [vmem:[#allocation2 + $0xa7] sm:$0xff]  ;;  %v10725_v14 = vld [vmem:[#allocation2 + $0xaf] sm:$0xff] }
 0x380   : > { %3187 = vst [vmem:[#allocation2 + $0xe8] sm:$0xff] %v10719_v0  ;;  %v9086_v15 = vadd.f32 %v10619_v9, %v3022_v13  ;;  %7822 = vmatprep.mubr.f32.mxu1 %v10723_v3 }
 0x381   : > { %v10730_v4 = vmax.f32 %v9085_v60, 0.0  ;;  %7823 = vmatmul.mubr.f32.gmra.mrb[10].mxu1 %v10725_v14 }
 0x382   : > { %v10733_v16 = vmax.f32 %v9086_v15, 0.0  ;;  %v7753_v38 = vpop.f32.mrb[16].mxu0 }
 0x383   : > { %3190 = vst [vmem:[#allocation2 + $0x110] sm:$0xff] %v10730_v4  ;;  %v9087_v20 = vadd.f32 %v7753_v38, %v10619_v9  ;;  %v3032_v21 = vpop.f32.mrb[17].mxu0  ;;  %v10737_v25 = vld [vmem:[#allocation2 + $0xc7] sm:$0xff]  ;;  %v10739_v26 = vld [vmem:[#allocation2 + $0xcf] sm:$0xff] }
 0x384   : > { %3189 = vst [vmem:[#allocation2 + $0x108] sm:$0xff] %v10733_v16  ;;  %v9088_v30 = vadd.f32 %v10619_v9, %v3032_v21  ;;  %7825 = vmatprep.mubr.f32.mxu1 %v10737_v25 }
 0x385   : > { %v10744_v32 = vmax.f32 %v9087_v20, 0.0  ;;  %7826 = vmatmul.mubr.f32.gmra.mrb[12].mxu1 %v10739_v26 }
 0x386   : > { %v10747_v41 = vmax.f32 %v9088_v30, 0.0  ;;  %v7756_v46 = vpop.f32.mrb[18].mxu0 }
 0x387   : > { %3192 = vst [vmem:[#allocation2 + $0x130] sm:$0xff] %v10744_v32  ;;  %v9089_v51 = vadd.f32 %v7756_v46, %v10619_v9  ;;  %v3042_v57 = vpop.f32.mrb[19].mxu0  ;;  %v10751_v37 = vld [vmem:[#allocation2 + $0xe7] sm:$0xff]  ;;  %v10753_v43 = vld [vmem:[#allocation2 + $0xef] sm:$0xff] }
 0x388   : > { %3191 = vst [vmem:[#allocation2 + $0x128] sm:$0xff] %v10747_v41  ;;  %v9090_v6 = vadd.f32 %v10619_v9, %v3042_v57  ;;  %7828 = vmatprep.mubr.f32.mxu1 %v10751_v37 }
 0x389   : > { %v10758_v7 = vmax.f32 %v9089_v51, 0.0  ;;  %7829 = vmatmul.mubr.f32.gmra.mrb[14].mxu1 %v10753_v43 }
 0x38a   : > { %v10761_v23 = vmax.f32 %v9090_v6, 0.0  ;;  %v7759_v54 = vpop.f32.mrb[20].mxu0 }
 0x38b   : > { %3194 = vst [vmem:[#allocation2 + $0x150] sm:$0xff] %v10758_v7  ;;  %v9091_v5 = vadd.f32 %v7759_v54, %v10619_v9  ;;  %v3052_v50 = vpop.f32.mrb[21].mxu0  ;;  %v10765_v61 = vld [vmem:[#allocation2 + $0x107] sm:$0xff]  ;;  %v10767_v62 = vld [vmem:[#allocation2 + $0x10f] sm:$0xff] }
 0x38c   : > { %3193 = vst [vmem:[#allocation2 + $0x148] sm:$0xff] %v10761_v23  ;;  %v9092_v60 = vadd.f32 %v10619_v9, %v3052_v50  ;;  %7831 = vmatprep.mubr.f32.mxu1 %v10765_v61 }
 0x38d   : > { %v10772_v13 = vmax.f32 %v9091_v5, 0.0  ;;  %7832 = vmatmul.mubr.f32.gmra.mrb[16].mxu1 %v10767_v62 }
 0x38e   : > { %v10775_v15 = vmax.f32 %v9092_v60, 0.0  ;;  %v7762_v38 = vpop.f32.mrb[22].mxu0 }
 0x38f   : > { %3196 = vst [vmem:[#allocation2 + $0x170] sm:$0xff] %v10772_v13  ;;  %v9093_v20 = vadd.f32 %v7762_v38, %v10619_v9  ;;  %v3062_v21 = vpop.f32.mrb[23].mxu0  ;;  %v10779_v30 = vld [vmem:[#allocation2 + $0x127] sm:$0xff]  ;;  %v10781_v46 = vld [vmem:[#allocation2 + $0x12f] sm:$0xff] }
 0x390   : > { %3195 = vst [vmem:[#allocation2 + $0x168] sm:$0xff] %v10775_v15  ;;  %v9094_v51 = vadd.f32 %v10619_v9, %v3062_v21  ;;  %7834 = vmatprep.mubr.f32.mxu1 %v10779_v30 }
 0x391   : > { %v10786_v57 = vmax.f32 %v9093_v20, 0.0  ;;  %7835 = vmatmul.mubr.f32.gmra.mrb[18].mxu1 %v10781_v46 }
 0x392   : > { %v10789_v6 = vmax.f32 %v9094_v51, 0.0  ;;  %v7765_v54 = vpop.f32.mrb[24].mxu0 }
 0x393   : > { %3198 = vst [vmem:[#allocation2 + $0x190] sm:$0xff] %v10786_v57  ;;  %v9095_v5 = vadd.f32 %v7765_v54, %v10619_v9  ;;  %v3072_v50 = vpop.f32.mrb[25].mxu0  ;;  %v10793_v60 = vld [vmem:[#allocation2 + $0x147] sm:$0xff]  ;;  %v10795_v38 = vld [vmem:[#allocation2 + $0x14f] sm:$0xff] }
 0x394   : > { %3197 = vst [vmem:[#allocation2 + $0x188] sm:$0xff] %v10789_v6  ;;  %v9096_v21 = vadd.f32 %v10619_v9, %v3072_v50  ;;  %7837 = vmatprep.mubr.f32.mxu1 %v10793_v60 }
 0x395   : > { %v10800_v20 = vmax.f32 %v9095_v5, 0.0  ;;  %7838 = vmatmul.mubr.f32.gmra.mrb[20].mxu1 %v10795_v38 }
 0x396   : > { %v10803_v51 = vmax.f32 %v9096_v21, 0.0  ;;  %v7768_v29 = vpop.f32.mrb[26].mxu0 }
 0x397   : > { %3200 = vst [vmem:[#allocation2 + $0x1b0] sm:$0xff] %v10800_v20  ;;  %v9097_v54 = vadd.f32 %v7768_v29, %v10619_v9  ;;  %v3082_v1 = vpop.f32.mrb[27].mxu0  ;;  %v10807_v2 = vld [vmem:[#allocation2 + $0x167] sm:$0xff]  ;;  %v10809_v42 = vld [vmem:[#allocation2 + $0x16f] sm:$0xff] }
 0x398   : > { %11463 = vst [vmem:[#allocation15_spill] sm:$0xff] %v10809_v42  ;;  %3199 = vst [vmem:[#allocation2 + $0x1a8] sm:$0xff] %v10803_v51  ;;  %v9098_v50 = vadd.f32 %v10619_v9, %v3082_v1  ;;  %7840 = vmatprep.mubr.f32.mxu1 %v10807_v2 }
 0x399   : > { %v10814_v5 = vmax.f32 %v9097_v54, 0.0  ;;  %7841 = vmatmul.mubr.f32.gmra.mrb[22].mxu1 %v10809_v42 }
 0x39a   : > { %v10817_v21 = vmax.f32 %v9098_v50, 0.0  ;;  %v7771_v34 = vpop.f32.mrb[28].mxu0 }
 0x39b   : > { %3202 = vst [vmem:[#allocation2 + $0x1d0] sm:$0xff] %v10814_v5  ;;  %v9099_v29 = vadd.f32 %v7771_v34, %v10619_v9  ;;  %v3092_v48 = vpop.f32.mrb[29].mxu0  ;;  %v10821_v49 = vld [vmem:[#allocation2 + $0x187] sm:$0xff]  ;;  %v10823_v36 = vld [vmem:[#allocation2 + $0x18f] sm:$0xff] }
 0x39c   : > { %11464 = vst [vmem:[#allocation16_spill] sm:$0xff] %v10821_v49  ;;  %11465 = vst [vmem:[#allocation17_spill] sm:$0xff] %v10823_v36  ;;  %v9100_v1 = vadd.f32 %v10619_v9, %v3092_v48  ;;  %7843 = vmatprep.mubr.f32.mxu1 %v10821_v49  ;;  %v11475_v49 = vmax.f32 %v10622_v10, 0.0  ;;  %v3869_v10 = vld [vmem:[#allocation8 + $0x158] sm:$0xff] }
 0x39d   : > { %3201 = vst [vmem:[#allocation2 + $0x1c8] sm:$0xff] %v10817_v21  ;;  %v10828_v54 = vmax.f32 %v9099_v29, 0.0  ;;  %7844 = vmatmul.mubr.f32.gmra.mrb[24].mxu1 %v10823_v36 }
 0x39e   : > { %v10831_v50 = vmax.f32 %v9100_v1, 0.0  ;;  %v7774_v40 = vpop.f32.mrb[30].mxu0 }
 0x39f   : > { %3204 = vst [vmem:[#allocation2 + $0x1f0] sm:$0xff] %v10828_v54  ;;  %v10835_v34 = vadd.f32 %v7774_v40, %v10619_v9  ;;  %v3102_v27 = vpop.f32.mrb[31].mxu0  ;;  %v10837_v28 = vld [vmem:[#allocation2 + $0x1a7] sm:$0xff]  ;;  %v10839_v42 = vld [vmem:[#allocation2 + $0x1af] sm:$0xff] }
 0x3a0   : > { %11467 = vst [vmem:[#allocation19_spill] sm:$0xff] %v10837_v28  ;;  %11468 = vst [vmem:[#allocation20_spill] sm:$0xff] %v10839_v42  ;;  %v10843_v48 = vadd.f32 %v10619_v9, %v3102_v27  ;;  %7846 = vmatprep.mubr.f32.mxu1 %v10837_v28  ;;  %v3862_v28 = vld [vmem:[#allocation8 + $0x120] sm:$0xff] }
 0x3a1   : > { %11466 = vst [vmem:[#allocation18_spill] sm:$0xff] %v10835_v34  ;;  %3203 = vst [vmem:[#allocation2 + $0x1e8] sm:$0xff] %v10831_v50  ;;  %v11352_v29 = vmax.f32 %v10835_v34, 0.0  ;;  %7847 = vmatmul.mubr.f32.gmra.mrb[26].mxu1 %v10839_v42  ;;  %v3860_v42 = vld [vmem:[#allocation8 + $0x110] sm:$0xff]  ;;  %v3861_v34 = vld [vmem:[#allocation8 + $0x118] sm:$0xff] }
 0x3a2   : > { %11469 = vst [vmem:[#allocation21_spill] sm:$0xff] %v10843_v48  ;;  %v11355_v1 = vmax.f32 %v10843_v48, 0.0  ;;  %v3863_v48 = vld [vmem:[#allocation8 + $0x128] sm:$0xff] }
 0x3a3   : > { %3206 = vst [vmem:[#allocation2 + $0x210] sm:$0xff] %v11352_v29  ;;  %v8851_v29 = vpack.c.bf16 %v3861_v34, %v3860_v42  ;;  %v3866_v34 = vld [vmem:[#allocation8 + $0x140] sm:$0xff] }
 0x3a4   : > { %v10851_v40 = vld [vmem:[#allocation2 + $0x1c7] sm:$0xff]  ;;  %v10853_v36 = vld [vmem:[#allocation2 + $0x1cf] sm:$0xff]  ;;  %3205 = vst [vmem:[#allocation2 + $0x208] sm:$0xff] %v11355_v1  ;;  %v11474_v1 = vmax.f32 %v10625_v12, 0.0  ;;  %v11477_v12 = vmax.f32 %v10632_v31, 0.0 }
 0x3a5   : > { %11470 = vst [vmem:[#allocation22_spill] sm:$0xff] %v10851_v40  ;;  %11471 = vst [vmem:[#allocation13_spill] sm:$0xff] %v10853_v36  ;;  %7849 = vmatprep.mubr.f32.mxu1 %v10851_v40  ;;  %v3864_v40 = vld [vmem:[#allocation8 + $0x130] sm:$0xff]  ;;  %v3871_v31 = vld [vmem:[#allocation8 + $0x168] sm:$0xff] }
 0x3a6   : > { %7850 = vmatmul.mubr.f32.gmra.mrb[28].mxu1 %v10853_v36  ;;  %v8855_v36 = vpack.c.bf16 %v3863_v48, %v3862_v28  ;;  %v3868_v48 = vld [vmem:[#allocation8 + $0x150] sm:$0xff] }
 0x3a8   : > { %v10859_v9 = vld [vmem:[#allocation2 + $0x1e7] sm:$0xff]  ;;  %v10861_v27 = vld [vmem:[#allocation2 + $0x1ef] sm:$0xff] }
 0x3a9   : > { %11472 = vst [vmem:[#allocation14_spill] sm:$0xff] %v10859_v9  ;;  %11473 = vst [vmem:[#allocation23_spill] sm:$0xff] %v10861_v27  ;;  %7852 = vmatprep.mubr.f32.mxu1 %v10859_v9  ;;  %v3865_v9 = vld [vmem:[#allocation8 + $0x138] sm:$0xff] }
 0x3aa   : > { %7853 = vmatmul.mubr.f32.gmra.mrb[30].mxu1 %v10861_v27  ;;  %v11476_v27 = vmax.f32 %v10637_v35, 0.0  ;;  %v8859_v42 = vpack.c.bf16 %v3865_v9, %v3864_v40  ;;  %v11480_v35 = vmax.f32 %v10665_v22, 0.0  ;;  %v11481_v40 = vmax.f32 %v10656_v52, 0.0  ;;  %v3872_v9 = vld [vmem:[#allocation8 + $0x170] sm:$0xff] }
 0x3ab   : > { %7887 = vmatprep.mubr.f32.mxu1 %v10607_v8  ;;  %v11484_v52 = vmax.f32 %v10692_v17, 0.0  ;;  %v4166_v17 = vld [vmem:[#allocation8 + $0x190] sm:$0xff] }
 0x3ae   : > { %7888 = vmatmul.mubr.f32.vlgmr.msra.gmra.mrb[0].mxu1 %v10607_v8  ;;  %v3867_v8 = vld [vmem:[#allocation8 + $0x148] sm:$0xff] }
 0x3af   : > { %7890 = vmatprep.mubr.f32.mxu1 %v11474_v1  ;;  %8850 = vmatpush3.bf16.msra.mxu1 %v10613_v24  ;;  %v11478_v24 = vmax.f32 %v10649_v47, 0.0  ;;  %v8863_v28 = vpack.c.bf16 %v3867_v8, %v3866_v34  ;;  %v3870_v1 = vld [vmem:[#allocation8 + $0x160] sm:$0xff]  ;;  %v4165_v34 = vld [vmem:[#allocation8 + $0x188] sm:$0xff]  ;;  %v4167_v8 = vld [vmem:[#allocation8 + $0x198] sm:$0xff] }
 0x3b0   : > { %8852 = vmatprep.subr.bf16.mxu1 %v8851_v29  ;;  %v8871_v47 = vpack.c.bf16 %v3871_v31, %v3870_v1  ;;  %v4171_v1 = vld [vmem:[#allocation8 + $0x1b8] sm:$0xff]  ;;  %v10915_v31 = vld [vmem:[#allocation2 + $0x49] sm:$0xff] }
 0x3b2   : > { %7891 = vmatmul.mubr.f32.gmra.mrb[2].mxu1 %v11475_v49  ;;  %v11479_v49 = vmax.f32 %v10644_v45, 0.0  ;;  %v3873_v45 = vld [vmem:[#allocation8 + $0x178] sm:$0xff] }
 0x3b3   : > { %7893 = vmatprep.mubr.f32.mxu1 %v11476_v27  ;;  %8854 = vmatpush3.bf16.msra.mxu1 %v8851_v29  ;;  %v8867_v29 = vpack.c.bf16 %v3869_v10, %v3868_v48  ;;  %v11483_v27 = vmax.f32 %v10674_v33, 0.0  ;;  %v8875_v22 = vpack.c.bf16 %v3873_v45, %v3872_v9  ;;  %v3825_v33 = vld [vmem:[#allocation2 + $0x9] sm:$0xff] }
 0x3b4   : > { %8856 = vmatprep.subr.bf16.mxu1 %v8855_v36  ;;  %v4169_v48 = vld [vmem:[#allocation8 + $0x1a8] sm:$0xff] }
 0x3b5   : > { %v10909_v10 = vld [vmem:[#allocation2 + $0x29] sm:$0xff] }
 0x3b6   : > { %7894 = vmatmul.mubr.f32.gmra.mrb[4].mxu1 %v11477_v12  ;;  %v3826_v12 = vld [vmem:[#allocation2 + $0x11] sm:$0xff]  ;;  %v4173_v9 = vld [vmem:[#allocation8 + $0x1c8] sm:$0xff] }
 0x3b7   : > { %7896 = vmatprep.mubr.f32.mxu1 %v11478_v24  ;;  %8858 = vmatpush3.bf16.msra.mxu1 %v8855_v36  ;;  %v11482_v36 = vmax.f32 %v10683_v59, 0.0  ;;  %v8883_v24 = vpack.c.bf16 %v4167_v8, %v4166_v17  ;;  %v10921_v45 = vld [vmem:[#allocation2 + $0x69] sm:$0xff]  ;;  %v4176_v17 = vld [vmem:[#allocation8 + $0x1e0] sm:$0xff] }
 0x3b8   : > { %8860 = vmatprep.subr.bf16.mxu1 %v8859_v42  ;;  %v4177_v8 = vld [vmem:[#allocation8 + $0x1e8] sm:$0xff] }
 0x3ba   : > { %7897 = vmatmul.mubr.f32.gmra.mrb[6].mxu1 %v11479_v49 }
 0x3bb   : > { %7899 = vmatprep.mubr.f32.mxu1 %v11480_v35  ;;  %8862 = vmatpush3.bf16.msra.mxu1 %v8859_v42  ;;  %v4164_v42 = vld [vmem:[#allocation8 + $0x180] sm:$0xff]  ;;  %v10912_v35 = vld [vmem:[#allocation2 + $0x31] sm:$0xff] }
 0x3bc   : > { %8864 = vmatprep.subr.bf16.mxu1 %v8863_v28  ;;  %v8879_v59 = vpack.c.bf16 %v4165_v34, %v4164_v42  ;;  %v4174_v42 = vld [vmem:[#allocation8 + $0x1d0] sm:$0xff]  ;;  %v4175_v34 = vld [vmem:[#allocation8 + $0x1d8] sm:$0xff] }
 0x3be   : > { %7900 = vmatmul.mubr.f32.gmra.mrb[8].mxu1 %v11481_v40 }
 0x3bf   : > { %7902 = vmatprep.mubr.f32.mxu1 %v11482_v36  ;;  %8866 = vmatpush3.bf16.msra.mxu1 %v8863_v28  ;;  %v4168_v28 = vld [vmem:[#allocation8 + $0x1a0] sm:$0xff]  ;;  %v10918_v36 = vld [vmem:[#allocation2 + $0x51] sm:$0xff] }
 0x3c0   : > { %8868 = vmatprep.subr.bf16.mxu1 %v8867_v29  ;;  %v8887_v49 = vpack.c.bf16 %v4169_v48, %v4168_v28  ;;  %v10936_v28 = vld [vmem:[#allocation2 + $0xb1] sm:$0xff] }
 0x3c1   : > { %v4178_v48 = vld [vmem:[#allocation8 + $0x1f0] sm:$0xff] }
 0x3c2   : > { %7903 = vmatmul.mubr.f32.gmra.mrb[10].mxu1 %v11483_v27 }
 0x3c3   : > { %7905 = vmatprep.mubr.f32.mxu1 %v10704_v63  ;;  %8870 = vmatpush3.bf16.msra.mxu1 %v8867_v29  ;;  %v4170_v29 = vld [vmem:[#allocation8 + $0x1b0] sm:$0xff] }
 0x3c4   : > { %8872 = vmatprep.subr.bf16.mxu1 %v8871_v47  ;;  %v8891_v40 = vpack.c.bf16 %v4171_v1, %v4170_v29  ;;  %v10939_v29 = vld [vmem:[#allocation2 + $0xc9] sm:$0xff] }
 0x3c6   : > { %7906 = vmatmul.mubr.f32.gmra.mrb[12].mxu1 %v11484_v52  ;;  %v10927_v52 = vld [vmem:[#allocation2 + $0x89] sm:$0xff] }
 0x3c7   : > { %7908 = vmatprep.mubr.f32.mxu1 %v10719_v0  ;;  %8874 = vmatpush3.bf16.msra.mxu1 %v8871_v47  ;;  %v4172_v47 = vld [vmem:[#allocation8 + $0x1c0] sm:$0xff] }
 0x3c8   : > { %8876 = vmatprep.subr.bf16.mxu1 %v8875_v22  ;;  %v8895_v27 = vpack.c.bf16 %v4173_v9, %v4172_v47  ;;  %v4470_v47 = vld [vmem:[#allocation8 + $0x200] sm:$0xff]  ;;  %v4471_v9 = vld [vmem:[#allocation8 + $0x208] sm:$0xff] }
 0x3ca   : > { %7909 = vmatmul.mubr.f32.gmra.mrb[14].mxu1 %v10716_v56 }
 0x3cb   : > { %7911 = vmatprep.mubr.f32.mxu1 %v10733_v16  ;;  %8878 = vmatpush3.bf16.msra.mxu1 %v8875_v22  ;;  %v10924_v22 = vld [vmem:[#allocation2 + $0x71] sm:$0xff] }
 0x3cc   : > { %8880 = vmatprep.subr.bf16.mxu1 %v8879_v59 }
 0x3ce   : > { %7912 = vmatmul.mubr.f32.gmra.mrb[16].mxu1 %v10730_v4 }
 0x3cf   : > { %7914 = vmatprep.mubr.f32.mxu1 %v10747_v41 }
 0x3d2   : > { %7915 = vmatmul.mubr.f32.gmra.mrb[18].mxu1 %v10744_v32 }
 0x3d3   : > { %7917 = vmatprep.mubr.f32.mxu1 %v10761_v23 }
 0x3d6   : > { %7918 = vmatmul.mubr.f32.gmra.mrb[20].mxu1 %v10758_v7 }
 0x3d7   : > { %7920 = vmatprep.mubr.f32.mxu1 %v10775_v15 }
 0x3da   : > { %7921 = vmatmul.mubr.f32.gmra.mrb[22].mxu1 %v10772_v13 }
 0x3db   : > { %7923 = vmatprep.mubr.f32.mxu1 %v10789_v6 }
 0x3de   : > { %7924 = vmatmul.mubr.f32.gmra.mrb[24].mxu1 %v10786_v57 }
 0x3df   : > { %7926 = vmatprep.mubr.f32.mxu1 %v10803_v51 }
 0x3e2   : > { %7927 = vmatmul.mubr.f32.gmra.mrb[26].mxu1 %v10800_v20 }
 0x3e3   : > { %7929 = vmatprep.mubr.f32.mxu1 %v10817_v21 }
 0x3e6   : > { %7930 = vmatmul.mubr.f32.gmra.mrb[28].mxu1 %v10814_v5 }
 0x3e7   : > { %7932 = vmatprep.mubr.f32.mxu1 %v10831_v50 }
 0x3ea   : > { %7933 = vmatmul.mubr.f32.gmra.mrb[30].mxu1 %v10828_v54 }
 0x3eb   : > { %7967 = vmatprep.mubr.f32.mxu1 %v3825_v33  ;;  %v10930_v33 = vld [vmem:[#allocation2 + $0x91] sm:$0xff] }
 0x3ee   : > { %7968 = vmatmul.mubr.f32.vlgmr.msra.gmra.mrb[0].mxu1 %v3826_v12  ;;  %v10933_v12 = vld [vmem:[#allocation2 + $0xa9] sm:$0xff] }
 0x3ef   : > { %7970 = vmatprep.mubr.f32.mxu1 %v10909_v10  ;;  %8882 = vmatpush3.bf16.msra.mxu1 %v8879_v59  ;;  %v8899_v59 = vpack.c.bf16 %v4175_v34, %v4174_v42  ;;  %v8911_v42 = vpack.c.bf16 %v4471_v9, %v4470_v47  ;;  %v10948_v34 = vld [vmem:[#allocation2 + $0xf1] sm:$0xff]  ;;  %v10975_v9 = vld [vmem:[#allocation2 + $0x189] sm:$0xff] }
 0x3f0   : > { %8884 = vmatprep.subr.bf16.mxu1 %v8883_v24  ;;  %v10972_v47 = vld [vmem:[#allocation2 + $0x171] sm:$0xff]  ;;  %11493 = vst [vmem:[#allocation32_spill] sm:$0xff] %v10975_v9 }
 0x3f1   : > { %11492 = vst [vmem:[#allocation31_spill] sm:$0xff] %v10972_v47 }
 0x3f2   : > { %7971 = vmatmul.mubr.f32.gmra.mrb[2].mxu1 %v10912_v35 }
 0x3f3   : > { %7973 = vmatprep.mubr.f32.mxu1 %v10915_v31  ;;  %8886 = vmatpush3.bf16.msra.mxu1 %v8883_v24  ;;  %v8903_v24 = vpack.c.bf16 %v4177_v8, %v4176_v17  ;;  %v10954_v17 = vld [vmem:[#allocation2 + $0x111] sm:$0xff]  ;;  %v10957_v8 = vld [vmem:[#allocation2 + $0x129] sm:$0xff] }
 0x3f4   : > { %8888 = vmatprep.subr.bf16.mxu1 %v8887_v49  ;;  %11486 = vst [vmem:[#allocation25_spill] sm:$0xff] %v10954_v17  ;;  %11487 = vst [vmem:[#allocation26_spill] sm:$0xff] %v10957_v8 }
 0x3f6   : > { %7974 = vmatmul.mubr.f32.gmra.mrb[4].mxu1 %v10918_v36 }
 0x3f7   : > { %7976 = vmatprep.mubr.f32.mxu1 %v10921_v45  ;;  %8890 = vmatpush3.bf16.msra.mxu1 %v8887_v49  ;;  %v4179_v49 = vld [vmem:[#allocation8 + $0x1f8] sm:$0xff] }
 0x3f8   : > { %8892 = vmatprep.subr.bf16.mxu1 %v8891_v40  ;;  %v8907_v1 = vpack.c.bf16 %v4179_v49, %v4178_v48  ;;  %v10963_v48 = vld [vmem:[#allocation2 + $0x149] sm:$0xff]  ;;  %v10966_v49 = vld [vmem:[#allocation2 + $0x151] sm:$0xff] }
 0x3f9   : > { %11489 = vst [vmem:[#allocation28_spill] sm:$0xff] %v10963_v48  ;;  %11490 = vst [vmem:[#allocation29_spill] sm:$0xff] %v10966_v49 }
 0x3fa   : > { %7977 = vmatmul.mubr.f32.gmra.mrb[6].mxu1 %v10924_v22 }
 0x3fb   : > { %7979 = vmatprep.mubr.f32.mxu1 %v10927_v52  ;;  %8894 = vmatpush3.bf16.msra.mxu1 %v8891_v40  ;;  %v10942_v40 = vld [vmem:[#allocation2 + $0xd1] sm:$0xff] }
 0x3fc   : > { %8896 = vmatprep.subr.bf16.mxu1 %v8895_v27 }
 0x3fe   : > { %7980 = vmatmul.mubr.f32.gmra.mrb[8].mxu1 %v10930_v33 }
 0x3ff   : > { %7982 = vmatprep.mubr.f32.mxu1 %v10933_v12  ;;  %8898 = vmatpush3.bf16.msra.mxu1 %v8895_v27  ;;  %v10945_v27 = vld [vmem:[#allocation2 + $0xe9] sm:$0xff] }
 0x400   : > { %8900 = vmatprep.subr.bf16.mxu1 %v8899_v59 }
 0x402   : > { %7983 = vmatmul.mubr.f32.gmra.mrb[10].mxu1 %v10936_v28 }
 0x403   : > { %7985 = vmatprep.mubr.f32.mxu1 %v10939_v29  ;;  %8902 = vmatpush3.bf16.msra.mxu1 %v8899_v59  ;;  %v10951_v59 = vld [vmem:[#allocation2 + $0x109] sm:$0xff] }
 0x404   : > { %8904 = vmatprep.subr.bf16.mxu1 %v8903_v24  ;;  %11485 = vst [vmem:[#allocation24_spill] sm:$0xff] %v10951_v59 }
 0x406   : > { %7986 = vmatmul.mubr.f32.gmra.mrb[12].mxu1 %v10942_v40 }
 0x407   : > { %7988 = vmatprep.mubr.f32.mxu1 %v10945_v27  ;;  %8906 = vmatpush3.bf16.msra.mxu1 %v8903_v24  ;;  %v10960_v24 = vld [vmem:[#allocation2 + $0x131] sm:$0xff] }
 0x408   : > { %8908 = vmatprep.subr.bf16.mxu1 %v8907_v1  ;;  %11488 = vst [vmem:[#allocation27_spill] sm:$0xff] %v10960_v24 }
 0x40a   : > { %7989 = vmatmul.mubr.f32.gmra.mrb[14].mxu1 %v10948_v34 }
 0x40b   : > { %7991 = vmatprep.mubr.f32.mxu1 %v10951_v59  ;;  %8910 = vmatpush3.bf16.msra.mxu1 %v8907_v1  ;;  %v10969_v1 = vld [vmem:[#allocation2 + $0x169] sm:$0xff] }
 0x40c   : > { %8912 = vmatprep.subr.bf16.mxu1 %v8911_v42  ;;  %11491 = vst [vmem:[#allocation30_spill] sm:$0xff] %v10969_v1  ;;  %v4475_v59 = vld [vmem:[#allocation8 + $0x228] sm:$0xff] }
 0x40e   : > { %7992 = vmatmul.mubr.f32.gmra.mrb[16].mxu1 %v10954_v17  ;;  %v4474_v17 = vld [vmem:[#allocation8 + $0x220] sm:$0xff] }
 0x40f   : > { %7994 = vmatprep.mubr.f32.mxu1 %v10957_v8  ;;  %v4472_v8 = vld [vmem:[#allocation8 + $0x210] sm:$0xff] }
 0x412   : > { %7995 = vmatmul.mubr.f32.gmra.mrb[18].mxu1 %v10960_v24  ;;  %v10978_v24 = vld [vmem:[#allocation2 + $0x191] sm:$0xff] }
 0x413   : > { %7997 = vmatprep.mubr.f32.mxu1 %v10963_v48  ;;  %11494 = vst [vmem:[#allocation33_spill] sm:$0xff] %v10978_v24  ;;  %v10981_v48 = vld [vmem:[#allocation2 + $0x1a9] sm:$0xff] }
 0x414   : > { %11495 = vst [vmem:[#allocation34_spill] sm:$0xff] %v10981_v48 }
 0x416   : > { %7998 = vmatmul.mubr.f32.gmra.mrb[20].mxu1 %v10966_v49  ;;  %v10984_v49 = vld [vmem:[#allocation2 + $0x1b1] sm:$0xff] }
 0x417   : > { %8000 = vmatprep.mubr.f32.mxu1 %v10969_v1  ;;  %11496 = vst [vmem:[#allocation35_spill] sm:$0xff] %v10984_v49  ;;  %v10987_v1 = vld [vmem:[#allocation2 + $0x1c9] sm:$0xff] }
 0x418   : > { %11497 = vst [vmem:[#allocation36_spill] sm:$0xff] %v10987_v1 }
 0x41a   : > { %8001 = vmatmul.mubr.f32.gmra.mrb[22].mxu1 %v10972_v47  ;;  %v10990_v47 = vld [vmem:[#allocation2 + $0x1d1] sm:$0xff] }
 0x41b   : > { %8003 = vmatprep.mubr.f32.mxu1 %v10975_v9  ;;  %11498 = vst [vmem:[#allocation37_spill] sm:$0xff] %v10990_v47  ;;  %v10993_v9 = vld [vmem:[#allocation2 + $0x1e9] sm:$0xff] }
 0x41c   : > { %11499 = vst [vmem:[#allocation38_spill] sm:$0xff] %v10993_v9 }
 0x41e   : > { %8004 = vmatmul.mubr.f32.gmra.mrb[24].mxu1 %v10978_v24  ;;  %v10996_v24 = vld [vmem:[#allocation2 + $0x1f1] sm:$0xff] }
 0x41f   : > { %8006 = vmatprep.mubr.f32.mxu1 %v10981_v48  ;;  %11500 = vst [vmem:[#allocation39_spill] sm:$0xff] %v10996_v24  ;;  %v4473_v48 = vld [vmem:[#allocation8 + $0x218] sm:$0xff] }
 0x422   : > { %8007 = vmatmul.mubr.f32.gmra.mrb[26].mxu1 %v10984_v49  ;;  %v8915_v49 = vpack.c.bf16 %v4473_v48, %v4472_v8  ;;  %v4479_v8 = vld [vmem:[#allocation8 + $0x248] sm:$0xff]  ;;  %v4778_v48 = vld [vmem:[#allocation8 + $0x290] sm:$0xff] }
 0x423   : > { %8009 = vmatprep.mubr.f32.mxu1 %v10987_v1  ;;  %v4476_v1 = vld [vmem:[#allocation8 + $0x230] sm:$0xff] }
 0x426   : > { %8010 = vmatmul.mubr.f32.gmra.mrb[28].mxu1 %v10990_v47  ;;  %v8919_v47 = vpack.c.bf16 %v4475_v59, %v4474_v17  ;;  %v4483_v59 = vld [vmem:[#allocation8 + $0x268] sm:$0xff]  ;;  %v4485_v17 = vld [vmem:[#allocation8 + $0x278] sm:$0xff] }
 0x427   : > { %8012 = vmatprep.mubr.f32.mxu1 %v10993_v9  ;;  %v4477_v9 = vld [vmem:[#allocation8 + $0x238] sm:$0xff] }
 0x42a   : > { %8013 = vmatmul.mubr.f32.gmra.mrb[30].mxu1 %v10996_v24  ;;  %v8923_v24 = vpack.c.bf16 %v4477_v9, %v4476_v1  ;;  %v4437_v1 = vld [vmem:[#allocation2 + $0x28] sm:$0xff]  ;;  %v4438_v9 = vld [vmem:[#allocation2 + $0x30] sm:$0xff] }
 0x42b   : > { %8047 = vmatprep.mubr.f32.mxu1 %v10658_v39  ;;  %v4478_v39 = vld [vmem:[#allocation8 + $0x240] sm:$0xff] }
 0x42e   : > { %8048 = vmatmul.mubr.f32.vlgmr.msra.gmra.mrb[0].mxu1 %v10660_v18  ;;  %v8927_v18 = vpack.c.bf16 %v4479_v8, %v4478_v39  ;;  %v4780_v39 = vld [vmem:[#allocation8 + $0x2a0] sm:$0xff]  ;;  %v4781_v8 = vld [vmem:[#allocation8 + $0x2a8] sm:$0xff] }
 0x42f   : > { %8050 = vmatprep.mubr.f32.mxu1 %v10676_v44  ;;  %8914 = vmatpush3.bf16.msra.mxu1 %v8911_v42  ;;  %v4480_v44 = vld [vmem:[#allocation8 + $0x250] sm:$0xff]  ;;  %v4481_v42 = vld [vmem:[#allocation8 + $0x258] sm:$0xff] }
 0x430   : > { %8916 = vmatprep.subr.bf16.mxu1 %v8915_v49 }
 0x432   : > { %8051 = vmatmul.mubr.f32.gmra.mrb[2].mxu1 %v10678_v58  ;;  %v8931_v58 = vpack.c.bf16 %v4481_v42, %v4480_v44  ;;  %v8951_v44 = vpack.c.bf16 %v4781_v8, %v4780_v39  ;;  %v11038_v42 = vld [vmem:[#allocation2 + $0x50] sm:$0xff]  ;;  %v11514_v39 = vld [vmem:[#allocation24_spill] sm:$0xff]  ;;  %v11516_v8 = vld [vmem:[#allocation26_spill] sm:$0xff] }
 0x433   : > { %8053 = vmatprep.mubr.f32.mxu1 %v10694_v19  ;;  %8918 = vmatpush3.bf16.msra.mxu1 %v8915_v49  ;;  %v4482_v19 = vld [vmem:[#allocation8 + $0x260] sm:$0xff]  ;;  %v4779_v49 = vld [vmem:[#allocation8 + $0x298] sm:$0xff] }
 0x434   : > { %8920 = vmatprep.subr.bf16.mxu1 %v8919_v47 }
 0x436   : > { %8054 = vmatmul.mubr.f32.gmra.mrb[4].mxu1 %v10696_v11  ;;  %v8935_v11 = vpack.c.bf16 %v4483_v59, %v4482_v19  ;;  %v4783_v19 = vld [vmem:[#allocation8 + $0x2b8] sm:$0xff]  ;;  %v11041_v59 = vld [vmem:[#allocation2 + $0x68] sm:$0xff] }
 0x437   : > { %8056 = vmatprep.mubr.f32.mxu1 %v10709_v53  ;;  %8922 = vmatpush3.bf16.msra.mxu1 %v8919_v47  ;;  %v4484_v53 = vld [vmem:[#allocation8 + $0x270] sm:$0xff]  ;;  %v8947_v47 = vpack.c.bf16 %v4779_v49, %v4778_v48  ;;  %v4791_v49 = vld [vmem:[#allocation8 + $0x2f8] sm:$0xff] }
 0x438   : > { %8924 = vmatprep.subr.bf16.mxu1 %v8923_v24  ;;  %v4790_v48 = vld [vmem:[#allocation8 + $0x2f0] sm:$0xff] }
 0x43a   : > { %8057 = vmatmul.mubr.f32.gmra.mrb[6].mxu1 %v10711_v55  ;;  %v8939_v55 = vpack.c.bf16 %v4485_v17, %v4484_v53  ;;  %v11044_v53 = vld [vmem:[#allocation2 + $0x70] sm:$0xff]  ;;  %v4784_v17 = vld [vmem:[#allocation8 + $0x2c0] sm:$0xff] }
 0x43b   : > { %8059 = vmatprep.mubr.f32.mxu1 %v10723_v3  ;;  %8926 = vmatpush3.bf16.msra.mxu1 %v8923_v24  ;;  %v4776_v3 = vld [vmem:[#allocation8 + $0x280] sm:$0xff]  ;;  %v4777_v24 = vld [vmem:[#allocation8 + $0x288] sm:$0xff] }
 0x43c   : > { %8928 = vmatprep.subr.bf16.mxu1 %v8927_v18 }
 0x43e   : > { %8060 = vmatmul.mubr.f32.gmra.mrb[8].mxu1 %v10725_v14  ;;  %v8943_v14 = vpack.c.bf16 %v4777_v24, %v4776_v3  ;;  %v11047_v3 = vld [vmem:[#allocation2 + $0x88] sm:$0xff] }
 0x43f   : > { %8062 = vmatprep.mubr.f32.mxu1 %v10737_v25  ;;  %8930 = vmatpush3.bf16.msra.mxu1 %v8927_v18  ;;  %v11501_v25 = vld [vmem:[#allocation15_spill] sm:$0xff]  ;;  %v11035_v18 = vld [vmem:[#allocation2 + $0x48] sm:$0xff] }
 0x440   : > { %8932 = vmatprep.subr.bf16.mxu1 %v8931_v58 }
 0x442   : > { %8063 = vmatmul.mubr.f32.gmra.mrb[10].mxu1 %v10739_v26  ;;  %v11502_v26 = vld [vmem:[#allocation16_spill] sm:$0xff] }
 0x443   : > { %8065 = vmatprep.mubr.f32.mxu1 %v10751_v37  ;;  %8934 = vmatpush3.bf16.msra.mxu1 %v8931_v58  ;;  %v11503_v37 = vld [vmem:[#allocation17_spill] sm:$0xff]  ;;  %v4782_v58 = vld [vmem:[#allocation8 + $0x2b0] sm:$0xff] }
 0x444   : > { %8936 = vmatprep.subr.bf16.mxu1 %v8935_v11 }
 0x446   : > { %8066 = vmatmul.mubr.f32.gmra.mrb[12].mxu1 %v10753_v43  ;;  %v11504_v43 = vld [vmem:[#allocation19_spill] sm:$0xff] }
 0x447   : > { %8068 = vmatprep.mubr.f32.mxu1 %v10765_v61  ;;  %8938 = vmatpush3.bf16.msra.mxu1 %v8935_v11  ;;  %v11505_v61 = vld [vmem:[#allocation20_spill] sm:$0xff]  ;;  %v8955_v11 = vpack.c.bf16 %v4783_v19, %v4782_v58  ;;  %v11520_v58 = vld [vmem:[#allocation30_spill] sm:$0xff] }
 0x448   : > { %8940 = vmatprep.subr.bf16.mxu1 %v8939_v55  ;;  %v11522_v19 = vld [vmem:[#allocation32_spill] sm:$0xff] }
 0x44a   : > { %8069 = vmatmul.mubr.f32.gmra.mrb[14].mxu1 %v10767_v62  ;;  %v11506_v62 = vld [vmem:[#allocation22_spill] sm:$0xff] }
 0x44b   : > { %8071 = vmatprep.mubr.f32.mxu1 %v10779_v30  ;;  %8942 = vmatpush3.bf16.msra.mxu1 %v8939_v55  ;;  %v11507_v30 = vld [vmem:[#allocation13_spill] sm:$0xff]  ;;  %v4785_v55 = vld [vmem:[#allocation8 + $0x2c8] sm:$0xff] }
 0x44c   : > { %8944 = vmatprep.subr.bf16.mxu1 %v8943_v14  ;;  %v8959_v24 = vpack.c.bf16 %v4785_v55, %v4784_v17  ;;  %v11524_v17 = vld [vmem:[#allocation34_spill] sm:$0xff]  ;;  %v11525_v55 = vld [vmem:[#allocation35_spill] sm:$0xff] }
 0x44e   : > { %8072 = vmatmul.mubr.f32.gmra.mrb[16].mxu1 %v10781_v46  ;;  %v11508_v46 = vld [vmem:[#allocation14_spill] sm:$0xff] }
 0x44f   : > { %8074 = vmatprep.mubr.f32.mxu1 %v10793_v60  ;;  %v11509_v60 = vld [vmem:[#allocation23_spill] sm:$0xff] }
 0x452   : > { %8075 = vmatmul.mubr.f32.gmra.mrb[18].mxu1 %v10795_v38  ;;  %v11029_v38 = vld [vmem:[#allocation2 + $0x207] sm:$0xff] }
 0x453   : > { %8077 = vmatprep.mubr.f32.mxu1 %v10807_v2  ;;  %v11032_v2 = vld [vmem:[#allocation2 + $0x20f] sm:$0xff] }
 0x456   : > { %8078 = vmatmul.mubr.f32.gmra.mrb[20].mxu1 %v11501_v25  ;;  %v4786_v25 = vld [vmem:[#allocation8 + $0x2d0] sm:$0xff] }
 0x457   : > { %8080 = vmatprep.mubr.f32.mxu1 %v11502_v26  ;;  %v4787_v26 = vld [vmem:[#allocation8 + $0x2d8] sm:$0xff] }
 0x45a   : > { %8081 = vmatmul.mubr.f32.gmra.mrb[22].mxu1 %v11503_v37  ;;  %v11053_v37 = vld [vmem:[#allocation2 + $0xa8] sm:$0xff] }
 0x45b   : > { %8083 = vmatprep.mubr.f32.mxu1 %v11504_v43  ;;  %v8963_v43 = vpack.c.bf16 %v4787_v26, %v4786_v25  ;;  %v11527_v25 = vld [vmem:[#allocation37_spill] sm:$0xff]  ;;  %v11528_v26 = vld [vmem:[#allocation38_spill] sm:$0xff] }
 0x45e   : > { %8084 = vmatmul.mubr.f32.gmra.mrb[24].mxu1 %v11505_v61  ;;  %v11056_v61 = vld [vmem:[#allocation2 + $0xb0] sm:$0xff] }
 0x45f   : > { %8086 = vmatprep.mubr.f32.mxu1 %v11506_v62  ;;  %v4788_v62 = vld [vmem:[#allocation8 + $0x2e0] sm:$0xff] }
 0x462   : > { %8087 = vmatmul.mubr.f32.gmra.mrb[26].mxu1 %v11507_v30  ;;  %v4789_v30 = vld [vmem:[#allocation8 + $0x2e8] sm:$0xff] }
 0x463   : > { %8089 = vmatprep.mubr.f32.mxu1 %v11508_v46  ;;  %v8967_v46 = vpack.c.bf16 %v4789_v30, %v4788_v62  ;;  %v11115_v62 = vld [vmem:[#allocation2 + $0x209] sm:$0xff]  ;;  %v11118_v30 = vld [vmem:[#allocation2 + $0x211] sm:$0xff] }
 0x466   : > { %8090 = vmatmul.mubr.f32.gmra.mrb[28].mxu1 %v11509_v60  ;;  %v11060_v60 = vld [vmem:[#allocation2 + $0xd0] sm:$0xff] }
 0x467   : > { %8092 = vmatprep.mubr.f32.mxu1 %v11029_v38 }
 0x46a   : > { %8093 = vmatmul.mubr.f32.gmra.mrb[30].mxu1 %v11032_v2 }
 0x46b   : > { %8127 = vmatprep.mubr.f32.mxu1 %v4437_v1  ;;  %v8971_v1 = vpack.c.bf16 %v4791_v49, %v4790_v48  ;;  %v5391_v48 = vld [vmem:[#allocation8 + $0x398] sm:$0xff]  ;;  %v5049_v49 = vld [vmem:[#allocation2 + $0x47] sm:$0xff] }
 0x46e   : > { %8128 = vmatmul.mubr.f32.vlgmr.msra.gmra.mrb[0].mxu1 %v4438_v9  ;;  %v5083_v9 = vld [vmem:[#allocation8 + $0x308] sm:$0xff] }
 0x46f   : > { %8130 = vmatprep.mubr.f32.mxu1 %v11035_v18  ;;  %8946 = vmatpush3.bf16.msra.mxu1 %v8943_v14  ;;  %v11050_v14 = vld [vmem:[#allocation2 + $0x90] sm:$0xff] }
 0x470   : > { %8948 = vmatprep.subr.bf16.mxu1 %v8947_v47 }
 0x472   : > { %8131 = vmatmul.mubr.f32.gmra.mrb[2].mxu1 %v11038_v42 }
 0x473   : > { %8133 = vmatprep.mubr.f32.mxu1 %v11041_v59  ;;  %8950 = vmatpush3.bf16.msra.mxu1 %v8947_v47  ;;  %v5082_v47 = vld [vmem:[#allocation8 + $0x300] sm:$0xff] }
 0x474   : > { %8952 = vmatprep.subr.bf16.mxu1 %v8951_v44 }
 0x476   : > { %8134 = vmatmul.mubr.f32.gmra.mrb[4].mxu1 %v11044_v53 }
 0x477   : > { %8136 = vmatprep.mubr.f32.mxu1 %v11047_v3  ;;  %8954 = vmatpush3.bf16.msra.mxu1 %v8951_v44  ;;  %v11519_v44 = vld [vmem:[#allocation29_spill] sm:$0xff] }
 0x478   : > { %8956 = vmatprep.subr.bf16.mxu1 %v8955_v11 }
 0x47a   : > { %8137 = vmatmul.mubr.f32.gmra.mrb[6].mxu1 %v11050_v14 }
 0x47b   : > { %8139 = vmatprep.mubr.f32.mxu1 %v11053_v37  ;;  %8958 = vmatpush3.bf16.msra.mxu1 %v8955_v11  ;;  %v11523_v11 = vld [vmem:[#allocation33_spill] sm:$0xff] }
 0x47c   : > { %8960 = vmatprep.subr.bf16.mxu1 %v8959_v24 }
 0x47e   : > { %8140 = vmatmul.mubr.f32.gmra.mrb[8].mxu1 %v11056_v61 }
 0x47f   : > { %8142 = vmatprep.mubr.f32.mxu1 %v10704_v63  ;;  %8962 = vmatpush3.bf16.msra.mxu1 %v8959_v24  ;;  %v8975_v63 = vpack.c.bf16 %v5083_v9, %v5082_v47  ;;  %v11526_v24 = vld [vmem:[#allocation36_spill] sm:$0xff]  ;;  %v5050_v47 = vld [vmem:[#allocation2 + $0x4f] sm:$0xff]  ;;  %v5392_v9 = vld [vmem:[#allocation8 + $0x3a0] sm:$0xff] }
 0x480   : > { %8964 = vmatprep.subr.bf16.mxu1 %v8963_v43 }
 0x482   : > { %8143 = vmatmul.mubr.f32.gmra.mrb[10].mxu1 %v11060_v60 }
 0x483   : > { %8145 = vmatprep.mubr.f32.mxu1 %v10719_v0  ;;  %8966 = vmatpush3.bf16.msra.mxu1 %v8963_v43  ;;  %v11529_v43 = vld [vmem:[#allocation39_spill] sm:$0xff] }
 0x484   : > { %8968 = vmatprep.subr.bf16.mxu1 %v8967_v46 }
 0x486   : > { %8146 = vmatmul.mubr.f32.gmra.mrb[12].mxu1 %v10716_v56  ;;  %v11510_v56 = vld [vmem:[#allocation21_spill] sm:$0xff] }
 0x487   : > { %8148 = vmatprep.mubr.f32.mxu1 %v10733_v16  ;;  %8970 = vmatpush3.bf16.msra.mxu1 %v8967_v46  ;;  %v11511_v0 = vmax.f32 %v11510_v56, 0.0  ;;  %v5085_v16 = vld [vmem:[#allocation8 + $0x318] sm:$0xff]  ;;  %v5390_v46 = vld [vmem:[#allocation8 + $0x390] sm:$0xff]  ;;  %v5051_v56 = vld [vmem:[#allocation2 + $0x67] sm:$0xff] }
 0x488   : > { %8972 = vmatprep.subr.bf16.mxu1 %v8971_v1 }
 0x48a   : > { %8149 = vmatmul.mubr.f32.gmra.mrb[14].mxu1 %v10730_v4  ;;  %v5084_v4 = vld [vmem:[#allocation8 + $0x310] sm:$0xff] }
 0x48b   : > { %8151 = vmatprep.mubr.f32.mxu1 %v10747_v41  ;;  %8974 = vmatpush3.bf16.msra.mxu1 %v8971_v1  ;;  %v9011_v1 = vpack.c.bf16 %v5391_v48, %v5390_v46  ;;  %v5076_v46 = vld [vmem:[#allocation2 + $0x1ef] sm:$0xff]  ;;  %v5079_v48 = vld [vmem:[#allocation2 + $0x227] sm:$0xff] }
 0x48c   : > { %8976 = vmatprep.subr.bf16.mxu1 %v8975_v63 }
 0x48e   : > { %8152 = vmatmul.mubr.f32.gmra.mrb[16].mxu1 %v10744_v32  ;;  %v11512_v32 = vld [vmem:[#allocation18_spill] sm:$0xff] }
 0x48f   : > { %8154 = vmatprep.mubr.f32.mxu1 %v10761_v23  ;;  %v11513_v41 = vmax.f32 %v11512_v32, 0.0  ;;  %v5086_v23 = vld [vmem:[#allocation8 + $0x320] sm:$0xff]  ;;  %v5395_v32 = vld [vmem:[#allocation8 + $0x3b8] sm:$0xff] }
 0x492   : > { %8155 = vmatmul.mubr.f32.gmra.mrb[18].mxu1 %v10758_v7  ;;  %v8979_v7 = vpack.c.bf16 %v5085_v16, %v5084_v4  ;;  %v5052_v4 = vld [vmem:[#allocation2 + $0x6f] sm:$0xff] }
 0x493   : > { %8157 = vmatprep.mubr.f32.mxu1 %v10775_v15  ;;  %v5394_v16 = vld [vmem:[#allocation8 + $0x3b0] sm:$0xff] }
 0x496   : > { %8158 = vmatmul.mubr.f32.gmra.mrb[20].mxu1 %v10772_v13  ;;  %v5087_v13 = vld [vmem:[#allocation8 + $0x328] sm:$0xff] }
 0x497   : > { %8160 = vmatprep.mubr.f32.mxu1 %v10789_v6  ;;  %v8983_v15 = vpack.c.bf16 %v5087_v13, %v5086_v23  ;;  %v5089_v6 = vld [vmem:[#allocation8 + $0x338] sm:$0xff]  ;;  %v5054_v23 = vld [vmem:[#allocation2 + $0x8f] sm:$0xff]  ;;  %v5396_v13 = vld [vmem:[#allocation8 + $0x3c0] sm:$0xff] }
 0x49a   : > { %8161 = vmatmul.mubr.f32.gmra.mrb[22].mxu1 %v10786_v57  ;;  %v5088_v57 = vld [vmem:[#allocation8 + $0x330] sm:$0xff] }
 0x49b   : > { %8163 = vmatprep.mubr.f32.mxu1 %v10803_v51  ;;  %v5090_v51 = vld [vmem:[#allocation8 + $0x340] sm:$0xff] }
 0x49e   : > { %8164 = vmatmul.mubr.f32.gmra.mrb[24].mxu1 %v10800_v20  ;;  %v8987_v20 = vpack.c.bf16 %v5089_v6, %v5088_v57  ;;  %v5055_v57 = vld [vmem:[#allocation2 + $0xa7] sm:$0xff] }
 0x49f   : > { %8166 = vmatprep.mubr.f32.mxu1 %v10817_v21 }
 0x4a2   : > { %8167 = vmatmul.mubr.f32.gmra.mrb[26].mxu1 %v10814_v5  ;;  %v5091_v5 = vld [vmem:[#allocation8 + $0x348] sm:$0xff] }
 0x4a3   : > { %8169 = vmatprep.mubr.f32.mxu1 %v10831_v50  ;;  %v8991_v21 = vpack.c.bf16 %v5091_v5, %v5090_v51  ;;  %v5093_v50 = vld [vmem:[#allocation8 + $0x358] sm:$0xff]  ;;  %v5398_v51 = vld [vmem:[#allocation8 + $0x3d0] sm:$0xff] }
 0x4a4   : > { %v5399_v5 = vld [vmem:[#allocation8 + $0x3d8] sm:$0xff] }
 0x4a6   : > { %8170 = vmatmul.mubr.f32.gmra.mrb[28].mxu1 %v10828_v54  ;;  %v5092_v54 = vld [vmem:[#allocation8 + $0x350] sm:$0xff] }
 0x4a7   : > { %8172 = vmatprep.mubr.f32.mxu1 %v11511_v0 }
 0x4aa   : > { %8173 = vmatmul.mubr.f32.gmra.mrb[30].mxu1 %v11513_v41  ;;  %v5053_v41 = vld [vmem:[#allocation2 + $0x87] sm:$0xff] }
 0x4ab   : > { %8207 = vmatprep.mubr.f32.mxu1 %v10909_v10  ;;  %v8995_v10 = vpack.c.bf16 %v5093_v50, %v5092_v54  ;;  %v9027_v54 = vpack.c.bf16 %v5399_v5, %v5398_v51  ;;  %v5058_v50 = vld [vmem:[#allocation2 + $0xcf] sm:$0xff] }
 0x4ac   : > { %v5371_v51 = vld [vmem:[#allocation2 + $0x148] sm:$0xff]  ;;  %v5372_v5 = vld [vmem:[#allocation2 + $0x150] sm:$0xff] }
 0x4ae   : > { %8208 = vmatmul.mubr.f32.vlgmr.msra.gmra.mrb[0].mxu1 %v10912_v35  ;;  %v5094_v35 = vld [vmem:[#allocation8 + $0x360] sm:$0xff] }
 0x4af   : > { %8210 = vmatprep.mubr.f32.mxu1 %v10915_v31  ;;  %8978 = vmatpush3.bf16.msra.mxu1 %v8975_v63  ;;  %v5095_v31 = vld [vmem:[#allocation8 + $0x368] sm:$0xff] }
 0x4b0   : > { %8980 = vmatprep.subr.bf16.mxu1 %v8979_v7  ;;  %v5393_v63 = vld [vmem:[#allocation8 + $0x3a8] sm:$0xff] }
 0x4b1   : > { %v9015_v0 = vpack.c.bf16 %v5393_v63, %v5392_v9  ;;  %v5698_v63 = vld [vmem:[#allocation8 + $0x420] sm:$0xff] }
 0x4b2   : > { %8211 = vmatmul.mubr.f32.gmra.mrb[2].mxu1 %v10918_v36  ;;  %v8999_v36 = vpack.c.bf16 %v5095_v31, %v5094_v35  ;;  %v5401_v35 = vld [vmem:[#allocation8 + $0x3e8] sm:$0xff] }
 0x4b3   : > { %8213 = vmatprep.mubr.f32.mxu1 %v10921_v45  ;;  %8982 = vmatpush3.bf16.msra.mxu1 %v8979_v7  ;;  %v5096_v45 = vld [vmem:[#allocation8 + $0x370] sm:$0xff]  ;;  %v9019_v7 = vpack.c.bf16 %v5395_v32, %v5394_v16  ;;  %v5059_v31 = vld [vmem:[#allocation2 + $0xe7] sm:$0xff]  ;;  %v5705_v32 = vld [vmem:[#allocation8 + $0x458] sm:$0xff] }
 0x4b4   : > { %8984 = vmatprep.subr.bf16.mxu1 %v8983_v15  ;;  %v5703_v16 = vld [vmem:[#allocation8 + $0x448] sm:$0xff] }
 0x4b6   : > { %8214 = vmatmul.mubr.f32.gmra.mrb[4].mxu1 %v10924_v22  ;;  %v5097_v22 = vld [vmem:[#allocation8 + $0x378] sm:$0xff] }
 0x4b7   : > { %8216 = vmatprep.mubr.f32.mxu1 %v10927_v52  ;;  %8986 = vmatpush3.bf16.msra.mxu1 %v8983_v15  ;;  %v9003_v52 = vpack.c.bf16 %v5097_v22, %v5096_v45  ;;  %v5397_v15 = vld [vmem:[#allocation8 + $0x3c8] sm:$0xff]  ;;  %v5402_v22 = vld [vmem:[#allocation8 + $0x3f0] sm:$0xff] }
 0x4b8   : > { %8988 = vmatprep.subr.bf16.mxu1 %v8987_v20  ;;  %v9023_v6 = vpack.c.bf16 %v5397_v15, %v5396_v13  ;;  %v5060_v45 = vld [vmem:[#allocation2 + $0xef] sm:$0xff]  ;;  %v5709_v15 = vld [vmem:[#allocation8 + $0x478] sm:$0xff] }
 0x4b9   : > { %v5708_v13 = vld [vmem:[#allocation8 + $0x470] sm:$0xff] }
 0x4ba   : > { %8217 = vmatmul.mubr.f32.gmra.mrb[6].mxu1 %v10930_v33  ;;  %v5388_v33 = vld [vmem:[#allocation8 + $0x380] sm:$0xff] }
 0x4bb   : > { %8219 = vmatprep.mubr.f32.mxu1 %v10933_v12  ;;  %8990 = vmatpush3.bf16.msra.mxu1 %v8987_v20  ;;  %v5389_v12 = vld [vmem:[#allocation8 + $0x388] sm:$0xff] }
 0x4bc   : > { %8992 = vmatprep.subr.bf16.mxu1 %v8991_v21  ;;  %v5056_v20 = vld [vmem:[#allocation2 + $0xaf] sm:$0xff] }
 0x4be   : > { %8220 = vmatmul.mubr.f32.gmra.mrb[8].mxu1 %v10936_v28  ;;  %v9007_v28 = vpack.c.bf16 %v5389_v12, %v5388_v33  ;;  %v5061_v33 = vld [vmem:[#allocation2 + $0x107] sm:$0xff] }
 0x4bf   : > { %8222 = vmatprep.mubr.f32.mxu1 %v10939_v29  ;;  %8994 = vmatpush3.bf16.msra.mxu1 %v8991_v21  ;;  %v11515_v29 = vld [vmem:[#allocation25_spill] sm:$0xff] }
 0x4c0   : > { %8996 = vmatprep.subr.bf16.mxu1 %v8995_v10  ;;  %v5057_v21 = vld [vmem:[#allocation2 + $0xc7] sm:$0xff] }
 0x4c2   : > { %8223 = vmatmul.mubr.f32.gmra.mrb[10].mxu1 %v10942_v40  ;;  %v11517_v40 = vld [vmem:[#allocation27_spill] sm:$0xff] }
 0x4c3   : > { %8225 = vmatprep.mubr.f32.mxu1 %v10945_v27  ;;  %8998 = vmatpush3.bf16.msra.mxu1 %v8995_v10  ;;  %v11518_v27 = vld [vmem:[#allocation28_spill] sm:$0xff]  ;;  %v5400_v10 = vld [vmem:[#allocation8 + $0x3e0] sm:$0xff] }
 0x4c4   : > { %9000 = vmatprep.subr.bf16.mxu1 %v8999_v36 }
 0x4c6   : > { %8226 = vmatmul.mubr.f32.gmra.mrb[12].mxu1 %v10948_v34  ;;  %v11521_v34 = vld [vmem:[#allocation31_spill] sm:$0xff] }
 0x4c7   : > { %8228 = vmatprep.mubr.f32.mxu1 %v11514_v39  ;;  %9002 = vmatpush3.bf16.msra.mxu1 %v8999_v36  ;;  %v9031_v36 = vpack.c.bf16 %v5401_v35, %v5400_v10  ;;  %v5062_v39 = vld [vmem:[#allocation2 + $0x10f] sm:$0xff] }
 0x4c8   : > { %9004 = vmatprep.subr.bf16.mxu1 %v9003_v52  ;;  %v5376_v10 = vld [vmem:[#allocation2 + $0x190] sm:$0xff]  ;;  %v5377_v35 = vld [vmem:[#allocation2 + $0x1a8] sm:$0xff] }
 0x4ca   : > { %8229 = vmatmul.mubr.f32.gmra.mrb[14].mxu1 %v11515_v29  ;;  %v5695_v29 = vld [vmem:[#allocation8 + $0x408] sm:$0xff] }
 0x4cb   : > { %8231 = vmatprep.mubr.f32.mxu1 %v11516_v8  ;;  %9006 = vmatpush3.bf16.msra.mxu1 %v9003_v52  ;;  %v5403_v52 = vld [vmem:[#allocation8 + $0x3f8] sm:$0xff]  ;;  %v5063_v8 = vld [vmem:[#allocation2 + $0x127] sm:$0xff] }
 0x4cc   : > { %9008 = vmatprep.subr.bf16.mxu1 %v9007_v28  ;;  %v9035_v12 = vpack.c.bf16 %v5403_v52, %v5402_v22  ;;  %v5381_v22 = vld [vmem:[#allocation2 + $0x1e8] sm:$0xff]  ;;  %v5382_v52 = vld [vmem:[#allocation2 + $0x1f0] sm:$0xff] }
 0x4ce   : > { %8232 = vmatmul.mubr.f32.gmra.mrb[16].mxu1 %v11517_v40 }
 0x4cf   : > { %8234 = vmatprep.mubr.f32.mxu1 %v11518_v27  ;;  %v5064_v27 = vld [vmem:[#allocation2 + $0x12f] sm:$0xff] }
 0x4d2   : > { %8235 = vmatmul.mubr.f32.gmra.mrb[18].mxu1 %v11519_v44  ;;  %v5065_v44 = vld [vmem:[#allocation2 + $0x147] sm:$0xff] }
 0x4d3   : > { %8237 = vmatprep.mubr.f32.mxu1 %v11520_v58  ;;  %v5066_v58 = vld [vmem:[#allocation2 + $0x14f] sm:$0xff] }
 0x4d6   : > { %8238 = vmatmul.mubr.f32.gmra.mrb[20].mxu1 %v11521_v34  ;;  %v5067_v34 = vld [vmem:[#allocation2 + $0x167] sm:$0xff] }
 0x4d7   : > { %8240 = vmatprep.mubr.f32.mxu1 %v11522_v19  ;;  %v5068_v19 = vld [vmem:[#allocation2 + $0x16f] sm:$0xff] }
 0x4da   : > { %8241 = vmatmul.mubr.f32.gmra.mrb[22].mxu1 %v11523_v11  ;;  %v5069_v11 = vld [vmem:[#allocation2 + $0x187] sm:$0xff] }
 0x4db   : > { %8243 = vmatprep.mubr.f32.mxu1 %v11524_v17  ;;  %v5070_v17 = vld [vmem:[#allocation2 + $0x18f] sm:$0xff] }
 0x4de   : > { %8244 = vmatmul.mubr.f32.gmra.mrb[24].mxu1 %v11525_v55  ;;  %v5071_v55 = vld [vmem:[#allocation2 + $0x1a7] sm:$0xff] }
 0x4df   : > { %8246 = vmatprep.mubr.f32.mxu1 %v11526_v24  ;;  %v5072_v24 = vld [vmem:[#allocation2 + $0x1af] sm:$0xff] }
 0x4e2   : > { %8247 = vmatmul.mubr.f32.gmra.mrb[26].mxu1 %v11527_v25  ;;  %v5073_v25 = vld [vmem:[#allocation2 + $0x1c7] sm:$0xff] }
 0x4e3   : > { %8249 = vmatprep.mubr.f32.mxu1 %v11528_v26  ;;  %v5074_v26 = vld [vmem:[#allocation2 + $0x1cf] sm:$0xff] }
 0x4e6   : > { %8250 = vmatmul.mubr.f32.gmra.mrb[28].mxu1 %v11529_v43  ;;  %v5075_v43 = vld [vmem:[#allocation2 + $0x1e7] sm:$0xff] }
 0x4e7   : > { %8252 = vmatprep.mubr.f32.mxu1 %v11115_v62 }
 0x4ea   : > { %8253 = vmatmul.mubr.f32.gmra.mrb[30].mxu1 %v11118_v30 }
 0x4eb   : > { %8287 = vmatprep.mubr.f32.mxu1 %v5049_v49  ;;  %v5080_v49 = vld [vmem:[#allocation2 + $0x22f] sm:$0xff] }
 0x4ee   : > { %8288 = vmatmul.mubr.f32.vlgmr.msra.gmra.mrb[0].mxu1 %v5050_v47  ;;  %v5697_v47 = vld [vmem:[#allocation8 + $0x418] sm:$0xff] }
 0x4ef   : > { %8290 = vmatprep.mubr.f32.mxu1 %v5051_v56  ;;  %9010 = vmatpush3.bf16.msra.mxu1 %v9007_v28  ;;  %v5694_v28 = vld [vmem:[#allocation8 + $0x400] sm:$0xff]  ;;  %v5699_v56 = vld [vmem:[#allocation8 + $0x428] sm:$0xff] }
 0x4f0   : > { %9012 = vmatprep.subr.bf16.mxu1 %v9011_v1  ;;  %v9039_v40 = vpack.c.bf16 %v5695_v29, %v5694_v28  ;;  %v5661_v28 = vld [vmem:[#allocation2 + $0x49] sm:$0xff]  ;;  %v5662_v29 = vld [vmem:[#allocation2 + $0x51] sm:$0xff] }
 0x4f2   : > { %8291 = vmatmul.mubr.f32.gmra.mrb[2].mxu1 %v5052_v4  ;;  %v5701_v4 = vld [vmem:[#allocation8 + $0x438] sm:$0xff] }
 0x4f3   : > { %8293 = vmatprep.mubr.f32.mxu1 %v5053_v41  ;;  %9014 = vmatpush3.bf16.msra.mxu1 %v9011_v1  ;;  %v5696_v1 = vld [vmem:[#allocation8 + $0x410] sm:$0xff]  ;;  %v5363_v41 = vld [vmem:[#allocation2 + $0xc8] sm:$0xff] }
 0x4f4   : > { %9016 = vmatprep.subr.bf16.mxu1 %v9015_v0  ;;  %v9043_v9 = vpack.c.bf16 %v5697_v47, %v5696_v1  ;;  %v5680_v1 = vld [vmem:[#allocation2 + $0x171] sm:$0xff]  ;;  %v5681_v47 = vld [vmem:[#allocation2 + $0x189] sm:$0xff] }
 0x4f6   : > { %8294 = vmatmul.mubr.f32.gmra.mrb[4].mxu1 %v5054_v23  ;;  %v5365_v23 = vld [vmem:[#allocation2 + $0xe8] sm:$0xff] }
 0x4f7   : > { %8296 = vmatprep.mubr.f32.mxu1 %v5055_v57  ;;  %9018 = vmatpush3.bf16.msra.mxu1 %v9015_v0  ;;  %v5700_v0 = vld [vmem:[#allocation8 + $0x430] sm:$0xff]  ;;  %v5367_v57 = vld [vmem:[#allocation2 + $0x108] sm:$0xff] }
 0x4f8   : > { %9020 = vmatprep.subr.bf16.mxu1 %v9019_v7 }
 0x4fa   : > { %8297 = vmatmul.mubr.f32.gmra.mrb[6].mxu1 %v5056_v20  ;;  %v5369_v20 = vld [vmem:[#allocation2 + $0x128] sm:$0xff] }
 0x4fb   : > { %8299 = vmatprep.mubr.f32.mxu1 %v5057_v21  ;;  %9022 = vmatpush3.bf16.msra.mxu1 %v9019_v7  ;;  %v5707_v7 = vld [vmem:[#allocation8 + $0x468] sm:$0xff] }
 0x4fc   : > { %9024 = vmatprep.subr.bf16.mxu1 %v9023_v6  ;;  %v5373_v21 = vld [vmem:[#allocation2 + $0x168] sm:$0xff] }
 0x4fe   : > { %8300 = vmatmul.mubr.f32.gmra.mrb[8].mxu1 %v5058_v50  ;;  %v5375_v50 = vld [vmem:[#allocation2 + $0x188] sm:$0xff] }
 0x4ff   : > { %8302 = vmatprep.mubr.f32.mxu1 %v5059_v31  ;;  %9026 = vmatpush3.bf16.msra.mxu1 %v9023_v6  ;;  %v5368_v6 = vld [vmem:[#allocation2 + $0x110] sm:$0xff] }
 0x500   : > { %9028 = vmatprep.subr.bf16.mxu1 %v9027_v54  ;;  %v5378_v31 = vld [vmem:[#allocation2 + $0x1b0] sm:$0xff] }
 0x502   : > { %8303 = vmatmul.mubr.f32.gmra.mrb[10].mxu1 %v5060_v45  ;;  %v5380_v45 = vld [vmem:[#allocation2 + $0x1d0] sm:$0xff] }
 0x503   : > { %8305 = vmatprep.mubr.f32.mxu1 %v5061_v33  ;;  %9030 = vmatpush3.bf16.msra.mxu1 %v9027_v54  ;;  %v5374_v54 = vld [vmem:[#allocation2 + $0x170] sm:$0xff]  ;;  %v5383_v33 = vld [vmem:[#allocation2 + $0x208] sm:$0xff] }
 0x504   : > { %9032 = vmatprep.subr.bf16.mxu1 %v9031_v36 }
 0x506   : > { %8306 = vmatmul.mubr.f32.gmra.mrb[12].mxu1 %v5062_v39  ;;  %v9722_v39 = vld [vmem:[#allocation2 + $0x8] sm:$0xff] }
 0x507   : > { %8308 = vmatprep.mubr.f32.mxu1 %v5063_v8  ;;  %9034 = vmatpush3.bf16.msra.mxu1 %v9031_v36  ;;  %v5379_v36 = vld [vmem:[#allocation2 + $0x1c8] sm:$0xff] }
 0x508   : > { %9036 = vmatprep.subr.bf16.mxu1 %v9035_v12  ;;  %v5663_v8 = vld [vmem:[#allocation2 + $0x69] sm:$0xff] }
 0x50a   : > { %8309 = vmatmul.mubr.f32.gmra.mrb[14].mxu1 %v5064_v27  ;;  %v5665_v27 = vld [vmem:[#allocation2 + $0x89] sm:$0xff] }
 0x50b   : > { %8311 = vmatprep.mubr.f32.mxu1 %v5065_v44  ;;  %9038 = vmatpush3.bf16.msra.mxu1 %v9035_v12  ;;  %v5384_v12 = vld [vmem:[#allocation2 + $0x210] sm:$0xff] }
 0x50c   : > { %9040 = vmatprep.subr.bf16.mxu1 %v9039_v40  ;;  %v5666_v44 = vld [vmem:[#allocation2 + $0x91] sm:$0xff] }
 0x50e   : > { %8312 = vmatmul.mubr.f32.gmra.mrb[16].mxu1 %v5066_v58  ;;  %v5667_v58 = vld [vmem:[#allocation2 + $0xa9] sm:$0xff] }
 0x50f   : > { %8314 = vmatprep.mubr.f32.mxu1 %v5067_v34  ;;  %v5668_v34 = vld [vmem:[#allocation2 + $0xb1] sm:$0xff] }
 0x512   : > { %8315 = vmatmul.mubr.f32.gmra.mrb[18].mxu1 %v5068_v19  ;;  %v5669_v19 = vld [vmem:[#allocation2 + $0xc9] sm:$0xff] }
 0x513   : > { %8317 = vmatprep.mubr.f32.mxu1 %v5069_v11  ;;  %v5670_v11 = vld [vmem:[#allocation2 + $0xd1] sm:$0xff] }
 0x516   : > { %8318 = vmatmul.mubr.f32.gmra.mrb[20].mxu1 %v5070_v17  ;;  %v5671_v17 = vld [vmem:[#allocation2 + $0xe9] sm:$0xff] }
 0x517   : > { %8320 = vmatprep.mubr.f32.mxu1 %v5071_v55  ;;  %v5672_v55 = vld [vmem:[#allocation2 + $0xf1] sm:$0xff] }
 0x51a   : > { %8321 = vmatmul.mubr.f32.gmra.mrb[22].mxu1 %v5072_v24  ;;  %v5673_v24 = vld [vmem:[#allocation2 + $0x109] sm:$0xff] }
 0x51b   : > { %8323 = vmatprep.mubr.f32.mxu1 %v5073_v25  ;;  %v5674_v25 = vld [vmem:[#allocation2 + $0x111] sm:$0xff] }
 0x51e   : > { %8324 = vmatmul.mubr.f32.gmra.mrb[24].mxu1 %v5074_v26  ;;  %v5675_v26 = vld [vmem:[#allocation2 + $0x129] sm:$0xff] }
 0x51f   : > { %8326 = vmatprep.mubr.f32.mxu1 %v5075_v43  ;;  %v5676_v43 = vld [vmem:[#allocation2 + $0x131] sm:$0xff] }
 0x522   : > { %8327 = vmatmul.mubr.f32.gmra.mrb[26].mxu1 %v5076_v46  ;;  %v5677_v46 = vld [vmem:[#allocation2 + $0x149] sm:$0xff] }
 0x523   : > { %8329 = vmatprep.mubr.f32.mxu1 %v11029_v38  ;;  %v9047_v38 = vpack.c.bf16 %v5699_v56, %v5698_v63  ;;  %v5683_v63 = vld [vmem:[#allocation2 + $0x1a9] sm:$0xff]  ;;  %v5684_v56 = vld [vmem:[#allocation2 + $0x1b1] sm:$0xff] }
 0x526   : > { %8330 = vmatmul.mubr.f32.gmra.mrb[28].mxu1 %v11032_v2  ;;  %v9051_v2 = vpack.c.bf16 %v5701_v4, %v5700_v0  ;;  %v5686_v0 = vld [vmem:[#allocation2 + $0x1d1] sm:$0xff]  ;;  %v5687_v4 = vld [vmem:[#allocation2 + $0x1e9] sm:$0xff] }
 0x527   : > { %8332 = vmatprep.mubr.f32.mxu1 %v5079_v48  ;;  %v5678_v48 = vld [vmem:[#allocation2 + $0x151] sm:$0xff] }
 0x52a   : > { %8333 = vmatmul.mubr.f32.gmra.mrb[30].mxu1 %v5080_v49  ;;  %v5679_v49 = vld [vmem:[#allocation2 + $0x169] sm:$0xff] }
 0x52b   : > { %8367 = vmatprep.mubr.f32.mxu1 %v11035_v18  ;;  %v5702_v18 = vld [vmem:[#allocation8 + $0x440] sm:$0xff] }
 0x52e   : > { %8368 = vmatmul.mubr.f32.vlgmr.msra.gmra.mrb[0].mxu1 %v11038_v42  ;;  %v9055_v42 = vpack.c.bf16 %v5703_v16, %v5702_v18  ;;  %v5691_v18 = vld [vmem:[#allocation2 + $0x229] sm:$0xff]  ;;  %v5692_v16 = vld [vmem:[#allocation2 + $0x231] sm:$0xff] }
 0x52f   : > { %8370 = vmatprep.mubr.f32.mxu1 %v11041_v59  ;;  %9042 = vmatpush3.bf16.msra.mxu1 %v9039_v40  ;;  %v5704_v59 = vld [vmem:[#allocation8 + $0x450] sm:$0xff] }
 0x530   : > { %9044 = vmatprep.subr.bf16.mxu1 %v9043_v9  ;;  %v5664_v40 = vld [vmem:[#allocation2 + $0x71] sm:$0xff] }
 0x532   : > { %8371 = vmatmul.mubr.f32.gmra.mrb[2].mxu1 %v11044_v53  ;;  %v9059_v53 = vpack.c.bf16 %v5705_v32, %v5704_v59  ;;  %v5968_v32 = vld [vmem:[%s10107_s12 + $0x8] sm:$0xff] }
 0x533   : > { %8373 = vmatprep.mubr.f32.mxu1 %v11047_v3  ;;  %9046 = vmatpush3.bf16.msra.mxu1 %v9043_v9  ;;  %v5706_v3 = vld [vmem:[#allocation8 + $0x460] sm:$0xff]  ;;  %v5682_v9 = vld [vmem:[#allocation2 + $0x191] sm:$0xff] }
 0x534   : > { %9048 = vmatprep.subr.bf16.mxu1 %v9047_v38 }
 0x536   : > { %8374 = vmatmul.mubr.f32.gmra.mrb[4].mxu1 %v11050_v14  ;;  %v9063_v14 = vpack.c.bf16 %v5707_v7, %v5706_v3 }
 0x537   : > { %8376 = vmatprep.mubr.f32.mxu1 %v11053_v37  ;;  %9050 = vmatpush3.bf16.msra.mxu1 %v9047_v38  ;;  %v5366_v37 = vld [vmem:[#allocation2 + $0xf0] sm:$0xff] }
 0x538   : > { %9052 = vmatprep.subr.bf16.mxu1 %v9051_v2  ;;  %v5685_v38 = vld [vmem:[#allocation2 + $0x1c9] sm:$0xff] }
 0x53a   : > { %8377 = vmatmul.mubr.f32.gmra.mrb[6].mxu1 %v11056_v61  ;;  %v9067_v61 = vpack.c.bf16 %v5709_v15, %v5708_v13  ;;  %v5969_v15 = vld [vmem:[%s10107_s12 + $0x10] sm:$0xff] }
 0x53b   : > { %8379 = vmatprep.mubr.f32.mxu1 %v5363_v41  ;;  %9054 = vmatpush3.bf16.msra.mxu1 %v9051_v2  ;;  %v5688_v2 = vld [vmem:[#allocation2 + $0x1f1] sm:$0xff] }
 0x53c   : > { %9056 = vmatprep.subr.bf16.mxu1 %v9055_v42 }
 0x53e   : > { %8380 = vmatmul.mubr.f32.gmra.mrb[8].mxu1 %v11060_v60  ;;  %v5370_v60 = vld [vmem:[#allocation2 + $0x130] sm:$0xff] }
 0x53f   : > { %8382 = vmatprep.mubr.f32.mxu1 %v5365_v23  ;;  %9058 = vmatpush3.bf16.msra.mxu1 %v9055_v42  ;;  %v11137_v42 = vld [vmem:[%s11294_s4] ss:$0 sm:$0xff] }
 0x540   : > { %9060 = vmatprep.subr.bf16.mxu1 %v9059_v53 }
 0x542   : > { %8383 = vmatmul.mubr.f32.gmra.mrb[10].mxu1 %v5366_v37 }
 0x543   : > { %8385 = vmatprep.mubr.f32.mxu1 %v5367_v57  ;;  %9062 = vmatpush3.bf16.msra.mxu1 %v9059_v53 }
 0x544   : > { %9064 = vmatprep.subr.bf16.mxu1 %v9063_v14 }
 0x546   : > { %8386 = vmatmul.mubr.f32.gmra.mrb[12].mxu1 %v5368_v6 }
 0x547   : > { %8388 = vmatprep.mubr.f32.mxu1 %v5369_v20  ;;  %9066 = vmatpush3.bf16.msra.mxu1 %v9063_v14  ;;  %v5970_v14 = vld [vmem:[%s10107_s12 + $0x18] sm:$0xff] }
 0x548   : > { %9068 = vmatprep.subr.bf16.mxu1 %v9067_v61 }
 0x54a   : > { %8389 = vmatmul.mubr.f32.gmra.mrb[14].mxu1 %v5370_v60  ;;  %v5972_v60 = vld [vmem:[%s10107_s12 + $0x28] sm:$0xff] }
 0x54b   : > { %8391 = vmatprep.mubr.f32.mxu1 %v5371_v51  ;;  %9070 = vmatpush3.bf16.msra.mxu1 %v9067_v61 }
 0x54e   : > { %8392 = vmatmul.mubr.f32.gmra.mrb[16].mxu1 %v5372_v5 }
 0x54f   : > { %8394 = vmatprep.mubr.f32.mxu1 %v5373_v21  ;;  %v5971_v21 = vld [vmem:[%s10107_s12 + $0x20] sm:$0xff] }
 0x552   : > { %8395 = vmatmul.mubr.f32.gmra.mrb[18].mxu1 %v5374_v54 }
 0x553   : > { %8397 = vmatprep.mubr.f32.mxu1 %v5375_v50 }
 0x556   : > { %8398 = vmatmul.mubr.f32.gmra.mrb[20].mxu1 %v5376_v10 }
 0x557   : > { %8400 = vmatprep.mubr.f32.mxu1 %v5377_v35 }
 0x55a   : > { %8401 = vmatmul.mubr.f32.gmra.mrb[22].mxu1 %v5378_v31  ;;  %v5974_v31 = vld [vmem:[%s10107_s12 + $0x38] sm:$0xff] }
 0x55b   : > { %8403 = vmatprep.mubr.f32.mxu1 %v5379_v36 }
 0x55e   : > { %8404 = vmatmul.mubr.f32.gmra.mrb[24].mxu1 %v5380_v45 }
 0x55f   : > { %8406 = vmatprep.mubr.f32.mxu1 %v5381_v22  ;;  %v5973_v22 = vld [vmem:[%s10107_s12 + $0x30] sm:$0xff] }
 0x562   : > { %8407 = vmatmul.mubr.f32.gmra.mrb[26].mxu1 %v5382_v52 }
 0x563   : > { %8409 = vmatprep.mubr.f32.mxu1 %v5383_v33 }
 0x566   : > { %8410 = vmatmul.mubr.f32.gmra.mrb[28].mxu1 %v5384_v12 }
 0x567   : > { %8412 = vmatprep.mubr.f32.mxu1 %v9722_v39 }
 0x56a   : > { %8413 = vmatmul.mubr.f32.gmra.mrb[30].mxu1 %v9722_v39 }
 0x56b   : > { %8447 = vmatprep.mubr.f32.mxu1 %v5661_v28  ;;  %v5976_v28 = vld [vmem:[%s10107_s12 + $0x48] sm:$0xff] }
 0x56e   : > { %8448 = vmatmul.mubr.f32.vlgmr.msra.gmra.mrb[0].mxu1 %v5662_v29 }
 0x56f   : > { %8450 = vmatprep.mubr.f32.mxu1 %v5663_v8 }
 0x572   : > { %8451 = vmatmul.mubr.f32.gmra.mrb[2].mxu1 %v5664_v40  ;;  %v5975_v40 = vld [vmem:[%s10107_s12 + $0x40] sm:$0xff] }
 0x573   : > { %8453 = vmatprep.mubr.f32.mxu1 %v5665_v27 }
 0x576   : > { %8454 = vmatmul.mubr.f32.gmra.mrb[4].mxu1 %v5666_v44 }
 0x577   : > { %8456 = vmatprep.mubr.f32.mxu1 %v5667_v58 }
 0x57a   : > { %8457 = vmatmul.mubr.f32.gmra.mrb[6].mxu1 %v5668_v34 }
 0x57b   : > { %8459 = vmatprep.mubr.f32.mxu1 %v5669_v19  ;;  %v5978_v19 = vld [vmem:[%s10107_s12 + $0x58] sm:$0xff] }
 0x57e   : > { %8460 = vmatmul.mubr.f32.gmra.mrb[8].mxu1 %v5670_v11 }
 0x57f   : > { %8462 = vmatprep.mubr.f32.mxu1 %v5671_v17 }
 0x582   : > { %8463 = vmatmul.mubr.f32.gmra.mrb[10].mxu1 %v5672_v55  ;;  %v5977_v55 = vld [vmem:[%s10107_s12 + $0x50] sm:$0xff] }
 0x583   : > { %8465 = vmatprep.mubr.f32.mxu1 %v5673_v24 }
 0x586   : > { %8466 = vmatmul.mubr.f32.gmra.mrb[12].mxu1 %v5674_v25 }
 0x587   : > { %8468 = vmatprep.mubr.f32.mxu1 %v5675_v26 }
 0x58a   : > { %8469 = vmatmul.mubr.f32.gmra.mrb[14].mxu1 %v5676_v43 }
 0x58b   : > { %8471 = vmatprep.mubr.f32.mxu1 %v5677_v46  ;;  %v5980_v46 = vld [vmem:[%s10107_s12 + $0x68] sm:$0xff] }
 0x58e   : > { %8472 = vmatmul.mubr.f32.gmra.mrb[16].mxu1 %v5678_v48 }
 0x58f   : > { %8474 = vmatprep.mubr.f32.mxu1 %v5679_v49 }
 0x592   : > { %8475 = vmatmul.mubr.f32.gmra.mrb[18].mxu1 %v5680_v1  ;;  %v5979_v1 = vld [vmem:[%s10107_s12 + $0x60] sm:$0xff] }
 0x593   : > { %8477 = vmatprep.mubr.f32.mxu1 %v5681_v47 }
 0x596   : > { %8478 = vmatmul.mubr.f32.gmra.mrb[20].mxu1 %v5682_v9 }
 0x597   : > { %8480 = vmatprep.mubr.f32.mxu1 %v5683_v63 }
 0x59a   : > { %8481 = vmatmul.mubr.f32.gmra.mrb[22].mxu1 %v5684_v56 }
 0x59b   : > { %8483 = vmatprep.mubr.f32.mxu1 %v5685_v38  ;;  %v5982_v38 = vld [vmem:[%s10107_s12 + $0x78] sm:$0xff] }
 0x59e   : > { %8484 = vmatmul.mubr.f32.gmra.mrb[24].mxu1 %v5686_v0 }
 0x59f   : > { %8486 = vmatprep.mubr.f32.mxu1 %v5687_v4 }
 0x5a2   : > { %8487 = vmatmul.mubr.f32.gmra.mrb[26].mxu1 %v5688_v2  ;;  %v5981_v2 = vld [vmem:[%s10107_s12 + $0x70] sm:$0xff] }
 0x5a3   : > { %8489 = vmatprep.mubr.f32.mxu1 %v11115_v62  ;;  %v5967_v62 = vld [vmem:[%s10107_s12] sm:$0xff] }
 0x5a6   : > { %8490 = vmatmul.mubr.f32.gmra.mrb[28].mxu1 %v11118_v30 }
 0x5a7   : > { %8492 = vmatprep.mubr.f32.mxu1 %v5691_v18 }
 0x5aa   : > { %8493 = vmatmul.mubr.f32.gmra.mrb[30].mxu1 %v5692_v16 }
 0x641   : > { %v8449_v59 = vpop.f32.mrb[0].mxu1 }
 0x642   : > { %v9103_v41 = vadd.f32 %v8449_v59, %v11137_v42  ;;  %v5776_v53 = vpop.f32.mrb[1].mxu1 }
 0x643   : > { %v9104_v3 = vadd.f32 %v11137_v42, %v5776_v53 }
 0x644   : > { %v6000_v7 = vadd.f32 %v9103_v41, %v5968_v32  ;;  %v5984_v41 = vld [vmem:[%s10107_s12 + $0x88] sm:$0xff] }
 0x645   : > { %v5999_v30 = vadd.f32 %v9104_v3, %v5967_v62  ;;  %v8452_v23 = vpop.f32.mrb[2].mxu1  ;;  %v5983_v3 = vld [vmem:[%s10107_s12 + $0x80] sm:$0xff] }
 0x646   : > { %6032 = vst [vmem:[%s11146_s10 + $0x8] sm:$0xff] %v6000_v7  ;;  %v9105_v37 = vadd.f32 %v8452_v23, %v11137_v42  ;;  %v5786_v13 = vpop.f32.mrb[3].mxu1 }
 0x647   : > { %6031 = vst [vmem:[%s11146_s10] sm:$0xff] %v5999_v30  ;;  %v9106_v57 = vadd.f32 %v11137_v42, %v5786_v13 }
 0x648   : > { %v6002_v61 = vadd.f32 %v9105_v37, %v5970_v14  ;;  %v5986_v37 = vld [vmem:[%s10107_s12 + $0x98] sm:$0xff] }
 0x649   : > { %v6001_v6 = vadd.f32 %v9106_v57, %v5969_v15  ;;  %v8455_v20 = vpop.f32.mrb[4].mxu1  ;;  %v5985_v57 = vld [vmem:[%s10107_s12 + $0x90] sm:$0xff] }
 0x64a   : > { %6034 = vst [vmem:[%s11146_s10 + $0x18] sm:$0xff] %v6002_v61  ;;  %v9107_v51 = vadd.f32 %v8455_v20, %v11137_v42  ;;  %v5796_v5 = vpop.f32.mrb[5].mxu1 }
 0x64b   : > { %6033 = vst [vmem:[%s11146_s10 + $0x10] sm:$0xff] %v6001_v6  ;;  %v9108_v54 = vadd.f32 %v11137_v42, %v5796_v5 }
 0x64c   : > { %v6004_v50 = vadd.f32 %v9107_v51, %v5972_v60  ;;  %v5988_v51 = vld [vmem:[%s10107_s12 + $0xa8] sm:$0xff] }
 0x64d   : > { %v6003_v10 = vadd.f32 %v9108_v54, %v5971_v21  ;;  %v8458_v35 = vpop.f32.mrb[6].mxu1  ;;  %v5987_v54 = vld [vmem:[%s10107_s12 + $0xa0] sm:$0xff] }
 0x64e   : > { %6036 = vst [vmem:[%s11146_s10 + $0x28] sm:$0xff] %v6004_v50  ;;  %v9109_v36 = vadd.f32 %v8458_v35, %v11137_v42  ;;  %v5806_v45 = vpop.f32.mrb[7].mxu1 }
 0x64f   : > { %6035 = vst [vmem:[%s11146_s10 + $0x20] sm:$0xff] %v6003_v10  ;;  %v9110_v52 = vadd.f32 %v11137_v42, %v5806_v45 }
 0x650   : > { %v6006_v33 = vadd.f32 %v9109_v36, %v5974_v31  ;;  %v5990_v36 = vld [vmem:[%s10107_s12 + $0xb8] sm:$0xff] }
 0x651   : > { %v6005_v12 = vadd.f32 %v9110_v52, %v5973_v22  ;;  %v8461_v39 = vpop.f32.mrb[8].mxu1  ;;  %v5989_v52 = vld [vmem:[%s10107_s12 + $0xb0] sm:$0xff] }
 0x652   : > { %6038 = vst [vmem:[%s11146_s10 + $0x38] sm:$0xff] %v6006_v33  ;;  %v9111_v29 = vadd.f32 %v8461_v39, %v11137_v42  ;;  %v5816_v8 = vpop.f32.mrb[9].mxu1 }
 0x653   : > { %6037 = vst [vmem:[%s11146_s10 + $0x30] sm:$0xff] %v6005_v12  ;;  %v9112_v27 = vadd.f32 %v11137_v42, %v5816_v8 }
 0x654   : > { %v6008_v44 = vadd.f32 %v9111_v29, %v5976_v28  ;;  %v5992_v29 = vld [vmem:[%s10107_s12 + $0xc8] sm:$0xff] }
 0x655   : > { %v6007_v58 = vadd.f32 %v9112_v27, %v5975_v40  ;;  %v8464_v34 = vpop.f32.mrb[10].mxu1  ;;  %v5991_v27 = vld [vmem:[%s10107_s12 + $0xc0] sm:$0xff] }
 0x656   : > { %6040 = vst [vmem:[%s11146_s10 + $0x48] sm:$0xff] %v6008_v44  ;;  %v9113_v11 = vadd.f32 %v8464_v34, %v11137_v42  ;;  %v5826_v17 = vpop.f32.mrb[11].mxu1 }
 0x657   : > { %6039 = vst [vmem:[%s11146_s10 + $0x40] sm:$0xff] %v6007_v58  ;;  %v9114_v24 = vadd.f32 %v11137_v42, %v5826_v17 }
 0x658   : > { %v6010_v25 = vadd.f32 %v9113_v11, %v5978_v19  ;;  %v5994_v11 = vld [vmem:[%s10107_s12 + $0xd8] sm:$0xff] }
 0x659   : > { %v6009_v26 = vadd.f32 %v9114_v24, %v5977_v55  ;;  %v8467_v43 = vpop.f32.mrb[12].mxu1  ;;  %v5993_v24 = vld [vmem:[%s10107_s12 + $0xd0] sm:$0xff] }
 0x65a   : > { %6042 = vst [vmem:[%s11146_s10 + $0x58] sm:$0xff] %v6010_v25  ;;  %v9115_v48 = vadd.f32 %v8467_v43, %v11137_v42  ;;  %v5836_v49 = vpop.f32.mrb[13].mxu1 }
 0x65b   : > { %6041 = vst [vmem:[%s11146_s10 + $0x50] sm:$0xff] %v6009_v26  ;;  %v9116_v47 = vadd.f32 %v11137_v42, %v5836_v49 }
 0x65c   : > { %v6012_v9 = vadd.f32 %v9115_v48, %v5980_v46  ;;  %v5996_v48 = vld [vmem:[%s10107_s12 + $0xe8] sm:$0xff] }
 0x65d   : > { %v6011_v63 = vadd.f32 %v9116_v47, %v5979_v1  ;;  %v8470_v56 = vpop.f32.mrb[14].mxu1  ;;  %v5995_v47 = vld [vmem:[%s10107_s12 + $0xe0] sm:$0xff] }
 0x65e   : > { %6044 = vst [vmem:[%s11146_s10 + $0x68] sm:$0xff] %v6012_v9  ;;  %v9117_v0 = vadd.f32 %v8470_v56, %v11137_v42  ;;  %v5846_v4 = vpop.f32.mrb[15].mxu1 }
 0x65f   : > { %6043 = vst [vmem:[%s11146_s10 + $0x60] sm:$0xff] %v6011_v63  ;;  %v9118_v18 = vadd.f32 %v11137_v42, %v5846_v4 }
 0x660   : > { %v6014_v16 = vadd.f32 %v9117_v0, %v5982_v38  ;;  %v5998_v0 = vld [vmem:[%s10107_s12 + $0xf8] sm:$0xff] }
 0x661   : > { %v6013_v59 = vadd.f32 %v9118_v18, %v5981_v2  ;;  %v8473_v32 = vpop.f32.mrb[16].mxu1  ;;  %v5997_v18 = vld [vmem:[%s10107_s12 + $0xf0] sm:$0xff] }
 0x662   : > { %6046 = vst [vmem:[%s11146_s10 + $0x78] sm:$0xff] %v6014_v16  ;;  %v9119_v53 = vadd.f32 %v8473_v32, %v11137_v42  ;;  %v5856_v62 = vpop.f32.mrb[17].mxu1 }
 0x663   : > { %6045 = vst [vmem:[%s11146_s10 + $0x70] sm:$0xff] %v6013_v59  ;;  %v9120_v7 = vadd.f32 %v11137_v42, %v5856_v62 }
 0x664   : > { %v6016_v30 = vadd.f32 %v9119_v53, %v5984_v41 }
 0x665   : > { %v6015_v23 = vadd.f32 %v9120_v7, %v5983_v3  ;;  %v8476_v14 = vpop.f32.mrb[18].mxu1 }
 0x666   : > { %6048 = vst [vmem:[%s11146_s10 + $0x88] sm:$0xff] %v6016_v30  ;;  %v9121_v13 = vadd.f32 %v8476_v14, %v11137_v42  ;;  %v5866_v15 = vpop.f32.mrb[19].mxu1 }
 0x667   : > { %6047 = vst [vmem:[%s11146_s10 + $0x80] sm:$0xff] %v6015_v23  ;;  %v9122_v61 = vadd.f32 %v11137_v42, %v5866_v15 }
 0x668   : > { %v6018_v6 = vadd.f32 %v9121_v13, %v5986_v37 }
 0x669   : > { %v6017_v20 = vadd.f32 %v9122_v61, %v5985_v57  ;;  %v8479_v60 = vpop.f32.mrb[20].mxu1 }
 0x66a   : > { %6050 = vst [vmem:[%s11146_s10 + $0x98] sm:$0xff] %v6018_v6  ;;  %v9123_v5 = vadd.f32 %v8479_v60, %v11137_v42  ;;  %v5876_v21 = vpop.f32.mrb[21].mxu1 }
 0x66b   : > { %6049 = vst [vmem:[%s11146_s10 + $0x90] sm:$0xff] %v6017_v20  ;;  %v9124_v50 = vadd.f32 %v11137_v42, %v5876_v21 }
 0x66c   : > { %v6020_v10 = vadd.f32 %v9123_v5, %v5988_v51 }
 0x66d   : > { %v6019_v35 = vadd.f32 %v9124_v50, %v5987_v54  ;;  %v8482_v31 = vpop.f32.mrb[22].mxu1 }
 0x66e   : > { %6052 = vst [vmem:[%s11146_s10 + $0xa8] sm:$0xff] %v6020_v10  ;;  %v9125_v45 = vadd.f32 %v8482_v31, %v11137_v42  ;;  %v5886_v22 = vpop.f32.mrb[23].mxu1 }
 0x66f   : > { %6051 = vst [vmem:[%s11146_s10 + $0xa0] sm:$0xff] %v6019_v35  ;;  %v9126_v33 = vadd.f32 %v11137_v42, %v5886_v22 }
 0x670   : > { %v6022_v12 = vadd.f32 %v9125_v45, %v5990_v36 }
 0x671   : > { %v6021_v39 = vadd.f32 %v9126_v33, %v5989_v52  ;;  %v8485_v28 = vpop.f32.mrb[24].mxu1 }
 0x672   : > { %6054 = vst [vmem:[%s11146_s10 + $0xb8] sm:$0xff] %v6022_v12  ;;  %v9127_v8 = vadd.f32 %v8485_v28, %v11137_v42  ;;  %v5896_v40 = vpop.f32.mrb[25].mxu1 }
 0x673   : > { %6053 = vst [vmem:[%s11146_s10 + $0xb0] sm:$0xff] %v6021_v39  ;;  %v9128_v44 = vadd.f32 %v11137_v42, %v5896_v40 }
 0x674   : > { %v6024_v58 = vadd.f32 %v9127_v8, %v5992_v29 }
 0x675   : > { %v6023_v34 = vadd.f32 %v9128_v44, %v5991_v27  ;;  %v8488_v19 = vpop.f32.mrb[26].mxu1 }
 0x676   : > { %6056 = vst [vmem:[%s11146_s10 + $0xc8] sm:$0xff] %v6024_v58  ;;  %v9129_v17 = vadd.f32 %v8488_v19, %v11137_v42  ;;  %v5906_v55 = vpop.f32.mrb[27].mxu1 }
 0x677   : > { %6055 = vst [vmem:[%s11146_s10 + $0xc0] sm:$0xff] %v6023_v34  ;;  %v9130_v25 = vadd.f32 %v11137_v42, %v5906_v55 }
 0x678   : > { %v6026_v26 = vadd.f32 %v9129_v17, %v5994_v11 }
 0x679   : > { %v6025_v43 = vadd.f32 %v9130_v25, %v5993_v24  ;;  %v8491_v46 = vpop.f32.mrb[28].mxu1 }
 0x67a   : > { %6058 = vst [vmem:[%s11146_s10 + $0xd8] sm:$0xff] %v6026_v26  ;;  %v9131_v49 = vadd.f32 %v8491_v46, %v11137_v42  ;;  %v5916_v1 = vpop.f32.mrb[29].mxu1 }
 0x67b   : > { %6057 = vst [vmem:[%s11146_s10 + $0xd0] sm:$0xff] %v6025_v43  ;;  %v9132_v9 = vadd.f32 %v11137_v42, %v5916_v1 }
 0x67c   : > { %v6028_v63 = vadd.f32 %v9131_v49, %v5996_v48 }
 0x67d   : > { %v6027_v56 = vadd.f32 %v9132_v9, %v5995_v47  ;;  %v8494_v38 = vpop.f32.mrb[30].mxu1 }
 0x67e   : > { %6060 = vst [vmem:[%s11146_s10 + $0xe8] sm:$0xff] %v6028_v63  ;;  %v9133_v4 = vadd.f32 %v8494_v38, %v11137_v42  ;;  %v5926_v2 = vpop.f32.mrb[31].mxu1 }
 0x67f   : > { %6059 = vst [vmem:[%s11146_s10 + $0xe0] sm:$0xff] %v6027_v56  ;;  %v9134_v16 = vadd.f32 %v11137_v42, %v5926_v2 }
 0x680   : > { %v6030_v59 = vadd.f32 %v9133_v4, %v5998_v0 }
 0x681   : > { %v6029_v32 = vadd.f32 %v9134_v16, %v5997_v18 }
 0x682   : > { %6062 = vst [vmem:[%s11146_s10 + $0xf8] sm:$0xff] %v6030_v59 }
 0x683   : > { %6061 = vst [vmem:[%s11146_s10 + $0xf0] sm:$0xff] %v6029_v32 }
 0x684   : > { %9822 = shalt.err (!%p9819_p1)
}
 0x685   : > { %s9823_s12 = scalar_lea.hbm %s11242_s11, 4096  ;;  %s9827_s15 = scalar_lea.hbm %s11295_s5, 8192 }
 0x686   : > { %p9824_p13 = scmp.ne.s32.totalorder %s11242_s11, %s9823_s12  ;;  %p9828_p4 = scmp.lt.u32.totalorder %s11242_s11, %s11295_s5 }
 0x687   : > { %p9829_p5 = scmp.lt.u32.totalorder %s9827_s15, %s9823_s12  ;;  %p9831_p11 = scmp.lt.u32.totalorder %s9823_s12, %s11242_s11 }
 0x688   : > { %p9825_p6 = pnand %p9824_p13, %p11530_p0 }
 0x689   : > { %p9830_p8 = por %p9829_p5, %p9828_p4 }
 0x68a   : > { %p9826_p10 = pneg %p9825_p6 }
 0x68b   : > { %p9832_p2 = por %p9831_p11, %p9830_p8 }
 0x68d   : > { %p9833_p3 = pnand %p9832_p2, %p9826_p10 }
 0x68f   : > { %9836 = shalt.err (!%p9833_p3)
}
 0x690   : > { %s9888_s28 = smov 128   ;;  %s9889_s9 = smov 8  }
 0x691   : > { %9657 = dma.vmem_to_hbm [thread:$0]  (%p11530_p0), %s11244_s13, 4096, %s11242_s11, %s6064_s22, %s9888_s28, %s9888_s28, %s9889_s9  }
 0x692 PF: > { %s6092_s30 = sand.u32 1, %s9867_s18   ;;  %p11531_p7 = scmp.ne.s32.totalorder %s11378_s25, 0 }
 0x693   : > { %p11532_p9 = scmp.ge.s32.totalorder %s9879_s21, 2  ;;  %s6093_s17 = scalar_lea.sflag [#allocation5], %s6092_s30 }
 0x695   : > { %p9671_p12 = pnand %p11532_p9, %p11531_p7 }
 0x697   : > { %9862 = dma.done.wait (!%p9671_p12), %s6093_s17, 4096  }
 0x698   : > { %9864 = vsyncadd (!%p9671_p12), %s6093_s17, 4294963200  ;;  %p19_p1 = scmp.ge.s32.totalorder %s10036_s29, 4   ;;  %s11533_s18 = smov %s9871_s19 }
 0x699   : > { %s11534_s19 = smov %s9875_s20  ;;  %s11535_s20 = smov %s10052_s27 }
 0x69a   : > { %s11536_s21 = smov %s10036_s29  ;;  %21 = sbr.rel (!%p19_p1) target bundleno = 6 (0x6), region = 112 }
 0x6a1   :  { %6098 = vsyncpa [#allocation4], 1 }
 0x6a2   :  { %6100 = vsyncpa [#allocation4 + $0x1], 1 }
 0x6a3   :  { %6101 = vsyncpa [#allocation7], 1 }
 0x6a4   :  { %6102 = vsyncpa [#allocation5], 1 }
 0x6a5   :  { %6104 = vsyncpa [#allocation5 + $0x1], 1 }

</bundles_post_ra>
